<compile_context>
chip_gen: v7x
topology: tpu7x:2x2x1
jax: 0.10.0
libtpu: 0.0.40
codegen_flags: <defaults>
</compile_context>

<pallas_src>
import functools

import jax
import jax.numpy as jnp
from jax.experimental import pallas as pl
from jax.experimental.pallas import tpu as pltpu

LN_EPS = 1e-6           # timm ViT LayerNorm default
_NEG_INF = -1e30        # additive mask for padded key columns


# ---------------------------------------------------------------------------
# Device-dependent tiling / VMEM knobs
# ---------------------------------------------------------------------------
def _vmem_capacity_bytes():
    try:
        info = pltpu.get_tpu_info()
        cap = getattr(info, "vmem_capacity_bytes", None)
        if cap:
            return int(cap)
    except Exception:
        pass
    return 64 * 1024 * 1024


_VMEM_CAP = _vmem_capacity_bytes()
_VMEM_LIMIT = max(32 * 1024 * 1024,
                  min(int(_VMEM_CAP * 0.7), 100 * 1024 * 1024))
# 128-MiB-VMEM generations (v5e/v6e) take 512-row tiles; v7x (64 MiB) keeps 256.
_PREF_ROWS = 512 if _VMEM_CAP >= 100 * 1024 * 1024 else 256


def _cparams(semantics):
    return pltpu.CompilerParams(dimension_semantics=semantics,
                                vmem_limit_bytes=_VMEM_LIMIT)


def _round_up(x, m):
    return ((x + m - 1) // m) * m


def _row_tile(n, pref=256):
    """Largest tile in {pref,256,...,8} that divides n, else n itself."""
    for t in (pref, 256, 128, 64, 32, 16, 8):
        if t <= n and n % t == 0:
            return t
    return n


def _hidden_tile(hd, max_t=2048):
    t = hd
    while t > max_t and t % 2 == 0:
        t //= 2
    return t


def _layernorm(x, g, b):
    mu = jnp.mean(x, axis=-1, keepdims=True)
    var = jnp.mean(jnp.square(x - mu), axis=-1, keepdims=True)
    return (x - mu) * jax.lax.rsqrt(var + LN_EPS) * g + b


# ---------------------------------------------------------------------------
# Pallas kernels
# ---------------------------------------------------------------------------
def _patch_embed_kernel(p_ref, w_ref, add_ref, o_ref):
    # bf16 patches @ (conditioner-folded) bf16 weight -> f32, plus the fused
    # (bias + pos-embed + cls-row) additive table.  Pad rows come out as 0.
    o_ref[0] = (
        jnp.dot(p_ref[0], w_ref[...], preferred_element_type=jnp.float32)
        + add_ref[...]
    )


def _ln_qkv_kernel(x_ref, g_ref, b_ref, wq_ref, wk_ref, wv_ref,
                   bq_ref, bk_ref, bv_ref, q_ref, k_ref, v_ref, *, num_heads):
    # LayerNorm (f32) fused with the q/k/v projections (bf16 MXU, f32 acc).
    # The 1/sqrt(dh) scale is already folded into wq/bq.  Outputs are written
    # head-major (H, tq, dh) so attention can slice heads via BlockSpecs with
    # full-extent last dims.
    xn = _layernorm(x_ref[0], g_ref[...], b_ref[...]).astype(jnp.bfloat16)
    qf = jnp.dot(xn, wq_ref[...], preferred_element_type=jnp.float32) + bq_ref[...]
    kf = jnp.dot(xn, wk_ref[...], preferred_element_type=jnp.float32) + bk_ref[...]
    vf = jnp.dot(xn, wv_ref[...], preferred_element_type=jnp.float32) + bv_ref[...]
    d = qf.shape[-1]
    dh = d // num_heads
    for h in range(num_heads):
        sl = slice(h * dh, (h + 1) * dh)
        q_ref[0, h, :, :] = qf[:, sl].astype(jnp.bfloat16)
        k_ref[0, h, :, :] = kf[:, sl].astype(jnp.bfloat16)
        v_ref[0, h, :, :] = vf[:, sl].astype(jnp.bfloat16)


def _attn_kernel(q_ref, k_ref, v_ref, bias_ref, o_ref):
    # One (batch, head, q-tile) step: (tq, dh) q against the head's full-S
    # K/V (resident across the q sweep).  Padded key columns are masked with
    # the additive bias.  Scale already folded into q.
    q = q_ref[0, 0]                                   # (tq, dh)  bf16
    k = k_ref[0, 0]                                   # (S,  dh)  bf16
    v = v_ref[0, 0]                                   # (S,  dh)  bf16
    s = jax.lax.dot_general(q, k, (((1,), (1,)), ((), ())),
                            preferred_element_type=jnp.float32)   # (tq, S)
    s = s + bias_ref[...]
    m = jnp.max(s, axis=-1, keepdims=True)
    p = jnp.exp(s - m)
    denom = jnp.sum(p, axis=-1, keepdims=True)
    o = jnp.dot(p.astype(jnp.bfloat16), v, preferred_element_type=jnp.float32)
    o_ref[0, 0] = (o * (1.0 / denom)).astype(jnp.bfloat16)


def _attnproj_mlp_kernel(x_ref, ctx_ref, pw_ref, pb_ref, n2g_ref, n2b_ref,
                         fc1w_ref, fc1b_ref, fc2w_ref, fc2b_ref,
                         ng_ref, nb_ref, o_ref, xn_sc, acc_sc, *,
                         num_heads, apply_final_ln):
    # head-recombine -> out-proj -> +residual -> LN2 -> fc1/GELU/fc2 (hidden
    # dim tiled on grid axis 2) -> +residual (-> final LayerNorm on the last
    # block), fully fused.
    hk = pl.program_id(2)

    @pl.when(hk == 0)
    def _():
        ctx3 = ctx_ref[0]                                        # (H, t, dh)
        ctx2 = jnp.concatenate([ctx3[h] for h in range(num_heads)], axis=-1)
        x_mid = (x_ref[0]
                 + jnp.dot(ctx2, pw_ref[...], preferred_element_type=jnp.float32)
                 + pb_ref[...])
        xn_sc[...] = _layernorm(x_mid, n2g_ref[...], n2b_ref[...]
                                ).astype(jnp.bfloat16)
        acc_sc[...] = x_mid + fc2b_ref[...]

    h = jnp.dot(xn_sc[...], fc1w_ref[...],
                preferred_element_type=jnp.float32) + fc1b_ref[...]
    h = jax.nn.gelu(h, approximate=True)
    acc_sc[...] += jnp.dot(h.astype(jnp.bfloat16), fc2w_ref[...],
                           preferred_element_type=jnp.float32)

    @pl.when(hk == pl.num_programs(2) - 1)
    def _():
        y = acc_sc[...]
        if apply_final_ln:
            y = _layernorm(y, ng_ref[...], nb_ref[...])
        o_ref[0] = y


# ---------------------------------------------------------------------------
# Wrappers (pallas_call with grid / BlockSpecs)
# ---------------------------------------------------------------------------
def patch_embed(patches, w, add_tok):
    B, S_pad, K = patches.shape
    D = w.shape[1]
    t = _row_tile(S_pad, _PREF_ROWS)
    grid = (B, S_pad // t)
    return pl.pallas_call(
        _patch_embed_kernel,
        out_shape=jax.ShapeDtypeStruct((B, S_pad, D), jnp.float32),
        grid=grid,
        in_specs=[
            pl.BlockSpec((1, t, K), lambda b, i: (b, i, 0)),
            pl.BlockSpec((K, D), lambda b, i: (0, 0)),
            pl.BlockSpec((t, D), lambda b, i: (i, 0)),
        ],
        out_specs=pl.BlockSpec((1, t, D), lambda b, i: (b, i, 0)),
        compiler_params=_cparams(("parallel", "parallel")),
    )(patches, w, add_tok)


def ln_qkv(x, blk, num_heads):
    B, S_pad, D = x.shape
    dh = D // num_heads
    t = _row_tile(S_pad, _PREF_ROWS)
    grid = (B, S_pad // t)
    kernel = functools.partial(_ln_qkv_kernel, num_heads=num_heads)
    head_spec = pl.BlockSpec((1, num_heads, t, dh), lambda b, i: (b, 0, i, 0))
    head_shape = jax.ShapeDtypeStruct((B, num_heads, S_pad, dh), jnp.bfloat16)
    vec = pl.BlockSpec((1, D), lambda b, i: (0, 0))
    mat = pl.BlockSpec((D, D), lambda b, i: (0, 0))
    return pl.pallas_call(
        kernel,
        out_shape=(head_shape, head_shape, head_shape),
        grid=grid,
        in_specs=[
            pl.BlockSpec((1, t, D), lambda b, i: (b, i, 0)),
            vec, vec, mat, mat, mat, vec, vec, vec,
        ],
        out_specs=(head_spec, head_spec, head_spec),
        compiler_params=_cparams(("parallel", "parallel")),
    )(x, blk["n1_g"], blk["n1_b"], blk["wq"], blk["wk"], blk["wv"],
      blk["bq"], blk["bk"], blk["bv"])


def attention(q, k, v, attn_bias):
    B, H, S_pad, dh = q.shape
    tq = _row_tile(S_pad, 256)
    grid = (B, H, S_pad // tq)
    return pl.pallas_call(
        _attn_kernel,
        out_shape=jax.ShapeDtypeStruct((B, H, S_pad, dh), jnp.bfloat16),
        grid=grid,
        in_specs=[
            pl.BlockSpec((1, 1, tq, dh), lambda b, h, i: (b, h, i, 0)),
            pl.BlockSpec((1, 1, S_pad, dh), lambda b, h, i: (b, h, 0, 0)),
            pl.BlockSpec((1, 1, S_pad, dh), lambda b, h, i: (b, h, 0, 0)),
            pl.BlockSpec((1, S_pad), lambda b, h, i: (0, 0)),
        ],
        out_specs=pl.BlockSpec((1, 1, tq, dh), lambda b, h, i: (b, h, i, 0)),
        compiler_params=_cparams(("parallel", "parallel", "parallel")),
    )(q, k, v, attn_bias)


def attnproj_mlp(x, ctx, blk, norm_g, norm_b, *, apply_final_ln,
                 hidden_tile=None):
    B, S_pad, D = x.shape
    H, dh = ctx.shape[1], ctx.shape[3]
    Hd = blk["fc1_w"].shape[1]
    t = _row_tile(S_pad, _PREF_ROWS)
    th = int(hidden_tile) if hidden_tile else _hidden_tile(Hd)
    assert Hd % th == 0 and (th % 128 == 0 or th == Hd), (Hd, th)
    grid = (B, S_pad // t, Hd // th)
    kernel = functools.partial(_attnproj_mlp_kernel, num_heads=H,
                               apply_final_ln=apply_final_ln)
    vec = pl.BlockSpec((1, D), lambda b, i, hk: (0, 0))
    return pl.pallas_call(
        kernel,
        out_shape=jax.ShapeDtypeStruct((B, S_pad, D), jnp.float32),
        grid=grid,
        in_specs=[
            pl.BlockSpec((1, t, D), lambda b, i, hk: (b, i, 0)),         # x
            pl.BlockSpec((1, H, t, dh), lambda b, i, hk: (b, 0, i, 0)),  # ctx
            pl.BlockSpec((D, D), lambda b, i, hk: (0, 0)),               # proj_w
            vec,                                                         # proj_b
            vec, vec,                                                    # LN2 g/b
            pl.BlockSpec((D, th), lambda b, i, hk: (0, hk)),             # fc1_w
            pl.BlockSpec((1, th), lambda b, i, hk: (0, hk)),             # fc1_b
            pl.BlockSpec((th, D), lambda b, i, hk: (hk, 0)),             # fc2_w
            vec,                                                         # fc2_b
            vec, vec,                                                    # final LN g/b
        ],
        out_specs=pl.BlockSpec((1, t, D), lambda b, i, hk: (b, i, 0)),
        scratch_shapes=[pltpu.VMEM((t, D), jnp.bfloat16),
                        pltpu.VMEM((t, D), jnp.float32)],
        compiler_params=_cparams(("parallel", "parallel", "arbitrary")),
    )(x, ctx, blk["proj_w"], blk["proj_b"], blk["n2_g"], blk["n2_b"],
      blk["fc1_w"], blk["fc1_b"], blk["fc2_w"], blk["fc2_b"], norm_g, norm_b)


# ---------------------------------------------------------------------------
# Parameter preparation (conditioner fold, scale fold, pos/cls fold, bf16)
# ---------------------------------------------------------------------------
def prepare_params(params, cfg):
    P, H = cfg["patch"], cfg["heads"]
    mean = params["cond_mean"].astype(jnp.float32)
    std = params["cond_std"].astype(jnp.float32)
    inv_std = 1.0 / std
    # Patch row r = c*P*P + ph*P + pw  ->  exact per-row fold of the affine
    # input conditioner into the patch-embed matmul.
    row_scale = jnp.repeat(inv_std, P * P)
    row_shift = jnp.repeat(-mean * inv_std, P * P)
    patch_w = params["patch_w"].astype(jnp.float32)
    w_fold = patch_w * row_scale[:, None]
    b_fold = params["patch_b"].astype(jnp.float32) + row_shift @ patch_w   # (D,)

    pos = params["pos_embed"].astype(jnp.float32)[0]      # (1+N, D)
    N, D = pos.shape[0] - 1, pos.shape[1]
    assert D % H == 0
    S = N + 1
    S_pad = _round_up(S, 8 if S < 128 else 128)

    # Additive table: row 0 = cls + pos[0] (the "patch" for that row is zero),
    # rows 1..N = patch bias + pos, pad rows = 0 (so padded tokens start at 0).
    cls_row = params["cls_token"].astype(jnp.float32).reshape(1, D) + pos[:1]
    patch_add = b_fold[None, :] + pos[1:]
    add_tok = jnp.concatenate(
        [cls_row, patch_add, jnp.zeros((S_pad - S, D), jnp.float32)], axis=0)

    attn_bias = jnp.where(jnp.arange(S_pad) < S, 0.0, _NEG_INF
                          ).astype(jnp.float32).reshape(1, S_pad)

    scale = float(D // H) ** -0.5

    prep = {
        "patch_w": w_fold.astype(jnp.bfloat16),            # (C*P*P, D)
        "add_tok": add_tok,                                 # (S_pad, D)
        "attn_bias": attn_bias,                             # (1, S_pad)
        "norm_g": params["norm_g"].reshape(1, -1).astype(jnp.float32),
        "norm_b": params["norm_b"].reshape(1, -1).astype(jnp.float32),
        "num_patches": int(N),
        "seq": int(S),
        "seq_pad": int(S_pad),
        "blocks": [],
    }
    for blk in params["blocks"]:
        qkv_w = blk["qkv_w"].astype(jnp.float32)            # (D, 3D) = [q|k|v]
        qkv_b = blk["qkv_b"].astype(jnp.float32)
        prep["blocks"].append({
            "n1_g": blk["n1_g"].reshape(1, -1).astype(jnp.float32),
            "n1_b": blk["n1_b"].reshape(1, -1).astype(jnp.float32),
            # 1/sqrt(dh) folded into the q projection.
            "wq": (qkv_w[:, :D] * scale).astype(jnp.bfloat16),
            "wk": qkv_w[:, D:2 * D].astype(jnp.bfloat16),
            "wv": qkv_w[:, 2 * D:].astype(jnp.bfloat16),
            "bq": (qkv_b[:D] * scale).reshape(1, -1),
            "bk": qkv_b[D:2 * D].reshape(1, -1),
            "bv": qkv_b[2 * D:].reshape(1, -1),
            "proj_w": blk["proj_w"].astype(jnp.bfloat16),
            "proj_b": blk["proj_b"].reshape(1, -1).astype(jnp.float32),
            "n2_g": blk["n2_g"].reshape(1, -1).astype(jnp.float32),
            "n2_b": blk["n2_b"].reshape(1, -1).astype(jnp.float32),
            "fc1_w": blk["fc1_w"].astype(jnp.bfloat16),
            "fc1_b": blk["fc1_b"].reshape(1, -1).astype(jnp.float32),
            "fc2_w": blk["fc2_w"].astype(jnp.bfloat16),
            "fc2_b": blk["fc2_b"].reshape(1, -1).astype(jnp.float32),
        })
    return prep


# ---------------------------------------------------------------------------
# ViT forward_features + RADIO forward
# ---------------------------------------------------------------------------
def vit_forward_features(x_nchw, prep, cfg):
    B, C, H_img, W_img = x_nchw.shape
    P, D, nH = cfg["patch"], cfg["dim"], cfg["heads"]
    hp, wp = H_img // P, W_img // P
    N = hp * wp
    assert N == prep["num_patches"]
    assert len(prep["blocks"]) >= 1          # final LN is fused into the last block
    S, S_pad = prep["seq"], prep["seq_pad"]

    # XLA glue: NCHW -> (B, N, C*P*P) with (c, ph, pw) row ordering matching a
    # Conv2d(patch, stride=patch) flattened weight; the conditioner is already
    # folded into the bf16 patch-embed weight.  Row 0 (cls slot) and pad rows
    # are zero patches; the kernel's additive table supplies cls + pos.
    patches = x_nchw.reshape(B, C, hp, P, wp, P)
    patches = patches.transpose(0, 2, 4, 1, 3, 5).reshape(B, N, C * P * P)
    patches = patches.astype(jnp.bfloat16)
    patches = jnp.pad(patches, ((0, 0), (1, S_pad - S), (0, 0)))

    x = patch_embed(patches, prep["patch_w"], prep["add_tok"])   # (B,S_pad,D) f32

    n_blocks = len(prep["blocks"])
    for li, blk in enumerate(prep["blocks"]):
        q, k, v = ln_qkv(x, blk, nH)                              # (B,H,S_pad,dh) bf16
        ctx = attention(q, k, v, prep["attn_bias"])               # (B,H,S_pad,dh) bf16
        x = attnproj_mlp(x, ctx, blk, prep["norm_g"], prep["norm_b"],
                         apply_final_ln=(li == n_blocks - 1),
                         hidden_tile=cfg.get("mlp_hidden_tile"))
    return x                                                      # final LN applied


def radio_forward(x, prep, cfg, return_summary=True,
                  return_spatial_features=True):
    y = vit_forward_features(x, prep, cfg)
    N = prep["num_patches"]
    # VisionTransformer path: no patch_generator, global_pool != 'avg'.
    summary = y[:, 0]                 # (B, D)
    all_feat = y[:, 1:1 + N]          # (B, N, D)  (pad rows discarded)
    if return_summary and return_spatial_features:
        return summary, all_feat
    if return_summary:
        return summary
    return all_feat


# ---------------------------------------------------------------------------
# Deterministic synthetic parameters
# ---------------------------------------------------------------------------
def init_params(key, cfg, in_chans, img_size):
    D, P, depth = cfg["dim"], cfg["patch"], cfg["depth"]
    hidden = cfg["mlp_ratio"] * D
    N = (img_size // P) ** 2
    patch_dim = in_chans * P * P

    def nrm(k, shape, scale=0.02):
        return (scale * jax.random.normal(k, shape)).astype(jnp.float32)

    keys = jax.random.split(key, 3 + 4 * depth)
    ki = iter(keys)

    params = {
        "cond_mean": jnp.array([0.485, 0.456, 0.406], jnp.float32)[:in_chans],
        "cond_std": jnp.array([0.229, 0.224, 0.225], jnp.float32)[:in_chans],
        "patch_w": nrm(next(ki), (patch_dim, D)),
        "patch_b": jnp.zeros((D,), jnp.float32),
        "cls_token": nrm(next(ki), (1, 1, D)),
        "pos_embed": nrm(next(ki), (1, 1 + N, D)),
        "norm_g": jnp.ones((D,), jnp.float32),
        "norm_b": jnp.zeros((D,), jnp.float32),
        "blocks": [],
    }
    for _ in range(depth):
        params["blocks"].append({
            "n1_g": jnp.ones((D,), jnp.float32),
            "n1_b": jnp.zeros((D,), jnp.float32),
            "qkv_w": nrm(next(ki), (D, 3 * D)),
            "qkv_b": jnp.zeros((3 * D,), jnp.float32),
            "proj_w": nrm(next(ki), (D, D)),
            "proj_b": jnp.zeros((D,), jnp.float32),
            "n2_g": jnp.ones((D,), jnp.float32),
            "n2_b": jnp.zeros((D,), jnp.float32),
            "fc1_w": nrm(next(ki), (D, hidden)),
            "fc1_b": jnp.zeros((hidden,), jnp.float32),
            "fc2_w": nrm(next(ki), (hidden, D)),
            "fc2_b": jnp.zeros((D,), jnp.float32),
        })
    return params


if __name__ == "__main__":
    # Small but representative: D=128 (one full lane group), 2 heads (dh=64,
    # exercises head-major layout), S=17 -> padded to 24 (exercises the pad
    # mask), mlp_hidden_tile=256 -> 2 hidden-dim accumulation steps.
    cfg = dict(patch=4, dim=128, heads=2, depth=2, mlp_ratio=4,
               mlp_hidden_tile=256)
    B, C, H, W = 2, 3, 16, 16

    key = jax.random.PRNGKey(0)
    kx, kp = jax.random.split(key)
    x = jax.random.normal(kx, (B, C, H, W), jnp.float32)
    params = init_params(kp, cfg, in_chans=C, img_size=H)
    prep = prepare_params(params, cfg)

    fwd = jax.jit(lambda xx: radio_forward(xx, prep, cfg,
                                           return_summary=True,
                                           return_spatial_features=True))
    summary, all_feat = fwd(x)
    jax.block_until_ready((summary, all_feat))

    n_patches = (H // cfg["patch"]) ** 2
    assert summary.shape == (B, cfg["dim"]), summary.shape
    assert all_feat.shape == (B, n_patches, cfg["dim"]), all_feat.shape
    assert bool(jnp.all(jnp.isfinite(summary)))
    assert bool(jnp.all(jnp.isfinite(all_feat)))
    print("KERNEL_OK")
</pallas_src>

<mosaic_0001>
module attributes {stable_mosaic.version = 11 : i64} {
  func.func @_attnproj_mlp_kernel(%arg0: i32, %arg1: i32, %arg2: i32, %arg3: memref<1x8x128xf32, #tpu.memory_space<vmem>>, %arg4: memref<1x2x8x64xbf16, #tpu.memory_space<vmem>>, %arg5: memref<128x128xbf16, #tpu.memory_space<vmem>>, %arg6: memref<1x128xf32, #tpu.memory_space<vmem>>, %arg7: memref<1x128xf32, #tpu.memory_space<vmem>>, %arg8: memref<1x128xf32, #tpu.memory_space<vmem>>, %arg9: memref<128x256xbf16, #tpu.memory_space<vmem>>, %arg10: memref<1x256xf32, #tpu.memory_space<vmem>>, %arg11: memref<256x128xbf16, #tpu.memory_space<vmem>>, %arg12: memref<1x128xf32, #tpu.memory_space<vmem>>, %arg13: memref<1x128xf32, #tpu.memory_space<vmem>>, %arg14: memref<1x128xf32, #tpu.memory_space<vmem>>, %arg15: memref<1x8x128xf32, #tpu.memory_space<vmem>>, %arg16: memref<8x128xbf16, #tpu.memory_space<vmem>>, %arg17: memref<8x128xf32, #tpu.memory_space<vmem>>) attributes {dimension_semantics = [#tpu.dimension_semantics<parallel>, #tpu.dimension_semantics<parallel>, #tpu.dimension_semantics<arbitrary>], iteration_bounds = array<i64: 2, 3, 2>, scalar_prefetch = 0 : i64, scratch_operands = 2 : i64, tpu.core_type = #tpu.core_type<tc>, window_params = [{transform_indices = @transform_0, window_bounds = array<i64: 1, 8, 128>}, {transform_indices = @transform_1, window_bounds = array<i64: 1, 2, 8, 64>}, {pipeline_mode = #tpu.pipeline_mode<synchronous>, transform_indices = @transform_2, window_bounds = array<i64: 128, 128>}, {pipeline_mode = #tpu.pipeline_mode<synchronous>, transform_indices = @transform_3, window_bounds = array<i64: 1, 128>}, {pipeline_mode = #tpu.pipeline_mode<synchronous>, transform_indices = @transform_4, window_bounds = array<i64: 1, 128>}, {pipeline_mode = #tpu.pipeline_mode<synchronous>, transform_indices = @transform_5, window_bounds = array<i64: 1, 128>}, {transform_indices = @transform_6, window_bounds = array<i64: 128, 256>}, {transform_indices = @transform_7, window_bounds = array<i64: 1, 256>}, {transform_indices = @transform_8, window_bounds = array<i64: 256, 128>}, {pipeline_mode = #tpu.pipeline_mode<synchronous>, transform_indices = @transform_9, window_bounds = array<i64: 1, 128>}, {pipeline_mode = #tpu.pipeline_mode<synchronous>, transform_indices = @transform_10, window_bounds = array<i64: 1, 128>}, {pipeline_mode = #tpu.pipeline_mode<synchronous>, transform_indices = @transform_11, window_bounds = array<i64: 1, 128>}, {transform_indices = @transform_12, window_bounds = array<i64: 1, 8, 128>}]} {
    %c0_i32 = arith.constant 0 : i32
    %0 = arith.cmpi eq, %arg2, %c0_i32 : i32
    %1 = arith.extui %0 : i1 to i32
    %c0_i32_0 = arith.constant 0 : i32
    %2 = arith.cmpi ne, %1, %c0_i32_0 : i32
    scf.if %2 {
      %c0_18 = arith.constant 0 : index
      %c0_19 = arith.constant 0 : index
      %c0_20 = arith.constant 0 : index
      %c0_21 = arith.constant 0 : index
      %31 = vector.load %arg4[%c0_18, %c0_19, %c0_20, %c0_21] : memref<1x2x8x64xbf16, #tpu.memory_space<vmem>>, vector<1x2x8x64xbf16>
      %32 = vector.shape_cast %31 : vector<1x2x8x64xbf16> to vector<2x8x64xbf16>
      %33 = vector.extract_strided_slice %32 {offsets = [0, 0, 0], sizes = [1, 8, 64], strides = [1, 1, 1]} : vector<2x8x64xbf16> to vector<1x8x64xbf16>
      %34 = vector.shape_cast %33 : vector<1x8x64xbf16> to vector<8x64xbf16>
      %35 = vector.extract_strided_slice %32 {offsets = [1, 0, 0], sizes = [1, 8, 64], strides = [1, 1, 1]} : vector<2x8x64xbf16> to vector<1x8x64xbf16>
      %36 = vector.shape_cast %35 : vector<1x8x64xbf16> to vector<8x64xbf16>
      %37 = tpu.concatenate %34, %36 in 1 : vector<8x64xbf16>, vector<8x64xbf16> -> vector<8x128xbf16>
      %c0_22 = arith.constant 0 : index
      %c0_23 = arith.constant 0 : index
      %c0_24 = arith.constant 0 : index
      %38 = vector.load %arg3[%c0_22, %c0_23, %c0_24] : memref<1x8x128xf32, #tpu.memory_space<vmem>>, vector<1x8x128xf32>
      %39 = vector.shape_cast %38 : vector<1x8x128xf32> to vector<8x128xf32>
      %c0_25 = arith.constant 0 : index
      %c0_26 = arith.constant 0 : index
      %40 = vector.load %arg5[%c0_25, %c0_26] : memref<128x128xbf16, #tpu.memory_space<vmem>>, vector<128x128xbf16>
      %cst_27 = arith.constant dense<0.000000e+00> : vector<8x128xf32>
      %41 = tpu.matmul %37, %40, %cst_27 {dimension_numbers = #tpu.dot_dimension_numbers<[1], [0], [0], [1], [0, 0, 1, 1], [], []>} : vector<8x128xbf16>, vector<128x128xbf16>, vector<8x128xf32> -> vector<8x128xf32>
      %42 = arith.addf %39, %41 : vector<8x128xf32>
      %c0_28 = arith.constant 0 : index
      %c0_29 = arith.constant 0 : index
      %43 = vector.load %arg6[%c0_28, %c0_29] : memref<1x128xf32, #tpu.memory_space<vmem>>, vector<1x128xf32>
      %44 = vector.broadcast %43 : vector<1x128xf32> to vector<8x128xf32>
      %45 = arith.addf %42, %44 : vector<8x128xf32>
      %c0_30 = arith.constant 0 : index
      %c0_31 = arith.constant 0 : index
      %46 = vector.load %arg7[%c0_30, %c0_31] : memref<1x128xf32, #tpu.memory_space<vmem>>, vector<1x128xf32>
      %c0_32 = arith.constant 0 : index
      %c0_33 = arith.constant 0 : index
      %47 = vector.load %arg8[%c0_32, %c0_33] : memref<1x128xf32, #tpu.memory_space<vmem>>, vector<1x128xf32>
      %cst_34 = arith.constant dense<0.000000e+00> : vector<8xf32>
      %48 = vector.multi_reduction <add>, %45, %cst_34 [1] : vector<8x128xf32> to vector<8xf32>
      %49 = vector.shape_cast %48 : vector<8xf32> to vector<8x1xf32>
      %cst_35 = arith.constant 1.280000e+02 : f32
      %50 = vector.broadcast %cst_35 : f32 to vector<8x1xf32>
      %51 = arith.divf %49, %50 : vector<8x1xf32>
      %52 = vector.broadcast %51 : vector<8x1xf32> to vector<8x128xf32>
      %53 = arith.subf %45, %52 : vector<8x128xf32>
      %54 = arith.mulf %53, %53 : vector<8x128xf32>
      %cst_36 = arith.constant dense<0.000000e+00> : vector<8xf32>
      %55 = vector.multi_reduction <add>, %54, %cst_36 [1] : vector<8x128xf32> to vector<8xf32>
      %56 = vector.shape_cast %55 : vector<8xf32> to vector<8x1xf32>
      %cst_37 = arith.constant 1.280000e+02 : f32
      %57 = vector.broadcast %cst_37 : f32 to vector<8x1xf32>
      %58 = arith.divf %56, %57 : vector<8x1xf32>
      %59 = vector.broadcast %51 : vector<8x1xf32> to vector<8x128xf32>
      %60 = arith.subf %45, %59 : vector<8x128xf32>
      %cst_38 = arith.constant 9.99999997E-7 : f32
      %61 = vector.broadcast %cst_38 : f32 to vector<8x1xf32>
      %62 = arith.addf %58, %61 : vector<8x1xf32>
      %63 = math.rsqrt %62 : vector<8x1xf32>
      %64 = vector.broadcast %63 : vector<8x1xf32> to vector<8x128xf32>
      %65 = arith.mulf %60, %64 : vector<8x128xf32>
      %66 = vector.broadcast %46 : vector<1x128xf32> to vector<8x128xf32>
      %67 = arith.mulf %65, %66 : vector<8x128xf32>
      %68 = vector.broadcast %47 : vector<1x128xf32> to vector<8x128xf32>
      %69 = arith.addf %67, %68 : vector<8x128xf32>
      %70 = arith.truncf %69 : vector<8x128xf32> to vector<8x128xbf16>
      %c0_39 = arith.constant 0 : index
      %c0_40 = arith.constant 0 : index
      %71 = vector.load %arg16[%c0_39, %c0_40] : memref<8x128xbf16, #tpu.memory_space<vmem>>, vector<8x128xbf16>
      tpu.vector_store %arg16[%c0_39, %c0_40], %70 {strides = array<i32>} : memref<8x128xbf16, #tpu.memory_space<vmem>>, vector<8x128xbf16>,
      %c0_41 = arith.constant 0 : index
      %c0_42 = arith.constant 0 : index
      %72 = vector.load %arg12[%c0_41, %c0_42] : memref<1x128xf32, #tpu.memory_space<vmem>>, vector<1x128xf32>
      %73 = vector.broadcast %72 : vector<1x128xf32> to vector<8x128xf32>
      %74 = arith.addf %45, %73 : vector<8x128xf32>
      %c0_43 = arith.constant 0 : index
      %c0_44 = arith.constant 0 : index
      %75 = vector.load %arg17[%c0_43, %c0_44] : memref<8x128xf32, #tpu.memory_space<vmem>>, vector<8x128xf32>
      tpu.vector_store %arg17[%c0_43, %c0_44], %74 {strides = array<i32>} : memref<8x128xf32, #tpu.memory_space<vmem>>, vector<8x128xf32>,
    } else {
    }
    %c0 = arith.constant 0 : index
    %c0_1 = arith.constant 0 : index
    %3 = vector.load %arg16[%c0, %c0_1] : memref<8x128xbf16, #tpu.memory_space<vmem>>, vector<8x128xbf16>
    %c0_2 = arith.constant 0 : index
    %c0_3 = arith.constant 0 : index
    %4 = vector.load %arg9[%c0_2, %c0_3] : memref<128x256xbf16, #tpu.memory_space<vmem>>, vector<128x256xbf16>
    %cst = arith.constant dense<0.000000e+00> : vector<8x256xf32>
    %5 = tpu.matmul %3, %4, %cst {dimension_numbers = #tpu.dot_dimension_numbers<[1], [0], [0], [1], [0, 0, 1, 1], [], []>} : vector<8x128xbf16>, vector<128x256xbf16>, vector<8x256xf32> -> vector<8x256xf32>
    %c0_4 = arith.constant 0 : index
    %c0_5 = arith.constant 0 : index
    %6 = vector.load %arg10[%c0_4, %c0_5] : memref<1x256xf32, #tpu.memory_space<vmem>>, vector<1x256xf32>
    %7 = vector.broadcast %6 : vector<1x256xf32> to vector<8x256xf32>
    %8 = arith.addf %5, %7 : vector<8x256xf32>
    %9 = arith.mulf %8, %8 : vector<8x256xf32>
    %10 = arith.mulf %8, %9 : vector<8x256xf32>
    %cst_6 = arith.constant 4.471500e-02 : f32
    %11 = vector.broadcast %cst_6 : f32 to vector<8x256xf32>
    %12 = arith.mulf %11, %10 : vector<8x256xf32>
    %13 = arith.addf %8, %12 : vector<8x256xf32>
    %cst_7 = arith.constant 0.797884583 : f32
    %14 = vector.broadcast %cst_7 : f32 to vector<8x256xf32>
    %15 = arith.mulf %14, %13 : vector<8x256xf32>
    %16 = math.tanh %15 : vector<8x256xf32>
    %cst_8 = arith.constant 1.000000e+00 : f32
    %17 = vector.broadcast %cst_8 : f32 to vector<8x256xf32>
    %18 = arith.addf %17, %16 : vector<8x256xf32>
    %cst_9 = arith.constant 5.000000e-01 : f32
    %19 = vector.broadcast %cst_9 : f32 to vector<8x256xf32>
    %20 = arith.mulf %19, %18 : vector<8x256xf32>
    %21 = arith.mulf %8, %20 : vector<8x256xf32>
    %c0_10 = arith.constant 0 : index
    %c0_11 = arith.constant 0 : index
    %22 = vector.load %arg17[%c0_10, %c0_11] : memref<8x128xf32, #tpu.memory_space<vmem>>, vector<8x128xf32>
    %23 = arith.truncf %21 : vector<8x256xf32> to vector<8x256xbf16>
    %c0_12 = arith.constant 0 : index
    %c0_13 = arith.constant 0 : index
    %24 = vector.load %arg11[%c0_12, %c0_13] : memref<256x128xbf16, #tpu.memory_space<vmem>>, vector<256x128xbf16>
    %cst_14 = arith.constant dense<0.000000e+00> : vector<8x128xf32>
    %25 = tpu.matmul %23, %24, %cst_14 {dimension_numbers = #tpu.dot_dimension_numbers<[1], [0], [0], [1], [0, 0, 1, 1], [], []>} : vector<8x256xbf16>, vector<256x128xbf16>, vector<8x128xf32> -> vector<8x128xf32>
    %26 = arith.addf %22, %25 : vector<8x128xf32>
    %c0_15 = arith.constant 0 : index
    %c0_16 = arith.constant 0 : index
    %27 = vector.load %arg17[%c0_15, %c0_16] : memref<8x128xf32, #tpu.memory_space<vmem>>, vector<8x128xf32>
    tpu.vector_store %arg17[%c0_15, %c0_16], %26 {strides = array<i32>} : memref<8x128xf32, #tpu.memory_space<vmem>>, vector<8x128xf32>,
    %c1_i32 = arith.constant 1 : i32
    %28 = arith.cmpi eq, %arg2, %c1_i32 : i32
    %29 = arith.extui %28 : i1 to i32
    %c0_i32_17 = arith.constant 0 : i32
    %30 = arith.cmpi ne, %29, %c0_i32_17 : i32
    scf.if %30 {
      %c0_18 = arith.constant 0 : index
      %c0_19 = arith.constant 0 : index
      %31 = vector.load %arg17[%c0_18, %c0_19] : memref<8x128xf32, #tpu.memory_space<vmem>>, vector<8x128xf32>
      %c0_20 = arith.constant 0 : index
      %c0_21 = arith.constant 0 : index
      %c0_22 = arith.constant 0 : index
      %32 = vector.load %arg15[%c0_20, %c0_21, %c0_22] : memref<1x8x128xf32, #tpu.memory_space<vmem>>, vector<1x8x128xf32>
      %33 = vector.shape_cast %32 : vector<1x8x128xf32> to vector<8x128xf32>
      %34 = vector.shape_cast %31 : vector<8x128xf32> to vector<1x8x128xf32>
      tpu.vector_store %arg15[%c0_20, %c0_21, %c0_22], %34 {strides = array<i32>} : memref<1x8x128xf32, #tpu.memory_space<vmem>>, vector<1x8x128xf32>,
    } else {
    }
    return
  }
  func.func @transform_0(%arg0: i32, %arg1: i32, %arg2: i32) -> (i32, i32, i32) {
    %c0_i32 = arith.constant 0 : i32
    %c0_i32_0 = arith.constant 0 : i32
    return %arg0, %arg1, %c0_i32 : i32, i32, i32
  }
  func.func @transform_1(%arg0: i32, %arg1: i32, %arg2: i32) -> (i32, i32, i32, i32) {
    %c0_i32 = arith.constant 0 : i32
    %c0_i32_0 = arith.constant 0 : i32
    %c0_i32_1 = arith.constant 0 : i32
    return %arg0, %c0_i32, %arg1, %c0_i32_0 : i32, i32, i32, i32
  }
  func.func @transform_2(%arg0: i32, %arg1: i32, %arg2: i32) -> (i32, i32) {
    %c0_i32 = arith.constant 0 : i32
    %c0_i32_0 = arith.constant 0 : i32
    %c0_i32_1 = arith.constant 0 : i32
    return %c0_i32, %c0_i32_0 : i32, i32
  }
  func.func @transform_3(%arg0: i32, %arg1: i32, %arg2: i32) -> (i32, i32) {
    %c0_i32 = arith.constant 0 : i32
    %c0_i32_0 = arith.constant 0 : i32
    %c0_i32_1 = arith.constant 0 : i32
    return %c0_i32, %c0_i32_0 : i32, i32
  }
  func.func @transform_4(%arg0: i32, %arg1: i32, %arg2: i32) -> (i32, i32) {
    %c0_i32 = arith.constant 0 : i32
    %c0_i32_0 = arith.constant 0 : i32
    %c0_i32_1 = arith.constant 0 : i32
    return %c0_i32, %c0_i32_0 : i32, i32
  }
  func.func @transform_5(%arg0: i32, %arg1: i32, %arg2: i32) -> (i32, i32) {
    %c0_i32 = arith.constant 0 : i32
    %c0_i32_0 = arith.constant 0 : i32
    %c0_i32_1 = arith.constant 0 : i32
    return %c0_i32, %c0_i32_0 : i32, i32
  }
  func.func @transform_6(%arg0: i32, %arg1: i32, %arg2: i32) -> (i32, i32) {
    %c0_i32 = arith.constant 0 : i32
    %c0_i32_0 = arith.constant 0 : i32
    return %c0_i32, %arg2 : i32, i32
  }
  func.func @transform_7(%arg0: i32, %arg1: i32, %arg2: i32) -> (i32, i32) {
    %c0_i32 = arith.constant 0 : i32
    %c0_i32_0 = arith.constant 0 : i32
    return %c0_i32, %arg2 : i32, i32
  }
  func.func @transform_8(%arg0: i32, %arg1: i32, %arg2: i32) -> (i32, i32) {
    %c0_i32 = arith.constant 0 : i32
    %c0_i32_0 = arith.constant 0 : i32
    return %arg2, %c0_i32 : i32, i32
  }
  func.func @transform_9(%arg0: i32, %arg1: i32, %arg2: i32) -> (i32, i32) {
    %c0_i32 = arith.constant 0 : i32
    %c0_i32_0 = arith.constant 0 : i32
    %c0_i32_1 = arith.constant 0 : i32
    return %c0_i32, %c0_i32_0 : i32, i32
  }
  func.func @transform_10(%arg0: i32, %arg1: i32, %arg2: i32) -> (i32, i32) {
    %c0_i32 = arith.constant 0 : i32
    %c0_i32_0 = arith.constant 0 : i32
    %c0_i32_1 = arith.constant 0 : i32
    return %c0_i32, %c0_i32_0 : i32, i32
  }
  func.func @transform_11(%arg0: i32, %arg1: i32, %arg2: i32) -> (i32, i32) {
    %c0_i32 = arith.constant 0 : i32
    %c0_i32_0 = arith.constant 0 : i32
    %c0_i32_1 = arith.constant 0 : i32
    return %c0_i32, %c0_i32_0 : i32, i32
  }
  func.func @transform_12(%arg0: i32, %arg1: i32, %arg2: i32) -> (i32, i32, i32) {
    %c0_i32 = arith.constant 0 : i32
    %c0_i32_0 = arith.constant 0 : i32
    return %arg0, %arg1, %c0_i32 : i32, i32, i32
  }
}

module attributes {stable_mosaic.version = 11 : i64} {
  func.func @_ln_qkv_kernel(%arg0: i32, %arg1: i32, %arg2: memref<1x8x128xf32, #tpu.memory_space<vmem>>, %arg3: memref<1x128xf32, #tpu.memory_space<vmem>>, %arg4: memref<1x128xf32, #tpu.memory_space<vmem>>, %arg5: memref<128x128xbf16, #tpu.memory_space<vmem>>, %arg6: memref<128x128xbf16, #tpu.memory_space<vmem>>, %arg7: memref<128x128xbf16, #tpu.memory_space<vmem>>, %arg8: memref<1x128xf32, #tpu.memory_space<vmem>>, %arg9: memref<1x128xf32, #tpu.memory_space<vmem>>, %arg10: memref<1x128xf32, #tpu.memory_space<vmem>>, %arg11: memref<1x2x8x64xbf16, #tpu.memory_space<vmem>>, %arg12: memref<1x2x8x64xbf16, #tpu.memory_space<vmem>>, %arg13: memref<1x2x8x64xbf16, #tpu.memory_space<vmem>>) attributes {dimension_semantics = [#tpu.dimension_semantics<parallel>, #tpu.dimension_semantics<parallel>], iteration_bounds = array<i64: 2, 3>, scalar_prefetch = 0 : i64, scratch_operands = 0 : i64, tpu.core_type = #tpu.core_type<tc>, window_params = [{transform_indices = @transform_0, window_bounds = array<i64: 1, 8, 128>}, {pipeline_mode = #tpu.pipeline_mode<synchronous>, transform_indices = @transform_1, window_bounds = array<i64: 1, 128>}, {pipeline_mode = #tpu.pipeline_mode<synchronous>, transform_indices = @transform_2, window_bounds = array<i64: 1, 128>}, {pipeline_mode = #tpu.pipeline_mode<synchronous>, transform_indices = @transform_3, window_bounds = array<i64: 128, 128>}, {pipeline_mode = #tpu.pipeline_mode<synchronous>, transform_indices = @transform_4, window_bounds = array<i64: 128, 128>}, {pipeline_mode = #tpu.pipeline_mode<synchronous>, transform_indices = @transform_5, window_bounds = array<i64: 128, 128>}, {pipeline_mode = #tpu.pipeline_mode<synchronous>, transform_indices = @transform_6, window_bounds = array<i64: 1, 128>}, {pipeline_mode = #tpu.pipeline_mode<synchronous>, transform_indices = @transform_7, window_bounds = array<i64: 1, 128>}, {pipeline_mode = #tpu.pipeline_mode<synchronous>, transform_indices = @transform_8, window_bounds = array<i64: 1, 128>}, {transform_indices = @transform_9, window_bounds = array<i64: 1, 2, 8, 64>}, {transform_indices = @transform_10, window_bounds = array<i64: 1, 2, 8, 64>}, {transform_indices = @transform_11, window_bounds = array<i64: 1, 2, 8, 64>}]} {
    %c0 = arith.constant 0 : index
    %c0_0 = arith.constant 0 : index
    %c0_1 = arith.constant 0 : index
    %0 = vector.load %arg2[%c0, %c0_0, %c0_1] : memref<1x8x128xf32, #tpu.memory_space<vmem>>, vector<1x8x128xf32>
    %1 = vector.shape_cast %0 : vector<1x8x128xf32> to vector<8x128xf32>
    %c0_2 = arith.constant 0 : index
    %c0_3 = arith.constant 0 : index
    %2 = vector.load %arg3[%c0_2, %c0_3] : memref<1x128xf32, #tpu.memory_space<vmem>>, vector<1x128xf32>
    %c0_4 = arith.constant 0 : index
    %c0_5 = arith.constant 0 : index
    %3 = vector.load %arg4[%c0_4, %c0_5] : memref<1x128xf32, #tpu.memory_space<vmem>>, vector<1x128xf32>
    %cst = arith.constant dense<0.000000e+00> : vector<8xf32>
    %4 = vector.multi_reduction <add>, %1, %cst [1] : vector<8x128xf32> to vector<8xf32>
    %5 = vector.shape_cast %4 : vector<8xf32> to vector<8x1xf32>
    %cst_6 = arith.constant 1.280000e+02 : f32
    %6 = vector.broadcast %cst_6 : f32 to vector<8x1xf32>
    %7 = arith.divf %5, %6 : vector<8x1xf32>
    %8 = vector.broadcast %7 : vector<8x1xf32> to vector<8x128xf32>
    %9 = arith.subf %1, %8 : vector<8x128xf32>
    %10 = arith.mulf %9, %9 : vector<8x128xf32>
    %cst_7 = arith.constant dense<0.000000e+00> : vector<8xf32>
    %11 = vector.multi_reduction <add>, %10, %cst_7 [1] : vector<8x128xf32> to vector<8xf32>
    %12 = vector.shape_cast %11 : vector<8xf32> to vector<8x1xf32>
    %cst_8 = arith.constant 1.280000e+02 : f32
    %13 = vector.broadcast %cst_8 : f32 to vector<8x1xf32>
    %14 = arith.divf %12, %13 : vector<8x1xf32>
    %15 = vector.broadcast %7 : vector<8x1xf32> to vector<8x128xf32>
    %16 = arith.subf %1, %15 : vector<8x128xf32>
    %cst_9 = arith.constant 9.99999997E-7 : f32
    %17 = vector.broadcast %cst_9 : f32 to vector<8x1xf32>
    %18 = arith.addf %14, %17 : vector<8x1xf32>
    %19 = math.rsqrt %18 : vector<8x1xf32>
    %20 = vector.broadcast %19 : vector<8x1xf32> to vector<8x128xf32>
    %21 = arith.mulf %16, %20 : vector<8x128xf32>
    %22 = vector.broadcast %2 : vector<1x128xf32> to vector<8x128xf32>
    %23 = arith.mulf %21, %22 : vector<8x128xf32>
    %24 = vector.broadcast %3 : vector<1x128xf32> to vector<8x128xf32>
    %25 = arith.addf %23, %24 : vector<8x128xf32>
    %26 = arith.truncf %25 : vector<8x128xf32> to vector<8x128xbf16>
    %c0_10 = arith.constant 0 : index
    %c0_11 = arith.constant 0 : index
    %27 = vector.load %arg5[%c0_10, %c0_11] : memref<128x128xbf16, #tpu.memory_space<vmem>>, vector<128x128xbf16>
    %cst_12 = arith.constant dense<0.000000e+00> : vector<8x128xf32>
    %28 = tpu.matmul %26, %27, %cst_12 {dimension_numbers = #tpu.dot_dimension_numbers<[1], [0], [0], [1], [0, 0, 1, 1], [], []>} : vector<8x128xbf16>, vector<128x128xbf16>, vector<8x128xf32> -> vector<8x128xf32>
    %c0_13 = arith.constant 0 : index
    %c0_14 = arith.constant 0 : index
    %29 = vector.load %arg8[%c0_13, %c0_14] : memref<1x128xf32, #tpu.memory_space<vmem>>, vector<1x128xf32>
    %30 = vector.broadcast %29 : vector<1x128xf32> to vector<8x128xf32>
    %31 = arith.addf %28, %30 : vector<8x128xf32>
    %c0_15 = arith.constant 0 : index
    %c0_16 = arith.constant 0 : index
    %32 = vector.load %arg6[%c0_15, %c0_16] : memref<128x128xbf16, #tpu.memory_space<vmem>>, vector<128x128xbf16>
    %cst_17 = arith.constant dense<0.000000e+00> : vector<8x128xf32>
    %33 = tpu.matmul %26, %32, %cst_17 {dimension_numbers = #tpu.dot_dimension_numbers<[1], [0], [0], [1], [0, 0, 1, 1], [], []>} : vector<8x128xbf16>, vector<128x128xbf16>, vector<8x128xf32> -> vector<8x128xf32>
    %c0_18 = arith.constant 0 : index
    %c0_19 = arith.constant 0 : index
    %34 = vector.load %arg9[%c0_18, %c0_19] : memref<1x128xf32, #tpu.memory_space<vmem>>, vector<1x128xf32>
    %35 = vector.broadcast %34 : vector<1x128xf32> to vector<8x128xf32>
    %36 = arith.addf %33, %35 : vector<8x128xf32>
    %c0_20 = arith.constant 0 : index
    %c0_21 = arith.constant 0 : index
    %37 = vector.load %arg7[%c0_20, %c0_21] : memref<128x128xbf16, #tpu.memory_space<vmem>>, vector<128x128xbf16>
    %cst_22 = arith.constant dense<0.000000e+00> : vector<8x128xf32>
    %38 = tpu.matmul %26, %37, %cst_22 {dimension_numbers = #tpu.dot_dimension_numbers<[1], [0], [0], [1], [0, 0, 1, 1], [], []>} : vector<8x128xbf16>, vector<128x128xbf16>, vector<8x128xf32> -> vector<8x128xf32>
    %c0_23 = arith.constant 0 : index
    %c0_24 = arith.constant 0 : index
    %39 = vector.load %arg10[%c0_23, %c0_24] : memref<1x128xf32, #tpu.memory_space<vmem>>, vector<1x128xf32>
    %40 = vector.broadcast %39 : vector<1x128xf32> to vector<8x128xf32>
    %41 = arith.addf %38, %40 : vector<8x128xf32>
    %42 = vector.extract_strided_slice %31 {offsets = [0, 0], sizes = [8, 64], strides = [1, 1]} : vector<8x128xf32> to vector<8x64xf32>
    %43 = arith.truncf %42 : vector<8x64xf32> to vector<8x64xbf16>
    %c0_25 = arith.constant 0 : index
    %c0_26 = arith.constant 0 : index
    %c0_27 = arith.constant 0 : index
    %c0_28 = arith.constant 0 : index
    %44 = vector.load %arg11[%c0_25, %c0_26, %c0_27, %c0_28] : memref<1x2x8x64xbf16, #tpu.memory_space<vmem>>, vector<1x1x8x64xbf16>
    %45 = vector.shape_cast %44 : vector<1x1x8x64xbf16> to vector<8x64xbf16>
    %46 = vector.shape_cast %43 : vector<8x64xbf16> to vector<1x1x8x64xbf16>
    tpu.vector_store %arg11[%c0_25, %c0_26, %c0_27, %c0_28], %46 {strides = array<i32>} : memref<1x2x8x64xbf16, #tpu.memory_space<vmem>>, vector<1x1x8x64xbf16>,
    %47 = vector.extract_strided_slice %36 {offsets = [0, 0], sizes = [8, 64], strides = [1, 1]} : vector<8x128xf32> to vector<8x64xf32>
    %48 = arith.truncf %47 : vector<8x64xf32> to vector<8x64xbf16>
    %c0_29 = arith.constant 0 : index
    %c0_30 = arith.constant 0 : index
    %c0_31 = arith.constant 0 : index
    %c0_32 = arith.constant 0 : index
    %49 = vector.load %arg12[%c0_29, %c0_30, %c0_31, %c0_32] : memref<1x2x8x64xbf16, #tpu.memory_space<vmem>>, vector<1x1x8x64xbf16>
    %50 = vector.shape_cast %49 : vector<1x1x8x64xbf16> to vector<8x64xbf16>
    %51 = vector.shape_cast %48 : vector<8x64xbf16> to vector<1x1x8x64xbf16>
    tpu.vector_store %arg12[%c0_29, %c0_30, %c0_31, %c0_32], %51 {strides = array<i32>} : memref<1x2x8x64xbf16, #tpu.memory_space<vmem>>, vector<1x1x8x64xbf16>,
    %52 = vector.extract_strided_slice %41 {offsets = [0, 0], sizes = [8, 64], strides = [1, 1]} : vector<8x128xf32> to vector<8x64xf32>
    %53 = arith.truncf %52 : vector<8x64xf32> to vector<8x64xbf16>
    %c0_33 = arith.constant 0 : index
    %c0_34 = arith.constant 0 : index
    %c0_35 = arith.constant 0 : index
    %c0_36 = arith.constant 0 : index
    %54 = vector.load %arg13[%c0_33, %c0_34, %c0_35, %c0_36] : memref<1x2x8x64xbf16, #tpu.memory_space<vmem>>, vector<1x1x8x64xbf16>
    %55 = vector.shape_cast %54 : vector<1x1x8x64xbf16> to vector<8x64xbf16>
    %56 = vector.shape_cast %53 : vector<8x64xbf16> to vector<1x1x8x64xbf16>
    tpu.vector_store %arg13[%c0_33, %c0_34, %c0_35, %c0_36], %56 {strides = array<i32>} : memref<1x2x8x64xbf16, #tpu.memory_space<vmem>>, vector<1x1x8x64xbf16>,
    %57 = vector.extract_strided_slice %31 {offsets = [0, 64], sizes = [8, 64], strides = [1, 1]} : vector<8x128xf32> to vector<8x64xf32>
    %58 = arith.truncf %57 : vector<8x64xf32> to vector<8x64xbf16>
    %c0_37 = arith.constant 0 : index
    %c1 = arith.constant 1 : index
    %c0_38 = arith.constant 0 : index
    %c0_39 = arith.constant 0 : index
    %59 = vector.load %arg11[%c0_37, %c1, %c0_38, %c0_39] : memref<1x2x8x64xbf16, #tpu.memory_space<vmem>>, vector<1x1x8x64xbf16>
    %60 = vector.shape_cast %59 : vector<1x1x8x64xbf16> to vector<8x64xbf16>
    %61 = vector.shape_cast %58 : vector<8x64xbf16> to vector<1x1x8x64xbf16>
    tpu.vector_store %arg11[%c0_37, %c1, %c0_38, %c0_39], %61 {strides = array<i32>} : memref<1x2x8x64xbf16, #tpu.memory_space<vmem>>, vector<1x1x8x64xbf16>,
    %62 = vector.extract_strided_slice %36 {offsets = [0, 64], sizes = [8, 64], strides = [1, 1]} : vector<8x128xf32> to vector<8x64xf32>
    %63 = arith.truncf %62 : vector<8x64xf32> to vector<8x64xbf16>
    %c0_40 = arith.constant 0 : index
    %c1_41 = arith.constant 1 : index
    %c0_42 = arith.constant 0 : index
    %c0_43 = arith.constant 0 : index
    %64 = vector.load %arg12[%c0_40, %c1_41, %c0_42, %c0_43] : memref<1x2x8x64xbf16, #tpu.memory_space<vmem>>, vector<1x1x8x64xbf16>
    %65 = vector.shape_cast %64 : vector<1x1x8x64xbf16> to vector<8x64xbf16>
    %66 = vector.shape_cast %63 : vector<8x64xbf16> to vector<1x1x8x64xbf16>
    tpu.vector_store %arg12[%c0_40, %c1_41, %c0_42, %c0_43], %66 {strides = array<i32>} : memref<1x2x8x64xbf16, #tpu.memory_space<vmem>>, vector<1x1x8x64xbf16>,
    %67 = vector.extract_strided_slice %41 {offsets = [0, 64], sizes = [8, 64], strides = [1, 1]} : vector<8x128xf32> to vector<8x64xf32>
    %68 = arith.truncf %67 : vector<8x64xf32> to vector<8x64xbf16>
    %c0_44 = arith.constant 0 : index
    %c1_45 = arith.constant 1 : index
    %c0_46 = arith.constant 0 : index
    %c0_47 = arith.constant 0 : index
    %69 = vector.load %arg13[%c0_44, %c1_45, %c0_46, %c0_47] : memref<1x2x8x64xbf16, #tpu.memory_space<vmem>>, vector<1x1x8x64xbf16>
    %70 = vector.shape_cast %69 : vector<1x1x8x64xbf16> to vector<8x64xbf16>
    %71 = vector.shape_cast %68 : vector<8x64xbf16> to vector<1x1x8x64xbf16>
    tpu.vector_store %arg13[%c0_44, %c1_45, %c0_46, %c0_47], %71 {strides = array<i32>} : memref<1x2x8x64xbf16, #tpu.memory_space<vmem>>, vector<1x1x8x64xbf16>,
    return
  }
  func.func @transform_0(%arg0: i32, %arg1: i32) -> (i32, i32, i32) {
    %c0_i32 = arith.constant 0 : i32
    %c0_i32_0 = arith.constant 0 : i32
    return %arg0, %arg1, %c0_i32 : i32, i32, i32
  }
  func.func @transform_1(%arg0: i32, %arg1: i32) -> (i32, i32) {
    %c0_i32 = arith.constant 0 : i32
    %c0_i32_0 = arith.constant 0 : i32
    %c0_i32_1 = arith.constant 0 : i32
    return %c0_i32, %c0_i32_0 : i32, i32
  }
  func.func @transform_2(%arg0: i32, %arg1: i32) -> (i32, i32) {
    %c0_i32 = arith.constant 0 : i32
    %c0_i32_0 = arith.constant 0 : i32
    %c0_i32_1 = arith.constant 0 : i32
    return %c0_i32, %c0_i32_0 : i32, i32
  }
  func.func @transform_3(%arg0: i32, %arg1: i32) -> (i32, i32) {
    %c0_i32 = arith.constant 0 : i32
    %c0_i32_0 = arith.constant 0 : i32
    %c0_i32_1 = arith.constant 0 : i32
    return %c0_i32, %c0_i32_0 : i32, i32
  }
  func.func @transform_4(%arg0: i32, %arg1: i32) -> (i32, i32) {
    %c0_i32 = arith.constant 0 : i32
    %c0_i32_0 = arith.constant 0 : i32
    %c0_i32_1 = arith.constant 0 : i32
    return %c0_i32, %c0_i32_0 : i32, i32
  }
  func.func @transform_5(%arg0: i32, %arg1: i32) -> (i32, i32) {
    %c0_i32 = arith.constant 0 : i32
    %c0_i32_0 = arith.constant 0 : i32
    %c0_i32_1 = arith.constant 0 : i32
    return %c0_i32, %c0_i32_0 : i32, i32
  }
  func.func @transform_6(%arg0: i32, %arg1: i32) -> (i32, i32) {
    %c0_i32 = arith.constant 0 : i32
    %c0_i32_0 = arith.constant 0 : i32
    %c0_i32_1 = arith.constant 0 : i32
    return %c0_i32, %c0_i32_0 : i32, i32
  }
  func.func @transform_7(%arg0: i32, %arg1: i32) -> (i32, i32) {
    %c0_i32 = arith.constant 0 : i32
    %c0_i32_0 = arith.constant 0 : i32
    %c0_i32_1 = arith.constant 0 : i32
    return %c0_i32, %c0_i32_0 : i32, i32
  }
  func.func @transform_8(%arg0: i32, %arg1: i32) -> (i32, i32) {
    %c0_i32 = arith.constant 0 : i32
    %c0_i32_0 = arith.constant 0 : i32
    %c0_i32_1 = arith.constant 0 : i32
    return %c0_i32, %c0_i32_0 : i32, i32
  }
  func.func @transform_9(%arg0: i32, %arg1: i32) -> (i32, i32, i32, i32) {
    %c0_i32 = arith.constant 0 : i32
    %c0_i32_0 = arith.constant 0 : i32
    %c0_i32_1 = arith.constant 0 : i32
    return %arg0, %c0_i32, %arg1, %c0_i32_0 : i32, i32, i32, i32
  }
  func.func @transform_10(%arg0: i32, %arg1: i32) -> (i32, i32, i32, i32) {
    %c0_i32 = arith.constant 0 : i32
    %c0_i32_0 = arith.constant 0 : i32
    %c0_i32_1 = arith.constant 0 : i32
    return %arg0, %c0_i32, %arg1, %c0_i32_0 : i32, i32, i32, i32
  }
  func.func @transform_11(%arg0: i32, %arg1: i32) -> (i32, i32, i32, i32) {
    %c0_i32 = arith.constant 0 : i32
    %c0_i32_0 = arith.constant 0 : i32
    %c0_i32_1 = arith.constant 0 : i32
    return %arg0, %c0_i32, %arg1, %c0_i32_0 : i32, i32, i32, i32
  }
}

module attributes {stable_mosaic.version = 11 : i64} {
  func.func @_attn_kernel(%arg0: i32, %arg1: i32, %arg2: i32, %arg3: memref<1x1x8x64xbf16, #tpu.memory_space<vmem>>, %arg4: memref<1x1x24x64xbf16, #tpu.memory_space<vmem>>, %arg5: memref<1x1x24x64xbf16, #tpu.memory_space<vmem>>, %arg6: memref<1x24xf32, #tpu.memory_space<vmem>>, %arg7: memref<1x1x8x64xbf16, #tpu.memory_space<vmem>>) attributes {dimension_semantics = [#tpu.dimension_semantics<parallel>, #tpu.dimension_semantics<parallel>, #tpu.dimension_semantics<parallel>], iteration_bounds = array<i64: 2, 2, 3>, scalar_prefetch = 0 : i64, scratch_operands = 0 : i64, tpu.core_type = #tpu.core_type<tc>, window_params = [{transform_indices = @transform_0, window_bounds = array<i64: 1, 1, 8, 64>}, {transform_indices = @transform_1, window_bounds = array<i64: 1, 1, 24, 64>}, {transform_indices = @transform_2, window_bounds = array<i64: 1, 1, 24, 64>}, {pipeline_mode = #tpu.pipeline_mode<synchronous>, transform_indices = @transform_3, window_bounds = array<i64: 1, 24>}, {transform_indices = @transform_4, window_bounds = array<i64: 1, 1, 8, 64>}]} {
    %c0 = arith.constant 0 : index
    %c0_0 = arith.constant 0 : index
    %c0_1 = arith.constant 0 : index
    %c0_2 = arith.constant 0 : index
    %0 = vector.load %arg3[%c0, %c0_0, %c0_1, %c0_2] : memref<1x1x8x64xbf16, #tpu.memory_space<vmem>>, vector<1x1x8x64xbf16>
    %1 = vector.shape_cast %0 : vector<1x1x8x64xbf16> to vector<8x64xbf16>
    %c0_3 = arith.constant 0 : index
    %c0_4 = arith.constant 0 : index
    %c0_5 = arith.constant 0 : index
    %c0_6 = arith.constant 0 : index
    %2 = vector.load %arg4[%c0_3, %c0_4, %c0_5, %c0_6] : memref<1x1x24x64xbf16, #tpu.memory_space<vmem>>, vector<1x1x24x64xbf16>
    %3 = vector.shape_cast %2 : vector<1x1x24x64xbf16> to vector<24x64xbf16>
    %c0_7 = arith.constant 0 : index
    %c0_8 = arith.constant 0 : index
    %c0_9 = arith.constant 0 : index
    %c0_10 = arith.constant 0 : index
    %4 = vector.load %arg5[%c0_7, %c0_8, %c0_9, %c0_10] : memref<1x1x24x64xbf16, #tpu.memory_space<vmem>>, vector<1x1x24x64xbf16>
    %5 = vector.shape_cast %4 : vector<1x1x24x64xbf16> to vector<24x64xbf16>
    %cst = arith.constant dense<0.000000e+00> : vector<8x24xf32>
    %6 = tpu.matmul %1, %3, %cst {dimension_numbers = #tpu.dot_dimension_numbers<[1], [1], [0], [0], [0, 0, 1, 0], [], []>} : vector<8x64xbf16>, vector<24x64xbf16>, vector<8x24xf32> -> vector<8x24xf32>
    %c0_11 = arith.constant 0 : index
    %c0_12 = arith.constant 0 : index
    %7 = vector.load %arg6[%c0_11, %c0_12] : memref<1x24xf32, #tpu.memory_space<vmem>>, vector<1x24xf32>
    %8 = vector.broadcast %7 : vector<1x24xf32> to vector<8x24xf32>
    %9 = arith.addf %6, %8 : vector<8x24xf32>
    %cst_13 = arith.constant dense<0xFF800000> : vector<8xf32>
    %10 = vector.multi_reduction <maximumf>, %9, %cst_13 [1] : vector<8x24xf32> to vector<8xf32>
    %11 = vector.shape_cast %10 : vector<8xf32> to vector<8x1xf32>
    %12 = vector.broadcast %11 : vector<8x1xf32> to vector<8x24xf32>
    %13 = arith.subf %9, %12 : vector<8x24xf32>
    %14 = math.exp %13 : vector<8x24xf32>
    %cst_14 = arith.constant dense<0.000000e+00> : vector<8xf32>
    %15 = vector.multi_reduction <add>, %14, %cst_14 [1] : vector<8x24xf32> to vector<8xf32>
    %16 = vector.shape_cast %15 : vector<8xf32> to vector<8x1xf32>
    %17 = arith.truncf %14 : vector<8x24xf32> to vector<8x24xbf16>
    %cst_15 = arith.constant dense<0.000000e+00> : vector<8x64xf32>
    %18 = tpu.matmul %17, %5, %cst_15 {dimension_numbers = #tpu.dot_dimension_numbers<[1], [0], [0], [1], [0, 0, 1, 1], [], []>} : vector<8x24xbf16>, vector<24x64xbf16>, vector<8x64xf32> -> vector<8x64xf32>
    %cst_16 = arith.constant 1.000000e+00 : f32
    %19 = vector.broadcast %cst_16 : f32 to vector<8x1xf32>
    %20 = arith.divf %19, %16 : vector<8x1xf32>
    %21 = vector.broadcast %20 : vector<8x1xf32> to vector<8x64xf32>
    %22 = arith.mulf %18, %21 : vector<8x64xf32>
    %23 = arith.truncf %22 : vector<8x64xf32> to vector<8x64xbf16>
    %c0_17 = arith.constant 0 : index
    %c0_18 = arith.constant 0 : index
    %c0_19 = arith.constant 0 : index
    %c0_20 = arith.constant 0 : index
    %24 = vector.load %arg7[%c0_17, %c0_18, %c0_19, %c0_20] : memref<1x1x8x64xbf16, #tpu.memory_space<vmem>>, vector<1x1x8x64xbf16>
    %25 = vector.shape_cast %24 : vector<1x1x8x64xbf16> to vector<8x64xbf16>
    %26 = vector.shape_cast %23 : vector<8x64xbf16> to vector<1x1x8x64xbf16>
    tpu.vector_store %arg7[%c0_17, %c0_18, %c0_19, %c0_20], %26 {strides = array<i32>} : memref<1x1x8x64xbf16, #tpu.memory_space<vmem>>, vector<1x1x8x64xbf16>,
    return
  }
  func.func @transform_0(%arg0: i32, %arg1: i32, %arg2: i32) -> (i32, i32, i32, i32) {
    %c0_i32 = arith.constant 0 : i32
    %c0_i32_0 = arith.constant 0 : i32
    return %arg0, %arg1, %arg2, %c0_i32 : i32, i32, i32, i32
  }
  func.func @transform_1(%arg0: i32, %arg1: i32, %arg2: i32) -> (i32, i32, i32, i32) {
    %c0_i32 = arith.constant 0 : i32
    %c0_i32_0 = arith.constant 0 : i32
    %c0_i32_1 = arith.constant 0 : i32
    return %arg0, %arg1, %c0_i32, %c0_i32_0 : i32, i32, i32, i32
  }
  func.func @transform_2(%arg0: i32, %arg1: i32, %arg2: i32) -> (i32, i32, i32, i32) {
    %c0_i32 = arith.constant 0 : i32
    %c0_i32_0 = arith.constant 0 : i32
    %c0_i32_1 = arith.constant 0 : i32
    return %arg0, %arg1, %c0_i32, %c0_i32_0 : i32, i32, i32, i32
  }
  func.func @transform_3(%arg0: i32, %arg1: i32, %arg2: i32) -> (i32, i32) {
    %c0_i32 = arith.constant 0 : i32
    %c0_i32_0 = arith.constant 0 : i32
    %c0_i32_1 = arith.constant 0 : i32
    return %c0_i32, %c0_i32_0 : i32, i32
  }
  func.func @transform_4(%arg0: i32, %arg1: i32, %arg2: i32) -> (i32, i32, i32, i32) {
    %c0_i32 = arith.constant 0 : i32
    %c0_i32_0 = arith.constant 0 : i32
    return %arg0, %arg1, %arg2, %c0_i32 : i32, i32, i32, i32
  }
}

module attributes {stable_mosaic.version = 11 : i64} {
  func.func @_patch_embed_kernel(%arg0: i32, %arg1: i32, %arg2: memref<1x8x48xbf16, #tpu.memory_space<vmem>>, %arg3: memref<48x128xbf16, #tpu.memory_space<vmem>>, %arg4: memref<8x128xf32, #tpu.memory_space<vmem>>, %arg5: memref<1x8x128xf32, #tpu.memory_space<vmem>>) attributes {dimension_semantics = [#tpu.dimension_semantics<parallel>, #tpu.dimension_semantics<parallel>], iteration_bounds = array<i64: 2, 3>, scalar_prefetch = 0 : i64, scratch_operands = 0 : i64, tpu.core_type = #tpu.core_type<tc>, window_params = [{transform_indices = @transform_0, window_bounds = array<i64: 1, 8, 48>}, {pipeline_mode = #tpu.pipeline_mode<synchronous>, transform_indices = @transform_1, window_bounds = array<i64: 48, 128>}, {transform_indices = @transform_2, window_bounds = array<i64: 8, 128>}, {transform_indices = @transform_3, window_bounds = array<i64: 1, 8, 128>}]} {
    %c0 = arith.constant 0 : index
    %c0_0 = arith.constant 0 : index
    %c0_1 = arith.constant 0 : index
    %0 = vector.load %arg2[%c0, %c0_0, %c0_1] : memref<1x8x48xbf16, #tpu.memory_space<vmem>>, vector<1x8x48xbf16>
    %1 = vector.shape_cast %0 : vector<1x8x48xbf16> to vector<8x48xbf16>
    %c0_2 = arith.constant 0 : index
    %c0_3 = arith.constant 0 : index
    %2 = vector.load %arg3[%c0_2, %c0_3] : memref<48x128xbf16, #tpu.memory_space<vmem>>, vector<48x128xbf16>
    %cst = arith.constant dense<0.000000e+00> : vector<8x128xf32>
    %3 = tpu.matmul %1, %2, %cst {dimension_numbers = #tpu.dot_dimension_numbers<[1], [0], [0], [1], [0, 0, 1, 1], [], []>} : vector<8x48xbf16>, vector<48x128xbf16>, vector<8x128xf32> -> vector<8x128xf32>
    %c0_4 = arith.constant 0 : index
    %c0_5 = arith.constant 0 : index
    %4 = vector.load %arg4[%c0_4, %c0_5] : memref<8x128xf32, #tpu.memory_space<vmem>>, vector<8x128xf32>
    %5 = arith.addf %3, %4 : vector<8x128xf32>
    %c0_6 = arith.constant 0 : index
    %c0_7 = arith.constant 0 : index
    %c0_8 = arith.constant 0 : index
    %6 = vector.load %arg5[%c0_6, %c0_7, %c0_8] : memref<1x8x128xf32, #tpu.memory_space<vmem>>, vector<1x8x128xf32>
    %7 = vector.shape_cast %6 : vector<1x8x128xf32> to vector<8x128xf32>
    %8 = vector.shape_cast %5 : vector<8x128xf32> to vector<1x8x128xf32>
    tpu.vector_store %arg5[%c0_6, %c0_7, %c0_8], %8 {strides = array<i32>} : memref<1x8x128xf32, #tpu.memory_space<vmem>>, vector<1x8x128xf32>,
    return
  }
  func.func @transform_0(%arg0: i32, %arg1: i32) -> (i32, i32, i32) {
    %c0_i32 = arith.constant 0 : i32
    %c0_i32_0 = arith.constant 0 : i32
    return %arg0, %arg1, %c0_i32 : i32, i32, i32
  }
  func.func @transform_1(%arg0: i32, %arg1: i32) -> (i32, i32) {
    %c0_i32 = arith.constant 0 : i32
    %c0_i32_0 = arith.constant 0 : i32
    %c0_i32_1 = arith.constant 0 : i32
    return %c0_i32, %c0_i32_0 : i32, i32
  }
  func.func @transform_2(%arg0: i32, %arg1: i32) -> (i32, i32) {
    %c0_i32 = arith.constant 0 : i32
    %c0_i32_0 = arith.constant 0 : i32
    return %arg1, %c0_i32 : i32, i32
  }
  func.func @transform_3(%arg0: i32, %arg1: i32) -> (i32, i32, i32) {
    %c0_i32 = arith.constant 0 : i32
    %c0_i32_0 = arith.constant 0 : i32
    return %arg0, %arg1, %c0_i32 : i32, i32, i32
  }
}

module attributes {stable_mosaic.version = 11 : i64} {
  func.func @_attnproj_mlp_kernel(%arg0: i32, %arg1: i32, %arg2: i32, %arg3: memref<1x8x128xf32, #tpu.memory_space<vmem>>, %arg4: memref<1x2x8x64xbf16, #tpu.memory_space<vmem>>, %arg5: memref<128x128xbf16, #tpu.memory_space<vmem>>, %arg6: memref<1x128xf32, #tpu.memory_space<vmem>>, %arg7: memref<1x128xf32, #tpu.memory_space<vmem>>, %arg8: memref<1x128xf32, #tpu.memory_space<vmem>>, %arg9: memref<128x256xbf16, #tpu.memory_space<vmem>>, %arg10: memref<1x256xf32, #tpu.memory_space<vmem>>, %arg11: memref<256x128xbf16, #tpu.memory_space<vmem>>, %arg12: memref<1x128xf32, #tpu.memory_space<vmem>>, %arg13: memref<1x128xf32, #tpu.memory_space<vmem>>, %arg14: memref<1x128xf32, #tpu.memory_space<vmem>>, %arg15: memref<1x8x128xf32, #tpu.memory_space<vmem>>, %arg16: memref<8x128xbf16, #tpu.memory_space<vmem>>, %arg17: memref<8x128xf32, #tpu.memory_space<vmem>>) attributes {dimension_semantics = [#tpu.dimension_semantics<parallel>, #tpu.dimension_semantics<parallel>, #tpu.dimension_semantics<arbitrary>], iteration_bounds = array<i64: 2, 3, 2>, scalar_prefetch = 0 : i64, scratch_operands = 2 : i64, tpu.core_type = #tpu.core_type<tc>, window_params = [{transform_indices = @transform_0, window_bounds = array<i64: 1, 8, 128>}, {transform_indices = @transform_1, window_bounds = array<i64: 1, 2, 8, 64>}, {pipeline_mode = #tpu.pipeline_mode<synchronous>, transform_indices = @transform_2, window_bounds = array<i64: 128, 128>}, {pipeline_mode = #tpu.pipeline_mode<synchronous>, transform_indices = @transform_3, window_bounds = array<i64: 1, 128>}, {pipeline_mode = #tpu.pipeline_mode<synchronous>, transform_indices = @transform_4, window_bounds = array<i64: 1, 128>}, {pipeline_mode = #tpu.pipeline_mode<synchronous>, transform_indices = @transform_5, window_bounds = array<i64: 1, 128>}, {transform_indices = @transform_6, window_bounds = array<i64: 128, 256>}, {transform_indices = @transform_7, window_bounds = array<i64: 1, 256>}, {transform_indices = @transform_8, window_bounds = array<i64: 256, 128>}, {pipeline_mode = #tpu.pipeline_mode<synchronous>, transform_indices = @transform_9, window_bounds = array<i64: 1, 128>}, {pipeline_mode = #tpu.pipeline_mode<synchronous>, transform_indices = @transform_10, window_bounds = array<i64: 1, 128>}, {pipeline_mode = #tpu.pipeline_mode<synchronous>, transform_indices = @transform_11, window_bounds = array<i64: 1, 128>}, {transform_indices = @transform_12, window_bounds = array<i64: 1, 8, 128>}]} {
    %c0_i32 = arith.constant 0 : i32
    %0 = arith.cmpi eq, %arg2, %c0_i32 : i32
    %1 = arith.extui %0 : i1 to i32
    %c0_i32_0 = arith.constant 0 : i32
    %2 = arith.cmpi ne, %1, %c0_i32_0 : i32
    scf.if %2 {
      %c0_18 = arith.constant 0 : index
      %c0_19 = arith.constant 0 : index
      %c0_20 = arith.constant 0 : index
      %c0_21 = arith.constant 0 : index
      %31 = vector.load %arg4[%c0_18, %c0_19, %c0_20, %c0_21] : memref<1x2x8x64xbf16, #tpu.memory_space<vmem>>, vector<1x2x8x64xbf16>
      %32 = vector.shape_cast %31 : vector<1x2x8x64xbf16> to vector<2x8x64xbf16>
      %33 = vector.extract_strided_slice %32 {offsets = [0, 0, 0], sizes = [1, 8, 64], strides = [1, 1, 1]} : vector<2x8x64xbf16> to vector<1x8x64xbf16>
      %34 = vector.shape_cast %33 : vector<1x8x64xbf16> to vector<8x64xbf16>
      %35 = vector.extract_strided_slice %32 {offsets = [1, 0, 0], sizes = [1, 8, 64], strides = [1, 1, 1]} : vector<2x8x64xbf16> to vector<1x8x64xbf16>
      %36 = vector.shape_cast %35 : vector<1x8x64xbf16> to vector<8x64xbf16>
      %37 = tpu.concatenate %34, %36 in 1 : vector<8x64xbf16>, vector<8x64xbf16> -> vector<8x128xbf16>
      %c0_22 = arith.constant 0 : index
      %c0_23 = arith.constant 0 : index
      %c0_24 = arith.constant 0 : index
      %38 = vector.load %arg3[%c0_22, %c0_23, %c0_24] : memref<1x8x128xf32, #tpu.memory_space<vmem>>, vector<1x8x128xf32>
      %39 = vector.shape_cast %38 : vector<1x8x128xf32> to vector<8x128xf32>
      %c0_25 = arith.constant 0 : index
      %c0_26 = arith.constant 0 : index
      %40 = vector.load %arg5[%c0_25, %c0_26] : memref<128x128xbf16, #tpu.memory_space<vmem>>, vector<128x128xbf16>
      %cst_27 = arith.constant dense<0.000000e+00> : vector<8x128xf32>
      %41 = tpu.matmul %37, %40, %cst_27 {dimension_numbers = #tpu.dot_dimension_numbers<[1], [0], [0], [1], [0, 0, 1, 1], [], []>} : vector<8x128xbf16>, vector<128x128xbf16>, vector<8x128xf32> -> vector<8x128xf32>
      %42 = arith.addf %39, %41 : vector<8x128xf32>
      %c0_28 = arith.constant 0 : index
      %c0_29 = arith.constant 0 : index
      %43 = vector.load %arg6[%c0_28, %c0_29] : memref<1x128xf32, #tpu.memory_space<vmem>>, vector<1x128xf32>
      %44 = vector.broadcast %43 : vector<1x128xf32> to vector<8x128xf32>
      %45 = arith.addf %42, %44 : vector<8x128xf32>
      %c0_30 = arith.constant 0 : index
      %c0_31 = arith.constant 0 : index
      %46 = vector.load %arg7[%c0_30, %c0_31] : memref<1x128xf32, #tpu.memory_space<vmem>>, vector<1x128xf32>
      %c0_32 = arith.constant 0 : index
      %c0_33 = arith.constant 0 : index
      %47 = vector.load %arg8[%c0_32, %c0_33] : memref<1x128xf32, #tpu.memory_space<vmem>>, vector<1x128xf32>
      %cst_34 = arith.constant dense<0.000000e+00> : vector<8xf32>
      %48 = vector.multi_reduction <add>, %45, %cst_34 [1] : vector<8x128xf32> to vector<8xf32>
      %49 = vector.shape_cast %48 : vector<8xf32> to vector<8x1xf32>
      %cst_35 = arith.constant 1.280000e+02 : f32
      %50 = vector.broadcast %cst_35 : f32 to vector<8x1xf32>
      %51 = arith.divf %49, %50 : vector<8x1xf32>
      %52 = vector.broadcast %51 : vector<8x1xf32> to vector<8x128xf32>
      %53 = arith.subf %45, %52 : vector<8x128xf32>
      %54 = arith.mulf %53, %53 : vector<8x128xf32>
      %cst_36 = arith.constant dense<0.000000e+00> : vector<8xf32>
      %55 = vector.multi_reduction <add>, %54, %cst_36 [1] : vector<8x128xf32> to vector<8xf32>
      %56 = vector.shape_cast %55 : vector<8xf32> to vector<8x1xf32>
      %cst_37 = arith.constant 1.280000e+02 : f32
      %57 = vector.broadcast %cst_37 : f32 to vector<8x1xf32>
      %58 = arith.divf %56, %57 : vector<8x1xf32>
      %59 = vector.broadcast %51 : vector<8x1xf32> to vector<8x128xf32>
      %60 = arith.subf %45, %59 : vector<8x128xf32>
      %cst_38 = arith.constant 9.99999997E-7 : f32
      %61 = vector.broadcast %cst_38 : f32 to vector<8x1xf32>
      %62 = arith.addf %58, %61 : vector<8x1xf32>
      %63 = math.rsqrt %62 : vector<8x1xf32>
      %64 = vector.broadcast %63 : vector<8x1xf32> to vector<8x128xf32>
      %65 = arith.mulf %60, %64 : vector<8x128xf32>
      %66 = vector.broadcast %46 : vector<1x128xf32> to vector<8x128xf32>
      %67 = arith.mulf %65, %66 : vector<8x128xf32>
      %68 = vector.broadcast %47 : vector<1x128xf32> to vector<8x128xf32>
      %69 = arith.addf %67, %68 : vector<8x128xf32>
      %70 = arith.truncf %69 : vector<8x128xf32> to vector<8x128xbf16>
      %c0_39 = arith.constant 0 : index
      %c0_40 = arith.constant 0 : index
      %71 = vector.load %arg16[%c0_39, %c0_40] : memref<8x128xbf16, #tpu.memory_space<vmem>>, vector<8x128xbf16>
      tpu.vector_store %arg16[%c0_39, %c0_40], %70 {strides = array<i32>} : memref<8x128xbf16, #tpu.memory_space<vmem>>, vector<8x128xbf16>,
      %c0_41 = arith.constant 0 : index
      %c0_42 = arith.constant 0 : index
      %72 = vector.load %arg12[%c0_41, %c0_42] : memref<1x128xf32, #tpu.memory_space<vmem>>, vector<1x128xf32>
      %73 = vector.broadcast %72 : vector<1x128xf32> to vector<8x128xf32>
      %74 = arith.addf %45, %73 : vector<8x128xf32>
      %c0_43 = arith.constant 0 : index
      %c0_44 = arith.constant 0 : index
      %75 = vector.load %arg17[%c0_43, %c0_44] : memref<8x128xf32, #tpu.memory_space<vmem>>, vector<8x128xf32>
      tpu.vector_store %arg17[%c0_43, %c0_44], %74 {strides = array<i32>} : memref<8x128xf32, #tpu.memory_space<vmem>>, vector<8x128xf32>,
    } else {
    }
    %c0 = arith.constant 0 : index
    %c0_1 = arith.constant 0 : index
    %3 = vector.load %arg16[%c0, %c0_1] : memref<8x128xbf16, #tpu.memory_space<vmem>>, vector<8x128xbf16>
    %c0_2 = arith.constant 0 : index
    %c0_3 = arith.constant 0 : index
    %4 = vector.load %arg9[%c0_2, %c0_3] : memref<128x256xbf16, #tpu.memory_space<vmem>>, vector<128x256xbf16>
    %cst = arith.constant dense<0.000000e+00> : vector<8x256xf32>
    %5 = tpu.matmul %3, %4, %cst {dimension_numbers = #tpu.dot_dimension_numbers<[1], [0], [0], [1], [0, 0, 1, 1], [], []>} : vector<8x128xbf16>, vector<128x256xbf16>, vector<8x256xf32> -> vector<8x256xf32>
    %c0_4 = arith.constant 0 : index
    %c0_5 = arith.constant 0 : index
    %6 = vector.load %arg10[%c0_4, %c0_5] : memref<1x256xf32, #tpu.memory_space<vmem>>, vector<1x256xf32>
    %7 = vector.broadcast %6 : vector<1x256xf32> to vector<8x256xf32>
    %8 = arith.addf %5, %7 : vector<8x256xf32>
    %9 = arith.mulf %8, %8 : vector<8x256xf32>
    %10 = arith.mulf %8, %9 : vector<8x256xf32>
    %cst_6 = arith.constant 4.471500e-02 : f32
    %11 = vector.broadcast %cst_6 : f32 to vector<8x256xf32>
    %12 = arith.mulf %11, %10 : vector<8x256xf32>
    %13 = arith.addf %8, %12 : vector<8x256xf32>
    %cst_7 = arith.constant 0.797884583 : f32
    %14 = vector.broadcast %cst_7 : f32 to vector<8x256xf32>
    %15 = arith.mulf %14, %13 : vector<8x256xf32>
    %16 = math.tanh %15 : vector<8x256xf32>
    %cst_8 = arith.constant 1.000000e+00 : f32
    %17 = vector.broadcast %cst_8 : f32 to vector<8x256xf32>
    %18 = arith.addf %17, %16 : vector<8x256xf32>
    %cst_9 = arith.constant 5.000000e-01 : f32
    %19 = vector.broadcast %cst_9 : f32 to vector<8x256xf32>
    %20 = arith.mulf %19, %18 : vector<8x256xf32>
    %21 = arith.mulf %8, %20 : vector<8x256xf32>
    %c0_10 = arith.constant 0 : index
    %c0_11 = arith.constant 0 : index
    %22 = vector.load %arg17[%c0_10, %c0_11] : memref<8x128xf32, #tpu.memory_space<vmem>>, vector<8x128xf32>
    %23 = arith.truncf %21 : vector<8x256xf32> to vector<8x256xbf16>
    %c0_12 = arith.constant 0 : index
    %c0_13 = arith.constant 0 : index
    %24 = vector.load %arg11[%c0_12, %c0_13] : memref<256x128xbf16, #tpu.memory_space<vmem>>, vector<256x128xbf16>
    %cst_14 = arith.constant dense<0.000000e+00> : vector<8x128xf32>
    %25 = tpu.matmul %23, %24, %cst_14 {dimension_numbers = #tpu.dot_dimension_numbers<[1], [0], [0], [1], [0, 0, 1, 1], [], []>} : vector<8x256xbf16>, vector<256x128xbf16>, vector<8x128xf32> -> vector<8x128xf32>
    %26 = arith.addf %22, %25 : vector<8x128xf32>
    %c0_15 = arith.constant 0 : index
    %c0_16 = arith.constant 0 : index
    %27 = vector.load %arg17[%c0_15, %c0_16] : memref<8x128xf32, #tpu.memory_space<vmem>>, vector<8x128xf32>
    tpu.vector_store %arg17[%c0_15, %c0_16], %26 {strides = array<i32>} : memref<8x128xf32, #tpu.memory_space<vmem>>, vector<8x128xf32>,
    %c1_i32 = arith.constant 1 : i32
    %28 = arith.cmpi eq, %arg2, %c1_i32 : i32
    %29 = arith.extui %28 : i1 to i32
    %c0_i32_17 = arith.constant 0 : i32
    %30 = arith.cmpi ne, %29, %c0_i32_17 : i32
    scf.if %30 {
      %c0_18 = arith.constant 0 : index
      %c0_19 = arith.constant 0 : index
      %31 = vector.load %arg17[%c0_18, %c0_19] : memref<8x128xf32, #tpu.memory_space<vmem>>, vector<8x128xf32>
      %c0_20 = arith.constant 0 : index
      %c0_21 = arith.constant 0 : index
      %32 = vector.load %arg13[%c0_20, %c0_21] : memref<1x128xf32, #tpu.memory_space<vmem>>, vector<1x128xf32>
      %c0_22 = arith.constant 0 : index
      %c0_23 = arith.constant 0 : index
      %33 = vector.load %arg14[%c0_22, %c0_23] : memref<1x128xf32, #tpu.memory_space<vmem>>, vector<1x128xf32>
      %cst_24 = arith.constant dense<0.000000e+00> : vector<8xf32>
      %34 = vector.multi_reduction <add>, %31, %cst_24 [1] : vector<8x128xf32> to vector<8xf32>
      %35 = vector.shape_cast %34 : vector<8xf32> to vector<8x1xf32>
      %cst_25 = arith.constant 1.280000e+02 : f32
      %36 = vector.broadcast %cst_25 : f32 to vector<8x1xf32>
      %37 = arith.divf %35, %36 : vector<8x1xf32>
      %38 = vector.broadcast %37 : vector<8x1xf32> to vector<8x128xf32>
      %39 = arith.subf %31, %38 : vector<8x128xf32>
      %40 = arith.mulf %39, %39 : vector<8x128xf32>
      %cst_26 = arith.constant dense<0.000000e+00> : vector<8xf32>
      %41 = vector.multi_reduction <add>, %40, %cst_26 [1] : vector<8x128xf32> to vector<8xf32>
      %42 = vector.shape_cast %41 : vector<8xf32> to vector<8x1xf32>
      %cst_27 = arith.constant 1.280000e+02 : f32
      %43 = vector.broadcast %cst_27 : f32 to vector<8x1xf32>
      %44 = arith.divf %42, %43 : vector<8x1xf32>
      %45 = vector.broadcast %37 : vector<8x1xf32> to vector<8x128xf32>
      %46 = arith.subf %31, %45 : vector<8x128xf32>
      %cst_28 = arith.constant 9.99999997E-7 : f32
      %47 = vector.broadcast %cst_28 : f32 to vector<8x1xf32>
      %48 = arith.addf %44, %47 : vector<8x1xf32>
      %49 = math.rsqrt %48 : vector<8x1xf32>
      %50 = vector.broadcast %49 : vector<8x1xf32> to vector<8x128xf32>
      %51 = arith.mulf %46, %50 : vector<8x128xf32>
      %52 = vector.broadcast %32 : vector<1x128xf32> to vector<8x128xf32>
      %53 = arith.mulf %51, %52 : vector<8x128xf32>
      %54 = vector.broadcast %33 : vector<1x128xf32> to vector<8x128xf32>
      %55 = arith.addf %53, %54 : vector<8x128xf32>
      %c0_29 = arith.constant 0 : index
      %c0_30 = arith.constant 0 : index
      %c0_31 = arith.constant 0 : index
      %56 = vector.load %arg15[%c0_29, %c0_30, %c0_31] : memref<1x8x128xf32, #tpu.memory_space<vmem>>, vector<1x8x128xf32>
      %57 = vector.shape_cast %56 : vector<1x8x128xf32> to vector<8x128xf32>
      %58 = vector.shape_cast %55 : vector<8x128xf32> to vector<1x8x128xf32>
      tpu.vector_store %arg15[%c0_29, %c0_30, %c0_31], %58 {strides = array<i32>} : memref<1x8x128xf32, #tpu.memory_space<vmem>>, vector<1x8x128xf32>,
    } else {
    }
    return
  }
  func.func @transform_0(%arg0: i32, %arg1: i32, %arg2: i32) -> (i32, i32, i32) {
    %c0_i32 = arith.constant 0 : i32
    %c0_i32_0 = arith.constant 0 : i32
    return %arg0, %arg1, %c0_i32 : i32, i32, i32
  }
  func.func @transform_1(%arg0: i32, %arg1: i32, %arg2: i32) -> (i32, i32, i32, i32) {
    %c0_i32 = arith.constant 0 : i32
    %c0_i32_0 = arith.constant 0 : i32
    %c0_i32_1 = arith.constant 0 : i32
    return %arg0, %c0_i32, %arg1, %c0_i32_0 : i32, i32, i32, i32
  }
  func.func @transform_2(%arg0: i32, %arg1: i32, %arg2: i32) -> (i32, i32) {
    %c0_i32 = arith.constant 0 : i32
    %c0_i32_0 = arith.constant 0 : i32
    %c0_i32_1 = arith.constant 0 : i32
    return %c0_i32, %c0_i32_0 : i32, i32
  }
  func.func @transform_3(%arg0: i32, %arg1: i32, %arg2: i32) -> (i32, i32) {
    %c0_i32 = arith.constant 0 : i32
    %c0_i32_0 = arith.constant 0 : i32
    %c0_i32_1 = arith.constant 0 : i32
    return %c0_i32, %c0_i32_0 : i32, i32
  }
  func.func @transform_4(%arg0: i32, %arg1: i32, %arg2: i32) -> (i32, i32) {
    %c0_i32 = arith.constant 0 : i32
    %c0_i32_0 = arith.constant 0 : i32
    %c0_i32_1 = arith.constant 0 : i32
    return %c0_i32, %c0_i32_0 : i32, i32
  }
  func.func @transform_5(%arg0: i32, %arg1: i32, %arg2: i32) -> (i32, i32) {
    %c0_i32 = arith.constant 0 : i32
    %c0_i32_0 = arith.constant 0 : i32
    %c0_i32_1 = arith.constant 0 : i32
    return %c0_i32, %c0_i32_0 : i32, i32
  }
  func.func @transform_6(%arg0: i32, %arg1: i32, %arg2: i32) -> (i32, i32) {
    %c0_i32 = arith.constant 0 : i32
    %c0_i32_0 = arith.constant 0 : i32
    return %c0_i32, %arg2 : i32, i32
  }
  func.func @transform_7(%arg0: i32, %arg1: i32, %arg2: i32) -> (i32, i32) {
    %c0_i32 = arith.constant 0 : i32
    %c0_i32_0 = arith.constant 0 : i32
    return %c0_i32, %arg2 : i32, i32
  }
  func.func @transform_8(%arg0: i32, %arg1: i32, %arg2: i32) -> (i32, i32) {
    %c0_i32 = arith.constant 0 : i32
    %c0_i32_0 = arith.constant 0 : i32
    return %arg2, %c0_i32 : i32, i32
  }
  func.func @transform_9(%arg0: i32, %arg1: i32, %arg2: i32) -> (i32, i32) {
    %c0_i32 = arith.constant 0 : i32
    %c0_i32_0 = arith.constant 0 : i32
    %c0_i32_1 = arith.constant 0 : i32
    return %c0_i32, %c0_i32_0 : i32, i32
  }
  func.func @transform_10(%arg0: i32, %arg1: i32, %arg2: i32) -> (i32, i32) {
    %c0_i32 = arith.constant 0 : i32
    %c0_i32_0 = arith.constant 0 : i32
    %c0_i32_1 = arith.constant 0 : i32
    return %c0_i32, %c0_i32_0 : i32, i32
  }
  func.func @transform_11(%arg0: i32, %arg1: i32, %arg2: i32) -> (i32, i32) {
    %c0_i32 = arith.constant 0 : i32
    %c0_i32_0 = arith.constant 0 : i32
    %c0_i32_1 = arith.constant 0 : i32
    return %c0_i32, %c0_i32_0 : i32, i32
  }
  func.func @transform_12(%arg0: i32, %arg1: i32, %arg2: i32) -> (i32, i32, i32) {
    %c0_i32 = arith.constant 0 : i32
    %c0_i32_0 = arith.constant 0 : i32
    return %arg0, %arg1, %c0_i32 : i32, i32, i32
  }
}

</mosaic_0001>

<bundles_post_ra>
// kernel: _lambda_.9
= control target key start
LH: loop header
LB: loop body
LE: loop exit
PB: predicated region body
PF: predicated region fallthrough
CT: control target
= control target key end

     0   :  { %s821_s15 = smov 0   ;;  %s823_s16 = smov 0   ;;  %s917_s0 = inlined_call_operand.vmem [shape: bf16[2,2,24,64], index: 0, kind: input, shape index: {}]   ;;  %s918_s1 = inlined_call_operand.vmem [shape: bf16[2,2,24,64], index: 1, kind: input, shape index: {}]   ;;  %s919_s2 = inlined_call_operand.vmem [shape: bf16[2,2,24,64], index: 2, kind: input, shape index: {}]   ;;  %s920_s3 = inlined_call_operand.vmem [shape: f32[1,24], index: 3, kind: input, shape index: {}]   ;;  %s921_s4 = inlined_call_operand.vmem [shape: bf16[2,2,24,64], index: 4, kind: output, shape index: {}]  }
   0x1   :  { %s825_s17 = smov 0   ;;  %s827_s18 = smov 0  }
   0x2   :  { %s829_s19 = smov 0   ;;  %s831_s20 = smov 0  }
   0x3   :  { %s833_s21 = smov 0  }
   0x4 LB: > { %s26_s22 = sadd.s32 1, %s780_s18  ;;  %s29_s23 = sadd.s32 1, %s784_s19  ;;  %s792_s21 = sphi %s833_s21, %s14_s21   ;;  %s788_s20 = sphi %s831_s20, %s927_s20   ;;  %s784_s19 = sphi %s829_s19, %s926_s19   ;;  %s780_s18 = sphi %s827_s18, %s925_s18   ;;  %s776_s17 = sphi %s825_s17, %s924_s17   ;;  %s772_s16 = sphi %s823_s16, %s923_s16   ;;  %s768_s15 = sphi %s821_s15, %s922_s15  }
   0x5   : > { %p27_p0 = scmp.ge.s32.totalorder %s26_s22, 3  ;;  %p634_p1 = scmp.ge.s32.totalorder %s792_s21, 1 }
   0x6   : > { %p228_p2 = scmp.lt.s32.totalorder %s792_s21, 13  ;;  %s33_s24 = sadd.s32 1, %s788_s20 }
   0x7   : > { %s929_s22 = smov (%p27_p0, %s26_s22), 0  ;;  %s931_s23 = smov (!%p27_p0, %s29_s23), %s784_s19 }
   0x8   : > { %p229_p3 = pnand %p634_p1, %p228_p2  ;;  %p31_p4 = scmp.ge.s32.totalorder %s931_s23, 2 }
   0x9   : > { %p286_p6 = scmp.lt.s32.totalorder (!%p229_p3), %s776_s17, 1  ;;  %p288_p7 = scmp.lt.s32.totalorder (!%p229_p3), %s772_s16, 1  ;;  %v794_v0 = vmov (!%p229_p3), 0.0   ;;  %vm795_vm0 = vmmov (!%p229_p3), 0   ;;  %vm351_vm1 = vcmask (!%p229_p3), 523264   ;;  %vm401_vm2 = vcmask (!%p229_p3), 195584  }
   0xa   : > { %s933_s23 = smov (%p31_p4, %s931_s23), 0  ;;  %s935_s24 = smov (!%p31_p4, %s33_s24), %s788_s20 }
   0xb   : > { %p35_p5 = scmp.ge.s32.totalorder %s935_s24, 2  ;;  %232 = sbr.rel (%p229_p3) target bundleno = 633 (0x279), region = 36  ;;  %654 = vmatprep.subr.bf16.mxu0 (!%p229_p3), %v794_v0  ;;  %658 = vmatprep.mubr.msk.bf16.mxu0 (!%p229_p3), %vm795_vm0, %v794_v0  ;;  %v639_v6 = vld [vmem:[%s920_s3] ss:$0 sm:$0xff] (!%p229_p3)  ;;  %vm424_vm3 = vcmask (!%p229_p3), 1043456   ;;  %vm472_vm4 = vcmask (!%p229_p3), 519168  }
   0xc   : > { %p290_p8 = scmp.lt.s32.totalorder (!%p229_p3), %s768_s15, 2  ;;  %662 = vmatprep.subr.bf16.mxu1 (!%p229_p3), %v794_v0  ;;  %666 = vmatprep.mubr.msk.bf16.mxu1 (!%p229_p3), %vm795_vm0, %v794_v0 }
   0xd   : > { %s937_s24 = smov (%p35_p5, %s935_s24), 0 }
  0x12   : > { %s939_s17 = smov (!%p286_p6, %s776_s17), 1  ;;  %s941_s16 = smov (!%p288_p7, %s772_s16), 1 }
  0x13   : > { %s671_s25 = smul.u32 6, %s939_s17  ;;  %s943_s15 = smov (!%p290_p8, %s768_s15), 2 }
  0x14   : > { %s670_s26 = smul.u32 3, %s941_s16 }
  0x16   : > { %s304_s27 = sadd.s32 %s671_s25, %s670_s26  ;;  %s293_s6 = sadd.s32 %s670_s26, %s943_s15 }
  0x17   : > { %s636_s28 = sshll.u32 %s304_s27, 2  ;;  %s874_s7 = sadd.s32 %s671_s25, %s293_s6 }
  0x18   : > { %s306_s5 = scalar_lea.vmem %s918_s1, %s636_s28  ;;  %s635_s8 = sshll.u32 %s874_s7, 2 }
  0x19   : > { %v730_v1 = vld [vmem:[%s306_s5] sm:$0xff]   ;;  %v731_v3 = vld [vmem:[%s306_s5 + $0x8] ss:$0 sps:$4 sm:$0xff]   ;;  %s297_s11 = scalar_lea.vmem %s917_s0, %s635_s8  ;;  %s315_s16 = scalar_lea.vmem %s919_s2, %s636_s28 }
  0x1a   : > { %v356_v2 = vsel %vm351_vm1, %v730_v1, 0  ;;  %v359_v4 = vsel %vm351_vm1, %v731_v3, 0  ;;  %v329_v5 = vld [vmem:[%s297_s11] sm:$0xf]  ;;  %v733_v14 = vld [vmem:[%s315_s16 + $0x8] ss:$0 sps:$4 sm:$0xff]   ;;  %s327_s26 = scalar_lea.vmem %s921_s4, %s635_s8 }
  0x1b   : > { %655 = vmatpush3.bf16.xpose.msra.mxu0 %v356_v2  ;;  %v732_v13 = vld [vmem:[%s315_s16] sm:$0xff]   ;;  %v426_v15 = vsel %vm424_vm3, %v733_v14, 0 }
  0x1c   : > { %656 = vmatprep.subr.bf16.mxu0 %v794_v0  ;;  %663 = vmatpush3.bf16.msra.mxu1 %v732_v13 }
  0x1d   : > { %664 = vmatprep.subr.bf16.mxu1 %v794_v0 }
  0x20   : > { %665 = vmatpush3.bf16.msra.mxu1 %v426_v15 }
  0x23   : > { %657 = vmatpush3.bf16.xpose.msra.mxu0 %v359_v4 }
  0x2a   : > { %659 = vmatmul.mubr.msk.bf16.vlgmr.msra.gmra.mrb[0].mxu0 %vm351_vm1, %v329_v5 }
  0xfd   : > { %v395_v7 = vpop.f32.mrb[0].mxu0 }
  0xfe   : > { %v396_v8 = vadd.f32 %v639_v6, %v395_v7  ;;  %v660_v9 = vpop.f32.mrb[1].mxu0 }
  0xff   : > { %v398_v10 = vpop.f32.mrb[2].mxu0 }
 0x100   : > { %v661_v11 = vpop.f32.mrb[3].mxu0  ;;  %v402_v12 = vsel %vm401_vm2, %v396_v8, -inf }
 0x101   : > { %403 = vmax.xlane.f32.xlu0 %v402_v12 }
 0x18e   : > { %v404_v16 = vpop.xlane.xlu0 %403 }
 0x18f   : > { %v405_v17 = vsub.f32 %v396_v8, %v404_v16 }
 0x191   : > { %v406_v18 = vmul.f32 1.442695, %v405_v17 }
 0x193   : > { %734 = vpow2.f32 %v406_v18 }
 0x19d   : > { %v735_v19 = vpop.eup %734 }
 0x19e   : > { %v408_v20 = vsel %vm401_vm2, %v735_v19, 0.0  ;;  %v411_v21 = vpack.c.bf16 %v735_v19, %v735_v19 }
 0x19f   : > { %409 = vadd.xlane.f32.xlu0 %v408_v20 }
 0x1a0   : > { %667 = vmatmul.mubr.msk.bf16.vlgmr.msra.gmra.mrb[0].mxu1 %vm401_vm2, %v411_v21 }
 0x22c   : > { %v410_v22 = vpop.xlane.xlu0 %409 }
 0x22d   : > { %736 = vrcp.f32 %v410_v22 }
 0x237   : > { %v737_v23 = vpop.eup %736 }
 0x273   : > { %v462_v24 = vpop.f32.mrb[0].mxu1 }
 0x274   : > { %v470_v25 = vmul.f32 %v737_v23, %v462_v24  ;;  %v668_v26 = vpop.f32.mrb[1].mxu1 }
 0x275   : > { %v465_v27 = vpop.f32.mrb[2].mxu1 }
 0x276   : > { %v471_v28 = vpack.c.bf16 %v470_v25, %v470_v25  ;;  %v669_v29 = vpop.f32.mrb[3].mxu1 }
 0x278   : > { %473 = vst.msk [vmem:[%s327_s26] sm:$0xf] %vm472_vm4, %v471_v28 }
 0x279 PF: > { %s14_s21 = sadd.s32 1, %s792_s21   ;;  %s922_s15 = smov %s780_s18 }
 0x27a   : > { %p11_p9 = scmp.ge.s32.totalorder %s14_s21, 14   ;;  %s923_s16 = smov %s784_s19 }
 0x27b   : > { %s924_s17 = smov %s788_s20  ;;  %s925_s18 = smov %s929_s22 }
 0x27c   : > { %s926_s19 = smov %s933_s23  ;;  %s927_s20 = smov %s937_s24 }
 0x27d   :  { %13 = sbr.rel (!%p11_p9) target bundleno = 4 (0x4), region = 72 }

// kernel: _lambda_.7
= control target key start
LH: loop header
LB: loop body
LE: loop exit
PB: predicated region body
PF: predicated region fallthrough
CT: control target
= control target key end

     0   :  { %s525_s12 = smov 0   ;;  %s527_s13 = smov 0   ;;  %s588_s0 = inlined_call_operand.vmem [shape: bf16[2,24,48], index: 0, kind: input, shape index: {}]   ;;  %s589_s1 = inlined_call_operand.vmem [shape: bf16[48,128], index: 1, kind: input, shape index: {}]   ;;  %s590_s2 = inlined_call_operand.vmem [shape: f32[24,128], index: 2, kind: input, shape index: {}]   ;;  %s591_s3 = inlined_call_operand.vmem [shape: f32[2,24,128], index: 3, kind: output, shape index: {}]  }
   0x1   :  { %s529_s14 = smov 0   ;;  %s531_s15 = smov 0  }
   0x2   :  { %s533_s16 = smov 0  }
   0x3 LB: > { %s22_s17 = sadd.s32 1, %s493_s14  ;;  %s25_s18 = sadd.s32 1, %s497_s15  ;;  %s501_s16 = sphi %s533_s16, %s13_s16   ;;  %s497_s15 = sphi %s531_s15, %s595_s15   ;;  %s493_s14 = sphi %s529_s14, %s594_s14   ;;  %s489_s13 = sphi %s527_s13, %s593_s13   ;;  %s485_s12 = sphi %s525_s12, %s592_s12  }
   0x4   : > { %p23_p0 = scmp.ge.s32.totalorder %s22_s17, 3  ;;  %p393_p1 = scmp.ge.s32.totalorder %s501_s16, 1 }
   0x5   : > { %p165_p2 = scmp.lt.s32.totalorder %s501_s16, 7 }
   0x6   : > { %s597_s17 = smov (%p23_p0, %s22_s17), 0  ;;  %s599_s18 = smov (!%p23_p0, %s25_s18), %s497_s15 }
   0x7   : > { %p166_p3 = pnand %p393_p1, %p165_p2  ;;  %p27_p4 = scmp.ge.s32.totalorder %s599_s18, 2 }
   0x8   : > { %v460_v0 = vld [vmem:[%s589_s1] sm:$0xff] (!%p166_p3)   ;;  %v503_v1 = vmov (!%p166_p3), 0.0   ;;  %v461_v2 = vld [vmem:[%s589_s1 + $0x8] sm:$0xff] (!%p166_p3)   ;;  %vm504_vm0 = vmmov (!%p166_p3), 0   ;;  %p199_p5 = scmp.lt.s32.totalorder (!%p166_p3), %s489_s13, 1  ;;  %p201_p6 = scmp.lt.s32.totalorder (!%p166_p3), %s485_s12, 2 }
   0x9   : > { %s601_s18 = smov (%p27_p4, %s599_s18), 0  ;;  %169 = sbr.rel (%p166_p3) target bundleno = 238 (0xee), region = 32 }
   0xa   : > { %407 = vmatprep.subr.bf16.mxu0 (!%p166_p3), %v503_v1  ;;  %413 = vmatprep.mubr.msk.bf16.mxu0 (!%p166_p3), %vm504_vm0, %v503_v1  ;;  %v462_v3 = vld [vmem:[%s589_s1 + $0x10] sm:$0xff] (!%p166_p3)   ;;  %vm246_vm1 = vcmask (!%p166_p3), 392192  }
   0xb   : > { %408 = vmatpush3.bf16.msra.mxu0 (!%p166_p3), %v460_v0 }
   0xc   : > { %409 = vmatprep.subr.bf16.mxu0 (!%p166_p3), %v503_v1 }
   0xf   : > { %410 = vmatpush3.bf16.msra.mxu0 (!%p166_p3), %v461_v2 }
  0x10   : > { %s603_s13 = smov (!%p199_p5, %s489_s13), 1  ;;  %s605_s12 = smov (!%p201_p6, %s485_s12), 2  ;;  %411 = vmatprep.subr.bf16.mxu0 %v503_v1 }
  0x11   : > { %s417_s25 = smul.u32 3, %s603_s13  ;;  %s395_s4 = sshll.u32 %s605_s12, 3 }
  0x12   : > { %s210_s7 = scalar_lea.vmem %s590_s2, %s395_s4 }
  0x13   : > { %s204_s26 = sadd.s32 %s417_s25, %s605_s12  ;;  %412 = vmatpush3.bf16.msra.mxu0 %v462_v3  ;;  %v227_v5 = vld [vmem:[%s210_s7] sm:$0xff] }
  0x14   : > { %s394_s27 = sshll.u32 %s204_s26, 2  ;;  %s396_s8 = sshll.u32 %s204_s26, 3 }
  0x15   : > { %s206_s30 = scalar_lea.vmem %s588_s0, %s394_s27  ;;  %s218_s11 = scalar_lea.vmem %s591_s3, %s396_s8 }
  0x16   : > { %v220_v4 = vld [vmem:[%s206_s30] sm:$0xf] }
  0x17   : > { %414 = vmatmul.mubr.msk.bf16.vlgmr.msra.gmra.mrb[0].mxu0 %vm246_vm1, %v220_v4 }
  0xea   : > { %v284_v6 = vpop.f32.mrb[0].mxu0 }
  0xeb   : > { %v285_v7 = vadd.f32 %v284_v6, %v227_v5  ;;  %v415_v8 = vpop.f32.mrb[1].mxu0 }
  0xec   : > { %v287_v9 = vpop.f32.mrb[2].mxu0 }
  0xed   : > { %290 = vst [vmem:[%s218_s11] sm:$0xff] %v285_v7  ;;  %v416_v10 = vpop.f32.mrb[3].mxu0 }
  0xee PF: > { %s13_s16 = sadd.s32 1, %s501_s16   ;;  %s592_s12 = smov %s493_s14 }
  0xef   : > { %p10_p7 = scmp.ge.s32.totalorder %s13_s16, 8   ;;  %s593_s13 = smov %s497_s15 }
  0xf0   : > { %s594_s14 = smov %s597_s17  ;;  %s595_s15 = smov %s601_s18 }
  0xf1   :  { %12 = sbr.rel (!%p10_p7) target bundleno = 3 (0x3), region = 65 }

// kernel: _lambda_.10
= control target key start
LH: loop header
LB: loop body
LE: loop exit
PB: predicated region body
PF: predicated region fallthrough
CT: control target
= control target key end

     0   :  { %s2051_s0 = inlined_call_operand.vmem [shape: f32[2,24,128], index: 0, kind: input, shape index: {}]   ;;  %s2052_s1 = inlined_call_operand.vmem [shape: bf16[2,2,24,64], index: 1, kind: input, shape index: {}]   ;;  %s2053_s2 = inlined_call_operand.vmem [shape: bf16[128,128], index: 2, kind: input, shape index: {}]   ;;  %s2054_s3 = inlined_call_operand.vmem [shape: f32[1,128], index: 3, kind: input, shape index: {}, may-alias: {3,5,9,11}]   ;;  %s2055_s4 = inlined_call_operand.vmem [shape: f32[1,128], index: 4, kind: input, shape index: {}, may-alias: {4,10}]   ;;  %s2056_s5 = inlined_call_operand.vmem [shape: f32[1,128], index: 5, kind: input, shape index: {}, may-alias: {3,5,9,11}]   ;;  %s2057_s6 = inlined_call_operand.vmem [shape: bf16[128,512], index: 6, kind: input, shape index: {}]   ;;  %s2058_s7 = inlined_call_operand.vmem [shape: f32[1,512], index: 7, kind: input, shape index: {}]   ;;  %s2059_s8 = inlined_call_operand.vmem [shape: bf16[512,128], index: 8, kind: input, shape index: {}]   ;;  %s2060_s9 = inlined_call_operand.vmem [shape: f32[1,128], index: 9, kind: input, shape index: {}, may-alias: {3,5,9,11}]   ;;  %s2061_s10 = inlined_call_operand.vmem [shape: f32[1,128], index: 10, kind: input, shape index: {}, may-alias: {4,10}]   ;;  %s2062_s11 = inlined_call_operand.vmem [shape: f32[1,128], index: 11, kind: input, shape index: {}, may-alias: {3,5,9,11}]   ;;  %s2063_s12 = inlined_call_operand.vmem [shape: f32[2,24,128], index: 12, kind: output, shape index: {}]  }
   0x1   :  { %2068 = sst [smem:[#allocation11_spill]] %s2051_s0 }
   0x2   :  { %2069 = sst [smem:[#allocation12_spill]] %s2054_s3 }
   0x3   :  { %2070 = sst [smem:[#allocation13_spill]] %s2055_s4 }
   0x4   :  { %2071 = sst [smem:[#allocation14_spill]] %s2056_s5 }
   0x5   :  { %2072 = sst [smem:[#allocation15_spill]] %s2060_s9 }
   0x6   :  { %s1770_s21 = smov 0   ;;  %s1772_s22 = smov 0  }
   0x7   :  { %s1774_s23 = smov 0   ;;  %s1776_s24 = smov 0  }
   0x8   :  { %s1778_s25 = smov 0   ;;  %s1780_s26 = smov 0  }
   0x9   :  { %s1782_s27 = smov 0   ;;  %s1784_s10 = smov 0  }
   0xa   :  { %s1786_s11 = smov 0   ;;  %s1788_s28 = smov 0  }
   0xb   :  { %s1790_s29 = smov 0  }
   0xc LB: > { %2073 = sst [smem:[#allocation6_spill]] %s1695_s28  ;;  %s34_s30 = sadd.s32 1, %s1687_s10  ;;  %s1699_s29 = sphi %s1790_s29, %s22_s29   ;;  %s1695_s28 = sphi %s1788_s28, %s2089_s28   ;;  %s1691_s11 = sphi %s1786_s11, %s2097_s11   ;;  %s1687_s10 = sphi %s1784_s10, %s2096_s10   ;;  %s1683_s27 = sphi %s1782_s27, %s2086_s27   ;;  %s1679_s26 = sphi %s1780_s26, %s2095_s26   ;;  %s1675_s25 = sphi %s1778_s25, %s2094_s25   ;;  %s1671_s24 = sphi %s1776_s24, %s2093_s24   ;;  %s1667_s23 = sphi %s1774_s23, %s2092_s23   ;;  %s1663_s22 = sphi %s1772_s22, %s2091_s22   ;;  %s1659_s21 = sphi %s1770_s21, %s2090_s21  }
   0xd   : > { %p35_p0 = scmp.ge.s32.totalorder %s34_s30, 2  ;;  %s37_s13 = sadd.s32 1, %s1691_s11 }
   0xe   : > { %s41_s14 = sadd.s32 1, %s1695_s28  ;;  %p85_p1 = scmp.ne.s32.totalorder %s1671_s24, %s1667_s23 }
   0xf   : > { %s2099_s30 = smov (%p35_p0, %s34_s30), 0  ;;  %s2101_s13 = smov (!%p35_p0, %s37_s13), %s1691_s11 }
  0x10   : > { %2074 = sst [smem:[#allocation7_spill]] %s2099_s30  ;;  %p86_p2 = scmp.eq.s32.totalorder %s1699_s29, 0 }
  0x11   : > { %s185_s15 = ssub.s32 %s1687_s10, %s2099_s30  ;;  %p39_p3 = scmp.ge.s32.totalorder %s2101_s13, 3 }
  0x12   : > { %p186_p4 = scmp.eq.s32.totalorder %s185_s15, 0  ;;  %p1838_p5 = por %p86_p2, %p85_p1 }
  0x13   : > { %s188_s17 = sadd.s32 1, %s1663_s22  ;;  %s2103_s13 = smov (%p39_p3, %s2101_s13), 0 }
  0x14   : > { %2076 = sst [smem:[#allocation8_spill]] %s2103_s13  ;;  %s2105_s14 = smov (!%p39_p3, %s41_s14), %s1695_s28 }
  0x15   : > { %p195_p6 = scmp.ne.s32.totalorder %s1663_s22, %s1659_s21  ;;  %p43_p7 = scmp.ge.s32.totalorder %s2105_s14, 2 }
  0x16   : > { %s74_s18 = ssub.s32 %s1691_s11, %s2103_s13  ;;  %s78_s5 = sadd.s32 1, %s1671_s24 }
  0x17   : > { %s1851_s19 = scalar_select %p186_p4, %s1663_s22, %s188_s17  }
  0x18   : > { %s2107_s14 = smov (%p43_p7, %s2105_s14), 0  ;;  %p1857_p8 = por %p195_p6, %p86_p2 }
  0x19   : > { %2077 = sst [smem:[#allocation9_spill]] %s1851_s19  ;;  %s73_s15 = ssub.s32 %s1695_s28, %s2107_s14 }
  0x1a   : > { %2078 = sst [smem:[#allocation10_spill]] %s2107_s14  ;;  %s75_s30 = sor.u32 %s74_s18, %s73_s15 }
  0x1b   : > { %p76_p9 = scmp.eq.s32.totalorder %s75_s30, 0  ;;  %p1349_p10 = scmp.ge.s32.totalorder %s1699_s29, 12 }
  0x1d   : > { %s1865_s4 = scalar_select %p76_p9, %s1671_s24, %s78_s5  }
  0x1e   : > { %385 = sbr.rel (%p1349_p10) target bundleno = 57 (0x39), region = 44 }
  0x25   : > { %399 = sbr.rel (!%p1838_p5) target bundleno = 45 (0x2d), region = 52  ;;  %s401_s17 = sand.u32 (%p1838_p5), 1, %s1671_s24  }
  0x26   : > { %s1464_s13 = smul.u32 (%p1838_p5), 6, %s1695_s28  ;;  %s1350_s19 = sshll.u32 (%p1838_p5), %s401_s17, 3 }
  0x27   : > { %s403_s5 = scalar_lea.vmem (%p1838_p5), [#allocation4], %s1350_s19 }
  0x28   : > { %s405_s9 = sadd.s32 (%p1838_p5), %s1691_s11, %s1464_s13 }
  0x29   : > { %s1351_s3 = sshll.u32 (%p1838_p5), %s405_s9, 2 }
  0x2a   : > { %s407_s30 = scalar_lea.vmem (%p1838_p5), %s2052_s1, %s1351_s3 }
  0x2b   : > { %v423_v0 = vld [vmem:[%s407_s30] sm:$0xf] (%p1838_p5)  ;;  %v425_v1 = vld [vmem:[%s407_s30 + $0xc] sm:$0xf] (%p1838_p5) }
  0x2c   : > { %424 = vst [vmem:[%s403_s5] sm:$0xf] %v423_v0  ;;  %426 = vst [vmem:[%s403_s5 + $0x4] sm:$0xf] %v425_v1 }
  0x2d PF: > { %453 = sbr.rel (!%p1857_p8) target bundleno = 57 (0x39), region = 93  ;;  %s455_s16 = sand.u32 (%p1857_p8), 1, %s1663_s22  }
  0x2e   : > { %s1412_s15 = sshll.u32 (%p1857_p8), %s1687_s10, 3  ;;  %s1352_s17 = sshll.u32 (%p1857_p8), %s455_s16, 7 }
  0x2f   : > { %s1883_s28 = scalar_lea.vmem (%p1857_p8), %s2057_s6, %s1412_s15  ;;  %s457_s3 = scalar_lea.vmem (%p1857_p8), [#allocation5], %s1352_s17 }
  0x30   : > { %v518_v2 = vld [vmem:[%s1883_s28] sm:$0xff] (%p1857_p8)  ;;  %v520_v3 = vld [vmem:[%s1883_s28 + $0x10] sm:$0xff] (%p1857_p8) }
  0x31   : > { %v522_v4 = vld [vmem:[%s1883_s28 + $0x20] sm:$0xff] (%p1857_p8)  ;;  %519 = vst [vmem:[%s457_s3] sm:$0xff] (%p1857_p8), %v518_v2  ;;  %521 = vst [vmem:[%s457_s3 + $0x8] sm:$0xff] (%p1857_p8), %v520_v3  ;;  %v524_v5 = vld [vmem:[%s1883_s28 + $0x30] sm:$0xff] (%p1857_p8) }
  0x32   : > { %523 = vst [vmem:[%s457_s3 + $0x10] sm:$0xff] (%p1857_p8), %v522_v4  ;;  %v526_v6 = vld [vmem:[%s1883_s28 + $0x40] sm:$0xff] (%p1857_p8)  ;;  %v528_v7 = vld [vmem:[%s1883_s28 + $0x50] sm:$0xff] (%p1857_p8)  ;;  %525 = vst [vmem:[%s457_s3 + $0x18] sm:$0xff] (%p1857_p8), %v524_v5 }
  0x33   : > { %527 = vst [vmem:[%s457_s3 + $0x20] sm:$0xff] (%p1857_p8), %v526_v6  ;;  %529 = vst [vmem:[%s457_s3 + $0x28] sm:$0xff] (%p1857_p8), %v528_v7  ;;  %v530_v8 = vld [vmem:[%s1883_s28 + $0x60] sm:$0xff] (%p1857_p8)  ;;  %v532_v9 = vld [vmem:[%s1883_s28 + $0x70] sm:$0xff] (%p1857_p8) }
  0x34   : > { %v534_v10 = vld [vmem:[%s1883_s28 + $0x80] sm:$0xff]  ;;  %531 = vst [vmem:[%s457_s3 + $0x30] sm:$0xff] %v530_v8  ;;  %533 = vst [vmem:[%s457_s3 + $0x38] sm:$0xff] %v532_v9  ;;  %v536_v11 = vld [vmem:[%s1883_s28 + $0x90] sm:$0xff] }
  0x35   : > { %535 = vst [vmem:[%s457_s3 + $0x40] sm:$0xff] %v534_v10  ;;  %v538_v12 = vld [vmem:[%s1883_s28 + $0xa0] sm:$0xff]  ;;  %v540_v13 = vld [vmem:[%s1883_s28 + $0xb0] sm:$0xff]  ;;  %537 = vst [vmem:[%s457_s3 + $0x48] sm:$0xff] %v536_v11 }
  0x36   : > { %539 = vst [vmem:[%s457_s3 + $0x50] sm:$0xff] %v538_v12  ;;  %541 = vst [vmem:[%s457_s3 + $0x58] sm:$0xff] %v540_v13  ;;  %v542_v14 = vld [vmem:[%s1883_s28 + $0xc0] sm:$0xff]  ;;  %v544_v15 = vld [vmem:[%s1883_s28 + $0xd0] sm:$0xff] }
  0x37   : > { %v546_v16 = vld [vmem:[%s1883_s28 + $0xe0] sm:$0xff]  ;;  %543 = vst [vmem:[%s457_s3 + $0x60] sm:$0xff] %v542_v14  ;;  %545 = vst [vmem:[%s457_s3 + $0x68] sm:$0xff] %v544_v15  ;;  %v548_v17 = vld [vmem:[%s1883_s28 + $0xf0] sm:$0xff] }
  0x38   : > { %547 = vst [vmem:[%s457_s3 + $0x70] sm:$0xff] %v546_v16  ;;  %549 = vst [vmem:[%s457_s3 + $0x78] sm:$0xff] %v548_v17 }
  0x39 PF: > { %p1355_p11 = scmp.ge.s32.totalorder %s1699_s29, 1  ;;  %p571_p12 = scmp.lt.s32.totalorder %s1699_s29, 13 }
  0x3b   : > { %p572_p13 = pnand %p1355_p11, %p571_p12 }
  0x3c   : > { %s578_s14 = sand.u32 (!%p572_p13), 1, %s1667_s23   ;;  %s585_s19 = sand.u32 (!%p572_p13), 1, %s1659_s21  }
  0x3d   : > { %575 = sbr.rel (%p572_p13) target bundleno = 1226 (0x4ca), region = 139  ;;  %s1905_s28 = sshll.u32 (!%p572_p13), %s578_s14, 3 }
  0x3e   : > { %s1357_s20 = sshll.u32 (!%p572_p13), %s585_s19, 7  ;;  %p650_p0 = scmp.lt.s32.totalorder (!%p572_p13), %s1683_s27, 1 }
  0x3f   : > { %p652_p1 = scmp.lt.s32.totalorder (!%p572_p13), %s1679_s26, 2  ;;  %s1359_s18 = sshll.u32 (!%p572_p13), %s1675_s25, 1 }
  0x40   : > { %s1360_s30 = sshll.u32 (!%p572_p13), %s1675_s25, 5  ;;  %p660_p2 = scmp.lt.s32.totalorder (!%p572_p13), %s1359_s18, 3 }
  0x41   : > { %p665_p3 = scmp.lt.s32.totalorder (!%p572_p13), %s1360_s30, 63  ;;  %s2080_s0 = sld [smem:[#allocation11_spill]] (!%p572_p13) }
  0x42   : > { %s580_s13 = scalar_lea.vmem (!%p572_p13), [#allocation4], %s1905_s28  ;;  %p1363_p4 = scmp.ne.s32.totalorder (!%p572_p13), %s1675_s25, 0 }
  0x44   : > { %s2109_s27 = smov (!%p650_p0, %s1683_s27), 1  ;;  %s2111_s26 = smov (!%p652_p1, %s1679_s26), 2 }
  0x45   : > { %s1465_s5 = smul.u32 3, %s2109_s27  ;;  %s2113_s18 = smov (!%p660_p2, %s1359_s18), 3  ;;  %v1558_v18 = vld [vmem:[%s580_s13 + $0x4] ss:$0 sps:$4 sm:$0xff] (!%p1363_p4)   ;;  %v1701_v19 = vmov (!%p1363_p4), 0.0   ;;  %v1559_v20 = vld [vmem:[%s2053_s2] sm:$0xff] (!%p1363_p4)  }
  0x46   : > { %s2115_s30 = smov (!%p665_p3, %s1360_s30), 63  ;;  %682 = sbr.rel (%p1363_p4) target bundleno = 722 (0x2d2), region = 151 }
  0x47   : > { %s655_s16 = sadd.s32 %s1465_s5, %s2111_s26  ;;  %s662_s26 = scalar_lea.vmem %s2058_s7, %s2113_s18  ;;  %1444 = vmatprep.subr.bf16.mxu0 (!%p1363_p4), %v1701_v19  ;;  %vm1703_vm0 = vmmov (!%p1363_p4), 0   ;;  %v1560_v21 = vld [vmem:[%s2053_s2 + $0x8] sm:$0xff] (!%p1363_p4)   ;;  %v1561_v22 = vld [vmem:[%s2053_s2 + $0x10] sm:$0xff] (!%p1363_p4)   ;;  %v1562_v23 = vld [vmem:[%s2053_s2 + $0x18] sm:$0xff] (!%p1363_p4)   ;;  %vm690_vm1 = vcmask (!%p1363_p4), 523264  }
  0x48   : > { %s1358_s15 = sshll.u32 %s655_s16, 3  ;;  %s1361_s19 = sshll.u32 %s2115_s30, 2  ;;  %1460 = vmatprep.mubr.msk.bf16.mxu0 (!%p1363_p4), %vm1703_vm0, %v1701_v19  ;;  %1445 = vmatpush3.bf16.msra.mxu0 (!%p1363_p4), %v1559_v20  ;;  %v1563_v24 = vld [vmem:[%s2053_s2 + $0x20] sm:$0xff] (!%p1363_p4)   ;;  %v1564_v25 = vld [vmem:[%s2053_s2 + $0x28] sm:$0xff] (!%p1363_p4)   ;;  %v1565_v26 = vld [vmem:[%s2053_s2 + $0x30] sm:$0xff] (!%p1363_p4)  }
  0x49   : > { %s1916_s23 = scalar_lea.vmem %s2080_s0, %s1358_s15  ;;  %s1921_s3 = scalar_lea.vmem %s2063_s12, %s1358_s15  ;;  %1446 = vmatprep.subr.bf16.mxu0 (!%p1363_p4), %v1701_v19  ;;  %v1566_v27 = vld [vmem:[%s2053_s2 + $0x38] sm:$0xff] (!%p1363_p4)   ;;  %v683_v28 = vld [vmem:[%s580_s13] sm:$0xf] (!%p1363_p4) }
  0x4a   : > { %s1932_s17 = scalar_lea.vmem %s2059_s8, %s1361_s19  ;;  %s1935_s0 = scalar_lea.vmem [#allocation5], %s1357_s20  ;;  %v695_v31 = vld [vmem:[%s1916_s23] sm:$0xff] (!%p1363_p4) }
  0x4b   : > { %s1702_s30 = smov (!%p1363_p4), 64   ;;  %s2081_s16 = sld [smem:[#allocation12_spill]] (!%p1363_p4) }
  0x4c   : > { %688 = vrot.lane.b32.xlu0 (!%p1363_p4), %v1558_v18, %s1702_s30  ;;  %1447 = vmatpush3.bf16.msra.mxu0 (!%p1363_p4), %v1560_v21  ;;  %s2082_s30 = sld [smem:[#allocation15_spill]] (!%p1363_p4)  ;;  %s2083_s13 = sld [smem:[#allocation13_spill]] (!%p1363_p4) }
  0x4d   : > { %1448 = vmatprep.subr.bf16.mxu0 %v1701_v19  ;;  %s2084_s14 = sld [smem:[#allocation14_spill]] }
  0x50   : > { %1449 = vmatpush3.bf16.msra.mxu0 %v1561_v22 }
  0x51   : > { %1450 = vmatprep.subr.bf16.mxu0 %v1701_v19  ;;  %v1373_v33 = vld [vmem:[%s2081_s16] ss:$0 sm:$0xff] }
  0x52   : > { %v1376_v36 = vld [vmem:[%s2082_s30] ss:$0 sm:$0xff] }
  0x53   : > { %v1374_v49 = vld [vmem:[%s2083_s13] ss:$0 sm:$0xff] }
  0x54   : > { %1451 = vmatpush3.bf16.msra.mxu0 %v1562_v23  ;;  %v1375_v51 = vld [vmem:[%s2084_s14] ss:$0 sm:$0xff] }
  0x55   : > { %1452 = vmatprep.subr.bf16.mxu0 %v1701_v19 }
  0x58   : > { %1453 = vmatpush3.bf16.msra.mxu0 %v1563_v24 }
  0x59   : > { %1454 = vmatprep.subr.bf16.mxu0 %v1701_v19 }
  0x5c   : > { %1455 = vmatpush3.bf16.msra.mxu0 %v1564_v25 }
  0x5d   : > { %1456 = vmatprep.subr.bf16.mxu0 %v1701_v19 }
  0x60   : > { %1457 = vmatpush3.bf16.msra.mxu0 %v1565_v26 }
  0x61   : > { %1458 = vmatprep.subr.bf16.mxu0 %v1701_v19 }
  0x64   : > { %1459 = vmatpush3.bf16.msra.mxu0 %v1566_v27 }
  0xbe   : > { %v689_v29 = vpop.permute.xlu0 %688 }
  0xbf   : > { %v693_v30 = vsel %vm690_vm1, %v683_v28, %v689_v29 }
  0xc0   : > { %1461 = vmatmul.mubr.bf16.vlgmr.msra.gmra.mrb[0].mxu0 %v693_v30 }
 0x193   : > { %v794_v32 = vpop.f32.mrb[0].mxu0 }
 0x194   : > { %v800_v34 = vadd.f32 %v794_v32, %v695_v31  ;;  %v1462_v35 = vpop.f32.mrb[1].mxu0 }
 0x195   : > { %v797_v37 = vpop.f32.mrb[2].mxu0 }
 0x196   : > { %v808_v38 = vadd.f32 %v1373_v33, %v800_v34  ;;  %v1463_v39 = vpop.f32.mrb[3].mxu0 }
 0x198   : > { %v846_v40 = vadd.f32 %v1376_v36, %v808_v38  ;;  %811 = vadd.xlane.f32.xlu0 %v808_v38 }
 0x19a   : > { %847 = vst [vmem:[#allocation3] sm:$0xff] %v846_v40 }
 0x225   : > { %v812_v41 = vpop.xlane.xlu0 %811 }
 0x226   : > { %v814_v42 = vmul.f32 0.0078125, %v812_v41 }
 0x228   : > { %v815_v43 = vsub.f32 %v808_v38, %v814_v42 }
 0x22a   : > { %v816_v44 = vmul.f32 %v815_v43, %v815_v43 }
 0x22c   : > { %817 = vadd.xlane.f32.xlu1 %v816_v44 }
 0x2b9   : > { %v818_v45 = vpop.xlane.xlu1 %817 }
 0x2ba   : > { %v819_v46 = vmul.f32 0.0078125, %v818_v45 }
 0x2bc   : > { %v820_v47 = vadd.f32 1e-06, %v819_v46 }
 0x2be   : > { %1567 = vrsqrt.f32 %v820_v47 }
 0x2c8   : > { %v1568_v48 = vpop.eup %1567 }
 0x2c9   : > { %v822_v50 = vmul.f32 %v1568_v48, %v815_v43 }
 0x2cb   : > { %v829_v52 = vmul.f32 %v1374_v49, %v822_v50 }
 0x2cd   : > { %v836_v53 = vadd.f32 %v1375_v51, %v829_v52 }
 0x2cf   : > { %v837_v54 = vpack.c.bf16 %v836_v53, %v836_v53 }
 0x2d1   : > { %838 = vst [vmem:[#allocation2] sm:$0xf] %v837_v54 }
 0x2d2 PF: > { %v1569_v55 = vld [vmem:[%s1935_s0 + $0x4] ss:$8 sps:$4 sm:$0xff]   ;;  %v1571_v56 = vld [vmem:[%s1935_s0] ss:$8 sps:$4 sm:$0xff]   ;;  %v1704_v57 = vmov 0   ;;  %v1597_v13 = vld [vmem:[%s1932_s17 + $0x50] sm:$0xff]   ;;  %v867_v25 = vlaneseq }
 0x2d3   : > { %989 = vmatprep.mubr.bf16.mxu0 %v1704_v57  ;;  %957 = vmatprep.subr.bf16.mxu0 %v1569_v55  ;;  %v1572_v58 = vld [vmem:[%s1935_s0 + $0x14] ss:$8 sps:$4 sm:$0xff]   ;;  %v1574_v59 = vld [vmem:[%s1935_s0 + $0x10] ss:$8 sps:$4 sm:$0xff]   ;;  %v1575_v60 = vld [vmem:[%s1935_s0 + $0x24] ss:$8 sps:$4 sm:$0xff]  }
 0x2d4   : > { %958 = vmatpush1.bf16.msra.mxu0 %v1571_v56  ;;  %v1577_v61 = vld [vmem:[%s1935_s0 + $0x20] ss:$8 sps:$4 sm:$0xff]   ;;  %v1578_v62 = vld [vmem:[%s1935_s0 + $0x34] ss:$8 sps:$4 sm:$0xff]   ;;  %v1580_v63 = vld [vmem:[%s1935_s0 + $0x30] ss:$8 sps:$4 sm:$0xff]  }
 0x2d5   : > { %959 = vmatprep.subr.bf16.mxu0 %v1572_v58  ;;  %v1581_v0 = vld [vmem:[%s1935_s0 + $0x44] ss:$8 sps:$4 sm:$0xff]   ;;  %v1583_v1 = vld [vmem:[%s1935_s0 + $0x40] ss:$8 sps:$4 sm:$0xff]   ;;  %v1584_v2 = vld [vmem:[%s1935_s0 + $0x54] ss:$8 sps:$4 sm:$0xff]  }
 0x2d6   : > { %v1586_v3 = vld [vmem:[%s1935_s0 + $0x50] ss:$8 sps:$4 sm:$0xff]   ;;  %v1587_v4 = vld [vmem:[%s1935_s0 + $0x64] ss:$8 sps:$4 sm:$0xff]   ;;  %v1589_v5 = vld [vmem:[%s1935_s0 + $0x60] ss:$8 sps:$4 sm:$0xff]  }
 0x2d7   : > { %v1590_v6 = vld [vmem:[%s1935_s0 + $0x74] ss:$8 sps:$4 sm:$0xff]   ;;  %v1592_v7 = vld [vmem:[%s1935_s0 + $0x70] ss:$8 sps:$4 sm:$0xff]   ;;  %v1593_v9 = vld [vmem:[%s1932_s17 + $0x40] sm:$0xff]   ;;  %v868_v26 = vshrl.u32 %v867_v25, 7 }
 0x2d8   : > { %960 = vmatpush1.bf16.msra.mxu0 %v1574_v59  ;;  %v848_v8 = vld [vmem:[#allocation2] sm:$0xf]  ;;  %1422 = vmatprep.subr.bf16.mxu1 %v1593_v9  ;;  %v1595_v11 = vld [vmem:[%s1932_s17 + $0x48] sm:$0xff]   ;;  %v1598_v14 = vld [vmem:[%s1932_s17 + $0x10] sm:$0xff]   ;;  %p1409_p5 = scmp.ne.s32.totalorder %s1675_s25, 1 }
 0x2d9   : > { %961 = vmatprep.subr.bf16.mxu0 %v1575_v60  ;;  %v1594_v10 = vld [vmem:[%s1932_s17] sm:$0xff]   ;;  %v1596_v12 = vld [vmem:[%s1932_s17 + $0x8] sm:$0xff]   ;;  %v1599_v15 = vld [vmem:[%s1932_s17 + $0x58] sm:$0xff]   ;;  %v869_v27 = vsub.s32 0, %v868_v26  ;;  %v873_v29 = vsub.s32 1, %v868_v26 }
 0x2da   : > { %1423 = vmatpush3.bf16.msra.mxu1 %v1594_v10  ;;  %v1600_v16 = vld [vmem:[%s1932_s17 + $0x18] sm:$0xff]   ;;  %v1601_v17 = vld [vmem:[%s1932_s17 + $0x60] sm:$0xff]   ;;  %v1603_v19 = vld [vmem:[%s1932_s17 + $0x68] sm:$0xff]  }
 0x2db   : > { %1424 = vmatprep.subr.bf16.mxu1 %v1595_v11  ;;  %v1602_v18 = vld [vmem:[%s1932_s17 + $0x20] sm:$0xff]   ;;  %v1604_v20 = vld [vmem:[%s1932_s17 + $0x28] sm:$0xff]   ;;  %v1605_v21 = vld [vmem:[%s1932_s17 + $0x70] sm:$0xff]  }
 0x2dc   : > { %962 = vmatpush1.bf16.msra.mxu0 %v1577_v61  ;;  %v1606_v22 = vld [vmem:[%s1932_s17 + $0x30] sm:$0xff]   ;;  %v1607_v23 = vld [vmem:[%s1932_s17 + $0x78] sm:$0xff]   ;;  %v865_v28 = vld [vmem:[%s662_s26] sm:$0x3] }
 0x2dd   : > { %963 = vmatprep.subr.bf16.mxu0 %v1578_v62  ;;  %v1608_v24 = vld [vmem:[%s1932_s17 + $0x38] sm:$0xff]   ;;  %v870_v30 = vrot.slane %v865_v28, %v869_v27  ;;  %v874_v31 = vrot.slane %v865_v28, %v873_v29  ;;  %v1016_v59 = vld [vmem:[#allocation3] sm:$0xff] }
 0x2de   : > { %1425 = vmatpush3.bf16.msra.mxu1 %v1596_v12 }
 0x2df   : > { %1426 = vmatprep.subr.bf16.mxu1 %v1597_v13 }
 0x2e0   : > { %964 = vmatpush1.bf16.msra.mxu0 %v1580_v63 }
 0x2e1   : > { %965 = vmatprep.subr.bf16.mxu0 %v1581_v0 }
 0x2e2   : > { %1427 = vmatpush3.bf16.msra.mxu1 %v1598_v14 }
 0x2e3   : > { %1428 = vmatprep.subr.bf16.mxu1 %v1599_v15 }
 0x2e4   : > { %966 = vmatpush1.bf16.msra.mxu0 %v1583_v1 }
 0x2e5   : > { %967 = vmatprep.subr.bf16.mxu0 %v1584_v2 }
 0x2e6   : > { %1429 = vmatpush3.bf16.msra.mxu1 %v1600_v16 }
 0x2e7   : > { %1430 = vmatprep.subr.bf16.mxu1 %v1601_v17 }
 0x2e8   : > { %968 = vmatpush1.bf16.msra.mxu0 %v1586_v3 }
 0x2e9   : > { %969 = vmatprep.subr.bf16.mxu0 %v1587_v4 }
 0x2ea   : > { %1431 = vmatpush3.bf16.msra.mxu1 %v1602_v18 }
 0x2eb   : > { %1432 = vmatprep.subr.bf16.mxu1 %v1603_v19 }
 0x2ec   : > { %970 = vmatpush1.bf16.msra.mxu0 %v1589_v5 }
 0x2ed   : > { %971 = vmatprep.subr.bf16.mxu0 %v1590_v6 }
 0x2ee   : > { %1433 = vmatpush3.bf16.msra.mxu1 %v1604_v20 }
 0x2ef   : > { %1434 = vmatprep.subr.bf16.mxu1 %v1605_v21 }
 0x2f0   : > { %972 = vmatpush1.bf16.msra.mxu0 %v1592_v7 }
 0x2f2   : > { %1435 = vmatpush3.bf16.msra.mxu1 %v1606_v22 }
 0x2f3   : > { %990 = vmatmul.mubr.bf16.vlgmr.msra.gmra.mrb[0].mxu0 %v848_v8  ;;  %1436 = vmatprep.subr.bf16.mxu1 %v1607_v23 }
 0x2f6   : > { %1437 = vmatpush3.bf16.msra.mxu1 %v1608_v24 }
 0x3c6   : > { %v991_v32 = vpop.f32.mrb[0].mxu0 }
 0x3c7   : > { %v992_v33 = vadd.f32 %v991_v32, %v870_v30  ;;  %v993_v34 = vpop.f32.mrb[1].mxu0 }
 0x3c8   : > { %v994_v35 = vadd.f32 %v993_v34, %v874_v31  ;;  %v995_v36 = vpop.f32.mrb[2].mxu0 }
 0x3c9   : > { %v998_v37 = vmul.f32 %v992_v33, %v992_v33  ;;  %v996_v38 = vpop.f32.mrb[3].mxu0 }
 0x3ca   : > { %v999_v39 = vmul.f32 %v994_v35, %v994_v35 }
 0x3cb   : > { %v1000_v40 = vmul.f32 %v998_v37, %v992_v33 }
 0x3cc   : > { %v1001_v41 = vmul.f32 %v999_v39, %v994_v35 }
 0x3cd   : > { %v1002_v42 = vmul.f32 0.044715, %v1000_v40 }
 0x3ce   : > { %v1003_v43 = vmul.f32 0.044715, %v1001_v41 }
 0x3cf   : > { %v1004_v44 = vadd.f32 %v1002_v42, %v992_v33 }
 0x3d0   : > { %v1005_v45 = vadd.f32 %v1003_v43, %v994_v35 }
 0x3d1   : > { %v1006_v46 = vmul.f32 0.7978846, %v1004_v44 }
 0x3d2   : > { %v1007_v47 = vmul.f32 0.7978846, %v1005_v45 }
 0x3d3   : > { %1609 = vtanh.f32 %v1006_v46 }
 0x3d4   : > { %1611 = vtanh.f32 %v1007_v47 }
 0x3dd   : > { %v1610_v48 = vpop.eup %1609 }
 0x3de   : > { %v1612_v49 = vpop.eup %1611  ;;  %v1010_v50 = vadd.f32 1.0, %v1610_v48 }
 0x3df   : > { %v1011_v51 = vadd.f32 1.0, %v1612_v49 }
 0x3e0   : > { %v1012_v52 = vmul.f32 0.5, %v1010_v50 }
 0x3e1   : > { %v1013_v53 = vmul.f32 0.5, %v1011_v51 }
 0x3e2   : > { %v1014_v54 = vmul.f32 %v1012_v52, %v992_v33 }
 0x3e3   : > { %v1015_v55 = vmul.f32 %v1013_v53, %v994_v35 }
 0x3e4   : > { %v1017_v57 = vpack.c.bf16 %v1014_v54, %v1014_v54 }
 0x3e5   : > { %v1018_v56 = vpack.c.bf16 %v1015_v55, %v1015_v55 }
 0x3e7   : > { %1179 = vmatprep.mubr.bf16.mxu1 %v1018_v56 }
 0x3e8   : > { %1180 = vmatmul.mubr.bf16.vlgmr.msra.gmra.mrb[0].mxu1 %v1017_v57 }
 0x4bb   : > { %v1438_v58 = vpop.f32.mrb[0].mxu1  ;;  %1192 = sbr.rel (%p1409_p5) target bundleno = 1226 (0x4ca), region = 155 }
 0x4bc   : > { %v1439_v60 = vpop.f32.mrb[1].mxu1 }
 0x4bd   : > { %v1440_v61 = vadd.f32 %v1439_v60, %v1438_v58  ;;  %v1441_v62 = vpop.f32.mrb[2].mxu1 }
 0x4be   : > { %v1442_v63 = vpop.f32.mrb[3].mxu1 }
 0x4bf   : > { %v1187_v0 = vadd.f32 %v1440_v61, %v1016_v59 }
 0x4c1   : > { %1188 = vst [vmem:[#allocation3] sm:$0xff] %v1187_v0 }
 0x4c8   : > { %v1193_v1 = vld [vmem:[#allocation3] sm:$0xff] }
 0x4c9   : > { %1194 = vst [vmem:[%s1921_s3] sm:$0xff] %v1193_v1 }
 0x4ca PF: > { %s22_s29 = sadd.s32 1, %s1699_s29   ;;  %s2085_s18 = sld [smem:[#allocation9_spill]] }
 0x4cb   : > { %p19_p6 = scmp.ge.s32.totalorder %s22_s29, 14   ;;  %s2086_s27 = sld [smem:[#allocation6_spill]] }
 0x4cc   : > { %s2087_s17 = sld [smem:[#allocation7_spill]]  ;;  %s2088_s19 = sld [smem:[#allocation8_spill]] }
 0x4cd   : > { %s2089_s28 = sld [smem:[#allocation10_spill]]  ;;  %s2090_s21 = smov %s1663_s22 }
 0x4ce   : > { %s2092_s23 = smov %s1671_s24  ;;  %s2093_s24 = smov %s1865_s4 }
 0x4cf   : > { %s2094_s25 = smov %s1687_s10  ;;  %s2095_s26 = smov %s1691_s11 }
 0x4d0   : > { %s2091_s22 = smov %s2085_s18  ;;  %21 = sbr.rel (!%p19_p6) target bundleno = 12 (0xc), region = 207 }
 0x4d2   : > { %s2096_s10 = smov %s2087_s17  ;;  %s2097_s11 = smov %s2088_s19 }

// kernel: _lambda_.8
= control target key start
LH: loop header
LB: loop body
LE: loop exit
PB: predicated region body
PF: predicated region fallthrough
CT: control target
= control target key end

     0   :  { %s1460_s17 = smov 0   ;;  %s1462_s18 = smov 0   ;;  %s1704_s0 = inlined_call_operand.vmem [shape: f32[2,24,128], index: 0, kind: input, shape index: {}]   ;;  %s1705_s1 = inlined_call_operand.vmem [shape: f32[1,128], index: 1, kind: input, shape index: {}]   ;;  %s1706_s2 = inlined_call_operand.vmem [shape: f32[1,128], index: 2, kind: input, shape index: {}, may-alias: {2,6,7,8}]   ;;  %s1707_s3 = inlined_call_operand.vmem [shape: bf16[128,128], index: 3, kind: input, shape index: {}]   ;;  %s1708_s4 = inlined_call_operand.vmem [shape: bf16[128,128], index: 4, kind: input, shape index: {}]   ;;  %s1709_s5 = inlined_call_operand.vmem [shape: bf16[128,128], index: 5, kind: input, shape index: {}]   ;;  %s1710_s6 = inlined_call_operand.vmem [shape: f32[1,128], index: 6, kind: input, shape index: {}, may-alias: {2,6,7,8}]   ;;  %s1711_s7 = inlined_call_operand.vmem [shape: f32[1,128], index: 7, kind: input, shape index: {}, may-alias: {2,6,7,8}]   ;;  %s1712_s8 = inlined_call_operand.vmem [shape: f32[1,128], index: 8, kind: input, shape index: {}, may-alias: {2,6,7,8}]   ;;  %s1713_s9 = inlined_call_operand.vmem [shape: bf16[2,2,24,64], index: 9, kind: output, shape index: {0}]   ;;  %s1714_s10 = inlined_call_operand.vmem [shape: bf16[2,2,24,64], index: 10, kind: output, shape index: {1}]   ;;  %s1715_s11 = inlined_call_operand.vmem [shape: bf16[2,2,24,64], index: 11, kind: output, shape index: {2}]  }
   0x1   :  { %s1464_s19 = smov 0   ;;  %s1466_s20 = smov 0  }
   0x2   :  { %s1468_s21 = smov 0   ;;  %s1470_s22 = smov 0  }
   0x3   :  { %s1472_s23 = smov 0  }
   0x4 LB: > { %1720 = sst [smem:[#allocation5_spill]] %s1387_s21  ;;  %s31_s24 = sadd.s32 1, %s1387_s21  ;;  %s1395_s23 = sphi %s1472_s23, %s22_s23   ;;  %s1391_s22 = sphi %s1470_s22, %s1732_s22   ;;  %s1387_s21 = sphi %s1468_s21, %s1727_s21   ;;  %s1383_s20 = sphi %s1466_s20, %s1731_s20   ;;  %s1379_s19 = sphi %s1464_s19, %s1726_s19   ;;  %s1375_s18 = sphi %s1462_s18, %s1730_s18   ;;  %s1371_s17 = sphi %s1460_s17, %s1729_s17  }
   0x5   : > { %1721 = sst [smem:[#allocation6_spill]] %s1395_s23  ;;  %p32_p0 = scmp.ge.s32.totalorder %s31_s24, 3 }
   0x6   : > { %s34_s25 = sadd.s32 1, %s1391_s22  ;;  %s1110_s26 = sadd.s32 4294967295, %s1395_s23  }
   0x7   : > { %p249_p1 = scmp.ne.s32.totalorder %s1375_s18, %s1371_s17  ;;  %s1734_s24 = smov (%p32_p0, %s31_s24), 0 }
   0x8   : > { %1722 = sst [smem:[#allocation7_spill]] %s1734_s24  ;;  %s1736_s25 = smov (!%p32_p0, %s34_s25), %s1391_s22 }
   0x9   : > { %s235_s27 = ssub.s32 %s1387_s21, %s1734_s24  ;;  %p250_p2 = scmp.eq.s32.totalorder %s1110_s26, 5 }
   0xa   : > { %p36_p3 = scmp.ge.s32.totalorder %s1736_s25, 2  ;;  %p1114_p4 = scmp.ge.s32.totalorder %s1395_s23, 1 }
   0xb   : > { %p1506_p5 = por %p250_p2, %p249_p1  ;;  %p365_p6 = scmp.lt.s32.totalorder %s1395_s23, 7 }
   0xc   : > { %s1738_s25 = smov (%p36_p3, %s1736_s25), 0  ;;  %s239_s12 = sadd.s32 1, %s1375_s18 }
   0xd   : > { %1724 = sst [smem:[#allocation8_spill]] %s1738_s25  ;;  %p366_p7 = pnand %p1114_p4, %p365_p6 }
   0xe   : > { %s234_s29 = ssub.s32 %s1391_s22, %s1738_s25  ;;  %p415_p9 = scmp.lt.s32.totalorder (!%p366_p7), %s1383_s20, 1  ;;  %v1315_v1 = vld [vmem:[%s1707_s3] sm:$0xff] (!%p366_p7)   ;;  %v1397_v3 = vmov (!%p366_p7), 0.0   ;;  %v1317_v4 = vld [vmem:[%s1707_s3 + $0x8] sm:$0xff] (!%p366_p7)   ;;  %v1319_v6 = vld [vmem:[%s1707_s3 + $0x10] sm:$0xff] (!%p366_p7)   ;;  %vm1398_vm0 = vmmov (!%p366_p7), 0  }
   0xf   : > { %s236_s30 = sor.u32 %s235_s27, %s234_s29  ;;  %369 = sbr.rel (%p366_p7) target bundleno = 721 (0x2d1), region = 56  ;;  %v1316_v2 = vld [vmem:[%s1708_s4] sm:$0xff] (!%p366_p7)   ;;  %1192 = vmatprep.subr.bf16.mxu0 (!%p366_p7), %v1397_v3  ;;  %1212 = vmatprep.subr.bf16.mxu1 (!%p366_p7), %v1397_v3  ;;  %v1318_v5 = vld [vmem:[%s1708_s4 + $0x8] sm:$0xff] (!%p366_p7)   ;;  %v1320_v11 = vld [vmem:[%s1708_s4 + $0x10] sm:$0xff] (!%p366_p7)   ;;  %vm788_vm1 = vcmask (!%p366_p7), 519168  }
  0x10   : > { %p237_p8 = scmp.eq.s32.totalorder %s236_s30, 0  ;;  %p417_p10 = scmp.lt.s32.totalorder (!%p366_p7), %s1379_s19, 2  ;;  %1193 = vmatpush3.bf16.msra.mxu0 (!%p366_p7), %v1315_v1  ;;  %1213 = vmatpush3.bf16.msra.mxu1 (!%p366_p7), %v1316_v2  ;;  %v1321_v12 = vld [vmem:[%s1707_s3 + $0x18] sm:$0xff] (!%p366_p7)   ;;  %v1323_v14 = vld [vmem:[%s1707_s3 + $0x20] sm:$0xff] (!%p366_p7)   ;;  %v1325_v16 = vld [vmem:[%s1707_s3 + $0x28] sm:$0xff] (!%p366_p7)  }
  0x11   : > { %1194 = vmatprep.subr.bf16.mxu0 (!%p366_p7), %v1397_v3  ;;  %1214 = vmatprep.subr.bf16.mxu1 (!%p366_p7), %v1397_v3  ;;  %v1322_v13 = vld [vmem:[%s1708_s4 + $0x18] sm:$0xff] (!%p366_p7)   ;;  %v1324_v15 = vld [vmem:[%s1708_s4 + $0x20] sm:$0xff] (!%p366_p7)   ;;  %v1326_v17 = vld [vmem:[%s1708_s4 + $0x28] sm:$0xff] (!%p366_p7)  }
  0x12   : > { %s1517_s13 = scalar_select %p237_p8, %s1375_s18, %s239_s12  }
  0x13   : > { %1208 = vmatprep.mubr.msk.bf16.mxu0 (!%p366_p7), %vm1398_vm0, %v1397_v3  ;;  %1228 = vmatprep.mubr.msk.bf16.mxu1 (!%p366_p7), %vm1398_vm0, %v1397_v3  ;;  %v1327_v18 = vld [vmem:[%s1707_s3 + $0x30] sm:$0xff] (!%p366_p7)   ;;  %v1329_v20 = vld [vmem:[%s1707_s3 + $0x38] sm:$0xff] (!%p366_p7)   ;;  %v1119_v26 = vld [vmem:[%s1705_s1] ss:$0 sm:$0xff] (!%p366_p7) }
  0x14   : > { %1195 = vmatpush3.bf16.msra.mxu0 (!%p366_p7), %v1317_v4  ;;  %1215 = vmatpush3.bf16.msra.mxu1 (!%p366_p7), %v1318_v5  ;;  %v1328_v19 = vld [vmem:[%s1708_s4 + $0x30] sm:$0xff] (!%p366_p7)   ;;  %v1330_v21 = vld [vmem:[%s1708_s4 + $0x38] sm:$0xff] (!%p366_p7)   ;;  %v1120_v28 = vld [vmem:[%s1706_s2] ss:$0 sm:$0xff] (!%p366_p7) }
  0x15   : > { %1196 = vmatprep.subr.bf16.mxu0 (!%p366_p7), %v1397_v3  ;;  %1216 = vmatprep.subr.bf16.mxu1 (!%p366_p7), %v1397_v3  ;;  %v1331_v31 = vld [vmem:[%s1709_s5] sm:$0xff] (!%p366_p7)   ;;  %v1332_v33 = vld [vmem:[%s1709_s5 + $0x8] sm:$0xff] (!%p366_p7)   ;;  %v1333_v34 = vld [vmem:[%s1709_s5 + $0x10] sm:$0xff] (!%p366_p7)  }
  0x16   : > { %s416_s14 = scalar_select %p415_p9, %s1383_s20, 1  ;;  %v1334_v35 = vld [vmem:[%s1709_s5 + $0x18] sm:$0xff]   ;;  %v1335_v36 = vld [vmem:[%s1709_s5 + $0x20] sm:$0xff]   ;;  %v1336_v37 = vld [vmem:[%s1709_s5 + $0x28] sm:$0xff]  }
  0x17   : > { %s418_s15 = scalar_select %p417_p10, %s1379_s19, 2  ;;  %v1337_v38 = vld [vmem:[%s1709_s5 + $0x30] sm:$0xff]   ;;  %v1338_v39 = vld [vmem:[%s1709_s5 + $0x38] sm:$0xff]   ;;  %v1121_v40 = vld [vmem:[%s1710_s6] ss:$0 sm:$0xff] }
  0x18   : > { %s1252_s16 = smul.u32 3, %s416_s14  ;;  %1197 = vmatpush3.bf16.msra.mxu0 %v1319_v6  ;;  %1217 = vmatpush3.bf16.msra.mxu1 %v1320_v11  ;;  %s400_s14 = sand.u32 1, %s1371_s17   ;;  %v1130_v41 = vld [vmem:[%s1711_s7] ss:$0 sm:$0xff] }
  0x19   : > { %1198 = vmatprep.subr.bf16.mxu0 %v1397_v3  ;;  %1218 = vmatprep.subr.bf16.mxu1 %v1397_v3  ;;  %s1399_s17 = smov 64   ;;  %v1139_v54 = vld [vmem:[%s1712_s8] ss:$0 sm:$0xff]  ;;  %s1253_s12 = smul.u32 (%p1506_p5), 6, %s1383_s20 }
  0x1a   : > { %s420_s26 = sadd.s32 %s1252_s16, %s418_s15  ;;  %s1115_s15 = sshll.u32 %s400_s14, 3 }
  0x1b   : > { %s1118_s24 = sshll.u32 %s420_s26, 3  ;;  %s402_s16 = scalar_lea.vmem [#allocation2], %s1115_s15 }
  0x1c   : > { %s422_s27 = scalar_lea.vmem %s1704_s0, %s1118_s24  ;;  %1199 = vmatpush3.bf16.msra.mxu0 %v1321_v12  ;;  %1219 = vmatpush3.bf16.msra.mxu1 %v1322_v13  ;;  %s1642_s26 = scalar_lea.vmem [#allocation3], %s1115_s15 }
  0x1d   : > { %v424_v0 = vld [vmem:[%s422_s27] sm:$0xff]  ;;  %1200 = vmatprep.subr.bf16.mxu0 %v1397_v3  ;;  %1220 = vmatprep.subr.bf16.mxu1 %v1397_v3  ;;  %s1649_s30 = scalar_lea.vmem [#allocation4], %s1115_s15  ;;  %s834_s14 = sadd.s32 (%p1506_p5), %s1379_s19, %s1253_s12 }
  0x1e   : > { %427 = vadd.xlane.f32.xlu0 %v424_v0  ;;  %s1157_s21 = sshll.u32 (%p1506_p5), %s834_s14, 2 }
  0x1f   : > { %s836_s25 = scalar_lea.vmem (%p1506_p5), %s1713_s9, %s1157_s21 }
  0x20   : > { %1201 = vmatpush3.bf16.msra.mxu0 %v1323_v14  ;;  %1221 = vmatpush3.bf16.msra.mxu1 %v1324_v15 }
  0x21   : > { %1202 = vmatprep.subr.bf16.mxu0 %v1397_v3  ;;  %1222 = vmatprep.subr.bf16.mxu1 %v1397_v3 }
  0x24   : > { %1203 = vmatpush3.bf16.msra.mxu0 %v1325_v16  ;;  %1223 = vmatpush3.bf16.msra.mxu1 %v1326_v17 }
  0x25   : > { %1204 = vmatprep.subr.bf16.mxu0 %v1397_v3  ;;  %1224 = vmatprep.subr.bf16.mxu1 %v1397_v3 }
  0x28   : > { %1205 = vmatpush3.bf16.msra.mxu0 %v1327_v18  ;;  %1225 = vmatpush3.bf16.msra.mxu1 %v1328_v19 }
  0x29   : > { %1206 = vmatprep.subr.bf16.mxu0 %v1397_v3  ;;  %1226 = vmatprep.subr.bf16.mxu1 %v1397_v3 }
  0x2c   : > { %1207 = vmatpush3.bf16.msra.mxu0 %v1329_v20  ;;  %1227 = vmatpush3.bf16.msra.mxu1 %v1330_v21 }
  0x2d   : > { %1232 = vmatprep.subr.bf16.mxu0 %v1397_v3 }
  0xab   : > { %v428_v7 = vpop.xlane.xlu0 %427 }
  0xac   : > { %v430_v8 = vmul.f32 0.0078125, %v428_v7 }
  0xae   : > { %v431_v9 = vsub.f32 %v424_v0, %v430_v8 }
  0xb0   : > { %v432_v10 = vmul.f32 %v431_v9, %v431_v9 }
  0xb2   : > { %433 = vadd.xlane.f32.xlu0 %v432_v10 }
 0x13f   : > { %v434_v22 = vpop.xlane.xlu0 %433 }
 0x140   : > { %v435_v23 = vmul.f32 0.0078125, %v434_v22 }
 0x142   : > { %v436_v24 = vadd.f32 1e-06, %v435_v23 }
 0x144   : > { %1339 = vrsqrt.f32 %v436_v24 }
 0x14e   : > { %v1340_v25 = vpop.eup %1339 }
 0x14f   : > { %v438_v27 = vmul.f32 %v1340_v25, %v431_v9 }
 0x151   : > { %v445_v29 = vmul.f32 %v1119_v26, %v438_v27 }
 0x153   : > { %v452_v30 = vadd.f32 %v1120_v28, %v445_v29 }
 0x155   : > { %v453_v32 = vpack.c.bf16 %v452_v30, %v452_v30 }
 0x157   : > { %1209 = vmatmul.mubr.bf16.vlgmr.msra.gmra.mrb[0].mxu0 %v453_v32  ;;  %1229 = vmatmul.mubr.bf16.vlgmr.msra.gmra.mrb[0].mxu1 %v453_v32 }
 0x158   : > { %1233 = vmatpush3.bf16.msra.mxu0 %v1331_v31  ;;  %1248 = vmatprep.mubr.msk.bf16.mxu0 %vm1398_vm0, %v1397_v3 }
 0x159   : > { %1234 = vmatprep.subr.bf16.mxu0 %v1397_v3 }
 0x15c   : > { %1235 = vmatpush3.bf16.msra.mxu0 %v1332_v33 }
 0x15d   : > { %1236 = vmatprep.subr.bf16.mxu0 %v1397_v3 }
 0x160   : > { %1237 = vmatpush3.bf16.msra.mxu0 %v1333_v34 }
 0x161   : > { %1238 = vmatprep.subr.bf16.mxu0 %v1397_v3 }
 0x164   : > { %1239 = vmatpush3.bf16.msra.mxu0 %v1334_v35 }
 0x165   : > { %1240 = vmatprep.subr.bf16.mxu0 %v1397_v3 }
 0x168   : > { %1241 = vmatpush3.bf16.msra.mxu0 %v1335_v36 }
 0x169   : > { %1242 = vmatprep.subr.bf16.mxu0 %v1397_v3 }
 0x16c   : > { %1243 = vmatpush3.bf16.msra.mxu0 %v1336_v37 }
 0x16d   : > { %1244 = vmatprep.subr.bf16.mxu0 %v1397_v3 }
 0x170   : > { %1245 = vmatpush3.bf16.msra.mxu0 %v1337_v38 }
 0x171   : > { %1246 = vmatprep.subr.bf16.mxu0 %v1397_v3 }
 0x174   : > { %1247 = vmatpush3.bf16.msra.mxu0 %v1338_v39 }
 0x177   : > { %1249 = vmatmul.mubr.bf16.vlgmr.msra.gmra.mrb[4].mxu0 %v453_v32 }
 0x22a   : > { %v559_v42 = vpop.f32.mrb[0].mxu0  ;;  %v670_v43 = vpop.f32.mrb[0].mxu1 }
 0x22b   : > { %v560_v44 = vadd.f32 %v1121_v40, %v559_v42  ;;  %v671_v45 = vadd.f32 %v1130_v41, %v670_v43  ;;  %v1210_v46 = vpop.f32.mrb[1].mxu0  ;;  %v1230_v47 = vpop.f32.mrb[1].mxu1 }
 0x22c   : > { %v562_v48 = vpop.f32.mrb[2].mxu0  ;;  %v673_v49 = vpop.f32.mrb[2].mxu1 }
 0x22d   : > { %v787_v50 = vpack.c.bf16 %v560_v44, %v560_v44  ;;  %v790_v51 = vpack.c.bf16 %v671_v45, %v671_v45  ;;  %v1211_v52 = vpop.f32.mrb[3].mxu0  ;;  %v1231_v53 = vpop.f32.mrb[3].mxu1 }
 0x22f   : > { %797 = vrot.lane.b32.xlu1 %v787_v50, %s1399_s17  ;;  %789 = vst.msk [vmem:[%s402_s16] sm:$0xf] %vm788_vm1, %v787_v50  ;;  %791 = vst.msk [vmem:[%s1642_s26] sm:$0xf] %vm788_vm1, %v790_v51 }
 0x233   : > { %805 = vrot.lane.b32.xlu1 %v790_v51, %s1399_s17 }
 0x236   : > { %v852_v0 = vld [vmem:[%s402_s16] sm:$0xf] (%p1506_p5) }
 0x237   : > { %853 = vst [vmem:[%s836_s25] sm:$0xf] (%p1506_p5), %v852_v0 }
 0x24a   : > { %v781_v55 = vpop.f32.mrb[4].mxu0 }
 0x24b   : > { %v782_v56 = vadd.f32 %v1139_v54, %v781_v55  ;;  %v1250_v57 = vpop.f32.mrb[5].mxu0 }
 0x24c   : > { %v784_v58 = vpop.f32.mrb[6].mxu0 }
 0x24d   : > { %v792_v59 = vpack.c.bf16 %v782_v56, %v782_v56  ;;  %v1251_v60 = vpop.f32.mrb[7].mxu0 }
 0x24f   : > { %813 = vrot.lane.b32.xlu0 %v792_v59, %s1399_s17  ;;  %793 = vst.msk [vmem:[%s1649_s30] sm:$0xf] %vm788_vm1, %v792_v59 }
 0x2a1   : > { %v798_v61 = vpop.permute.xlu1 %797 }
 0x2a2   : > { %1149 = vst.msk [vmem:[%s402_s16 + $0x4] sm:$0xf] %vm788_vm1, %v798_v61 }
 0x2a5   : > { %v806_v62 = vpop.permute.xlu1 %805 }
 0x2a6   : > { %1151 = vst.msk [vmem:[%s1642_s26 + $0x4] sm:$0xf] %vm788_vm1, %v806_v62 }
 0x2a9   : > { %v854_v1 = vld [vmem:[%s402_s16 + $0x4] sm:$0xf] (%p1506_p5) }
 0x2aa   : > { %855 = vst [vmem:[%s836_s25 + $0xc] sm:$0xf] (%p1506_p5), %v854_v1 }
 0x2bc   : > { %832 = sbr.rel (!%p1506_p5) target bundleno = 707 (0x2c3), region = 60 }
 0x2c1   : > { %v814_v63 = vpop.permute.xlu0 %813 }
 0x2c2   : > { %1153 = vst.msk [vmem:[%s1649_s30 + $0x4] sm:$0xf] %vm788_vm1, %v814_v63 }
 0x2c3 PF: > { %882 = sbr.rel (!%p1506_p5) target bundleno = 714 (0x2ca), region = 101  ;;  %v902_v2 = vld [vmem:[%s1642_s26] sm:$0xf] (%p1506_p5)  ;;  %v904_v3 = vld [vmem:[%s1642_s26 + $0x4] sm:$0xf] (%p1506_p5) }
 0x2c4   : > { %s1254_s15 = smul.u32 (%p1506_p5), 6, %s1383_s20 }
 0x2c6   : > { %s884_s17 = sadd.s32 (%p1506_p5), %s1379_s19, %s1254_s15 }
 0x2c7   : > { %s1158_s16 = sshll.u32 (%p1506_p5), %s884_s17, 2 }
 0x2c8   : > { %s886_s12 = scalar_lea.vmem (%p1506_p5), %s1714_s10, %s1158_s16 }
 0x2c9   : > { %903 = vst [vmem:[%s886_s12] sm:$0xf] (%p1506_p5), %v902_v2  ;;  %905 = vst [vmem:[%s886_s12 + $0xc] sm:$0xf] (%p1506_p5), %v904_v3 }
 0x2ca PF: > { %932 = sbr.rel (!%p1506_p5) target bundleno = 721 (0x2d1), region = 142  ;;  %v952_v4 = vld [vmem:[%s1649_s30] sm:$0xf] (%p1506_p5)  ;;  %v954_v5 = vld [vmem:[%s1649_s30 + $0x4] sm:$0xf] (%p1506_p5) }
 0x2cb   : > { %s1255_s14 = smul.u32 (%p1506_p5), 6, %s1383_s20 }
 0x2cd   : > { %s934_s21 = sadd.s32 (%p1506_p5), %s1379_s19, %s1255_s14 }
 0x2ce   : > { %s1159_s26 = sshll.u32 (%p1506_p5), %s934_s21, 2 }
 0x2cf   : > { %s936_s25 = scalar_lea.vmem (%p1506_p5), %s1715_s11, %s1159_s26 }
 0x2d0   : > { %953 = vst [vmem:[%s936_s25] sm:$0xf] (%p1506_p5), %v952_v4  ;;  %955 = vst [vmem:[%s936_s25 + $0xc] sm:$0xf] (%p1506_p5), %v954_v5 }
 0x2d1 PF: > { %s1725_s15 = sld [smem:[#allocation6_spill]]  ;;  %s1726_s19 = sld [smem:[#allocation5_spill]] }
 0x2d2   : > { %s1727_s21 = sld [smem:[#allocation7_spill]]  ;;  %s1728_s28 = sld [smem:[#allocation8_spill]] }
 0x2d3   : > { %s1729_s17 = smov %s1375_s18  ;;  %s1730_s18 = smov %s1517_s13 }
 0x2d4   : > { %s1731_s20 = smov %s1391_s22 }
 0x2d7   : > { %s22_s23 = sadd.s32 1, %s1725_s15  }
 0x2d8   : > { %p19_p11 = scmp.ge.s32.totalorder %s22_s23, 8   ;;  %s1732_s22 = smov %s1728_s28 }
 0x2da   :  { %21 = sbr.rel (!%p19_p11) target bundleno = 4 (0x4), region = 236 }

// kernel: _lambda_.13
= control target key start
LH: loop header
LB: loop body
LE: loop exit
PB: predicated region body
PF: predicated region fallthrough
CT: control target
= control target key end

     0   :  { %s2089_s0 = inlined_call_operand.vmem [shape: f32[2,24,128], index: 0, kind: input, shape index: {}]   ;;  %s2090_s1 = inlined_call_operand.vmem [shape: bf16[2,2,24,64], index: 1, kind: input, shape index: {}]   ;;  %s2091_s2 = inlined_call_operand.vmem [shape: bf16[128,128], index: 2, kind: input, shape index: {}]   ;;  %s2092_s3 = inlined_call_operand.vmem [shape: f32[1,128], index: 3, kind: input, shape index: {}, may-alias: {3,5,9,11}]   ;;  %s2093_s4 = inlined_call_operand.vmem [shape: f32[1,128], index: 4, kind: input, shape index: {}, may-alias: {4,10}]   ;;  %s2094_s5 = inlined_call_operand.vmem [shape: f32[1,128], index: 5, kind: input, shape index: {}, may-alias: {3,5,9,11}]   ;;  %s2095_s6 = inlined_call_operand.vmem [shape: bf16[128,512], index: 6, kind: input, shape index: {}]   ;;  %s2096_s7 = inlined_call_operand.vmem [shape: f32[1,512], index: 7, kind: input, shape index: {}]   ;;  %s2097_s8 = inlined_call_operand.vmem [shape: bf16[512,128], index: 8, kind: input, shape index: {}]   ;;  %s2098_s9 = inlined_call_operand.vmem [shape: f32[1,128], index: 9, kind: input, shape index: {}, may-alias: {3,5,9,11}]   ;;  %s2099_s10 = inlined_call_operand.vmem [shape: f32[1,128], index: 10, kind: input, shape index: {}, may-alias: {4,10}]   ;;  %s2100_s11 = inlined_call_operand.vmem [shape: f32[1,128], index: 11, kind: input, shape index: {}, may-alias: {3,5,9,11}]   ;;  %s2101_s12 = inlined_call_operand.vmem [shape: f32[2,24,128], index: 12, kind: output, shape index: {}]  }
   0x1   :  { %2106 = sst [smem:[#allocation11_spill]] %s2089_s0 }
   0x2   :  { %2107 = sst [smem:[#allocation12_spill]] %s2092_s3 }
   0x3   :  { %2108 = sst [smem:[#allocation13_spill]] %s2093_s4 }
   0x4   :  { %2109 = sst [smem:[#allocation14_spill]] %s2094_s5 }
   0x5   :  { %2110 = sst [smem:[#allocation15_spill]] %s2098_s9 }
   0x6   :  { %2111 = sst [smem:[#allocation16_spill]] %s2099_s10 }
   0x7   :  { %2112 = sst [smem:[#allocation17_spill]] %s2100_s11 }
   0x8   :  { %s1802_s21 = smov 0   ;;  %s1804_s22 = smov 0  }
   0x9   :  { %s1806_s23 = smov 0   ;;  %s1808_s24 = smov 0  }
   0xa   :  { %s1810_s25 = smov 0   ;;  %s1812_s26 = smov 0  }
   0xb   :  { %s1814_s27 = smov 0   ;;  %s1816_s28 = smov 0  }
   0xc   :  { %s1818_s29 = smov 0   ;;  %s1820_s30 = smov 0  }
   0xd   :  { %s1822_s13 = smov 0  }
   0xe LB: > { %2113 = sst [smem:[#allocation6_spill]] %s1727_s30  ;;  %s34_s14 = sadd.s32 1, %s1719_s28  ;;  %s1731_s13 = sphi %s1822_s13, %s22_s13   ;;  %s1727_s30 = sphi %s1820_s30, %s2131_s30   ;;  %s1723_s29 = sphi %s1818_s29, %s2139_s29   ;;  %s1719_s28 = sphi %s1816_s28, %s2138_s28   ;;  %s1715_s27 = sphi %s1814_s27, %s2128_s27   ;;  %s1711_s26 = sphi %s1812_s26, %s2137_s26   ;;  %s1707_s25 = sphi %s1810_s25, %s2136_s25   ;;  %s1703_s24 = sphi %s1808_s24, %s2135_s24   ;;  %s1699_s23 = sphi %s1806_s23, %s2134_s23   ;;  %s1695_s22 = sphi %s1804_s22, %s2133_s22   ;;  %s1691_s21 = sphi %s1802_s21, %s2132_s21  }
   0xf   : > { %p35_p0 = scmp.ge.s32.totalorder %s34_s14, 2  ;;  %s37_s15 = sadd.s32 1, %s1723_s29 }
  0x10   : > { %s41_s16 = sadd.s32 1, %s1727_s30  ;;  %p85_p1 = scmp.ne.s32.totalorder %s1703_s24, %s1699_s23 }
  0x11   : > { %s2141_s14 = smov (%p35_p0, %s34_s14), 0  ;;  %s2143_s15 = smov (!%p35_p0, %s37_s15), %s1723_s29 }
  0x12   : > { %2114 = sst [smem:[#allocation7_spill]] %s2141_s14  ;;  %p86_p2 = scmp.eq.s32.totalorder %s1731_s13, 0 }
  0x13   : > { %s185_s17 = ssub.s32 %s1719_s28, %s2141_s14  ;;  %p39_p3 = scmp.ge.s32.totalorder %s2143_s15, 3 }
  0x14   : > { %p186_p4 = scmp.eq.s32.totalorder %s185_s17, 0  ;;  %p1870_p5 = por %p86_p2, %p85_p1 }
  0x15   : > { %s188_s19 = sadd.s32 1, %s1695_s22  ;;  %s2145_s15 = smov (%p39_p3, %s2143_s15), 0 }
  0x16   : > { %2116 = sst [smem:[#allocation8_spill]] %s2145_s15  ;;  %s2147_s16 = smov (!%p39_p3, %s41_s16), %s1727_s30 }
  0x17   : > { %p195_p6 = scmp.ne.s32.totalorder %s1695_s22, %s1691_s21  ;;  %p43_p7 = scmp.ge.s32.totalorder %s2147_s16, 2 }
  0x18   : > { %s74_s20 = ssub.s32 %s1723_s29, %s2145_s15  ;;  %s78_s5 = sadd.s32 1, %s1703_s24 }
  0x19   : > { %s1883_s11 = scalar_select %p186_p4, %s1695_s22, %s188_s19  }
  0x1a   : > { %s2149_s16 = smov (%p43_p7, %s2147_s16), 0  ;;  %p1889_p8 = por %p195_p6, %p86_p2 }
  0x1b   : > { %2117 = sst [smem:[#allocation9_spill]] %s1883_s11  ;;  %s73_s14 = ssub.s32 %s1727_s30, %s2149_s16 }
  0x1c   : > { %2118 = sst [smem:[#allocation10_spill]] %s2149_s16  ;;  %s75_s10 = sor.u32 %s74_s20, %s73_s14 }
  0x1d   : > { %p76_p9 = scmp.eq.s32.totalorder %s75_s10, 0  ;;  %p1377_p10 = scmp.ge.s32.totalorder %s1731_s13, 12 }
  0x1f   : > { %s1897_s4 = scalar_select %p76_p9, %s1703_s24, %s78_s5  }
  0x20   : > { %385 = sbr.rel (%p1377_p10) target bundleno = 59 (0x3b), region = 44 }
  0x27   : > { %399 = sbr.rel (!%p1870_p5) target bundleno = 47 (0x2f), region = 52  ;;  %s401_s19 = sand.u32 (%p1870_p5), 1, %s1703_s24  }
  0x28   : > { %s1494_s15 = smul.u32 (%p1870_p5), 6, %s1727_s30  ;;  %s1378_s11 = sshll.u32 (%p1870_p5), %s401_s19, 3 }
  0x29   : > { %s403_s5 = scalar_lea.vmem (%p1870_p5), [#allocation4], %s1378_s11 }
  0x2a   : > { %s405_s9 = sadd.s32 (%p1870_p5), %s1723_s29, %s1494_s15 }
  0x2b   : > { %s1379_s3 = sshll.u32 (%p1870_p5), %s405_s9, 2 }
  0x2c   : > { %s407_s10 = scalar_lea.vmem (%p1870_p5), %s2090_s1, %s1379_s3 }
  0x2d   : > { %v423_v0 = vld [vmem:[%s407_s10] sm:$0xf] (%p1870_p5)  ;;  %v425_v1 = vld [vmem:[%s407_s10 + $0xc] sm:$0xf] (%p1870_p5) }
  0x2e   : > { %424 = vst [vmem:[%s403_s5] sm:$0xf] %v423_v0  ;;  %426 = vst [vmem:[%s403_s5 + $0x4] sm:$0xf] %v425_v1 }
  0x2f PF: > { %453 = sbr.rel (!%p1889_p8) target bundleno = 59 (0x3b), region = 93  ;;  %s455_s18 = sand.u32 (%p1889_p8), 1, %s1695_s22  }
  0x30   : > { %s1442_s20 = sshll.u32 (%p1889_p8), %s1719_s28, 3  ;;  %s1380_s19 = sshll.u32 (%p1889_p8), %s455_s18, 7 }
  0x31   : > { %s1915_s30 = scalar_lea.vmem (%p1889_p8), %s2095_s6, %s1442_s20  ;;  %s457_s3 = scalar_lea.vmem (%p1889_p8), [#allocation5], %s1380_s19 }
  0x32   : > { %v518_v2 = vld [vmem:[%s1915_s30] sm:$0xff] (%p1889_p8)  ;;  %v520_v3 = vld [vmem:[%s1915_s30 + $0x10] sm:$0xff] (%p1889_p8) }
  0x33   : > { %v522_v4 = vld [vmem:[%s1915_s30 + $0x20] sm:$0xff] (%p1889_p8)  ;;  %519 = vst [vmem:[%s457_s3] sm:$0xff] (%p1889_p8), %v518_v2  ;;  %521 = vst [vmem:[%s457_s3 + $0x8] sm:$0xff] (%p1889_p8), %v520_v3  ;;  %v524_v5 = vld [vmem:[%s1915_s30 + $0x30] sm:$0xff] (%p1889_p8) }
  0x34   : > { %523 = vst [vmem:[%s457_s3 + $0x10] sm:$0xff] (%p1889_p8), %v522_v4  ;;  %v526_v6 = vld [vmem:[%s1915_s30 + $0x40] sm:$0xff] (%p1889_p8)  ;;  %v528_v7 = vld [vmem:[%s1915_s30 + $0x50] sm:$0xff] (%p1889_p8)  ;;  %525 = vst [vmem:[%s457_s3 + $0x18] sm:$0xff] (%p1889_p8), %v524_v5 }
  0x35   : > { %527 = vst [vmem:[%s457_s3 + $0x20] sm:$0xff] (%p1889_p8), %v526_v6  ;;  %529 = vst [vmem:[%s457_s3 + $0x28] sm:$0xff] (%p1889_p8), %v528_v7  ;;  %v530_v8 = vld [vmem:[%s1915_s30 + $0x60] sm:$0xff] (%p1889_p8)  ;;  %v532_v9 = vld [vmem:[%s1915_s30 + $0x70] sm:$0xff] (%p1889_p8) }
  0x36   : > { %v534_v10 = vld [vmem:[%s1915_s30 + $0x80] sm:$0xff]  ;;  %531 = vst [vmem:[%s457_s3 + $0x30] sm:$0xff] %v530_v8  ;;  %533 = vst [vmem:[%s457_s3 + $0x38] sm:$0xff] %v532_v9  ;;  %v536_v11 = vld [vmem:[%s1915_s30 + $0x90] sm:$0xff] }
  0x37   : > { %535 = vst [vmem:[%s457_s3 + $0x40] sm:$0xff] %v534_v10  ;;  %v538_v12 = vld [vmem:[%s1915_s30 + $0xa0] sm:$0xff]  ;;  %v540_v13 = vld [vmem:[%s1915_s30 + $0xb0] sm:$0xff]  ;;  %537 = vst [vmem:[%s457_s3 + $0x48] sm:$0xff] %v536_v11 }
  0x38   : > { %539 = vst [vmem:[%s457_s3 + $0x50] sm:$0xff] %v538_v12  ;;  %541 = vst [vmem:[%s457_s3 + $0x58] sm:$0xff] %v540_v13  ;;  %v542_v14 = vld [vmem:[%s1915_s30 + $0xc0] sm:$0xff]  ;;  %v544_v15 = vld [vmem:[%s1915_s30 + $0xd0] sm:$0xff] }
  0x39   : > { %v546_v16 = vld [vmem:[%s1915_s30 + $0xe0] sm:$0xff]  ;;  %543 = vst [vmem:[%s457_s3 + $0x60] sm:$0xff] %v542_v14  ;;  %545 = vst [vmem:[%s457_s3 + $0x68] sm:$0xff] %v544_v15  ;;  %v548_v17 = vld [vmem:[%s1915_s30 + $0xf0] sm:$0xff] }
  0x3a   : > { %547 = vst [vmem:[%s457_s3 + $0x70] sm:$0xff] %v546_v16  ;;  %549 = vst [vmem:[%s457_s3 + $0x78] sm:$0xff] %v548_v17 }
  0x3b PF: > { %p1383_p11 = scmp.ge.s32.totalorder %s1731_s13, 1  ;;  %p571_p12 = scmp.lt.s32.totalorder %s1731_s13, 13 }
  0x3d   : > { %p572_p13 = pnand %p1383_p11, %p571_p12 }
  0x3e   : > { %s578_s11 = sand.u32 (!%p572_p13), 1, %s1699_s23   ;;  %s585_s16 = sand.u32 (!%p572_p13), 1, %s1691_s21  }
  0x3f   : > { %575 = sbr.rel (%p572_p13) target bundleno = 1539 (0x603), region = 139  ;;  %s1937_s30 = sshll.u32 (!%p572_p13), %s578_s11, 3 }
  0x40   : > { %s1385_s17 = sshll.u32 (!%p572_p13), %s585_s16, 7  ;;  %p650_p0 = scmp.lt.s32.totalorder (!%p572_p13), %s1715_s27, 1 }
  0x41   : > { %p652_p1 = scmp.lt.s32.totalorder (!%p572_p13), %s1711_s26, 2  ;;  %s1387_s14 = sshll.u32 (!%p572_p13), %s1707_s25, 1 }
  0x42   : > { %s1388_s10 = sshll.u32 (!%p572_p13), %s1707_s25, 5  ;;  %p660_p2 = scmp.lt.s32.totalorder (!%p572_p13), %s1387_s14, 3 }
  0x43   : > { %p665_p3 = scmp.lt.s32.totalorder (!%p572_p13), %s1388_s10, 63  ;;  %s2120_s0 = sld [smem:[#allocation11_spill]] (!%p572_p13) }
  0x44   : > { %s580_s15 = scalar_lea.vmem (!%p572_p13), [#allocation4], %s1937_s30  ;;  %p1391_p4 = scmp.ne.s32.totalorder (!%p572_p13), %s1707_s25, 0 }
  0x46   : > { %s2151_s27 = smov (!%p650_p0, %s1715_s27), 1  ;;  %s2153_s26 = smov (!%p652_p1, %s1711_s26), 2 }
  0x47   : > { %s1495_s5 = smul.u32 3, %s2151_s27  ;;  %s2155_s14 = smov (!%p660_p2, %s1387_s14), 3  ;;  %v1588_v18 = vld [vmem:[%s580_s15 + $0x4] ss:$0 sps:$4 sm:$0xff] (!%p1391_p4)   ;;  %v1733_v19 = vmov (!%p1391_p4), 0.0   ;;  %v1589_v20 = vld [vmem:[%s2091_s2] sm:$0xff] (!%p1391_p4)  }
  0x48   : > { %s2157_s10 = smov (!%p665_p3, %s1388_s10), 63  ;;  %682 = sbr.rel (%p1391_p4) target bundleno = 724 (0x2d4), region = 151 }
  0x49   : > { %s655_s18 = sadd.s32 %s1495_s5, %s2153_s26  ;;  %s662_s26 = scalar_lea.vmem %s2096_s7, %s2155_s14  ;;  %1474 = vmatprep.subr.bf16.mxu0 (!%p1391_p4), %v1733_v19  ;;  %vm1735_vm0 = vmmov (!%p1391_p4), 0   ;;  %v1590_v21 = vld [vmem:[%s2091_s2 + $0x8] sm:$0xff] (!%p1391_p4)   ;;  %v1591_v22 = vld [vmem:[%s2091_s2 + $0x10] sm:$0xff] (!%p1391_p4)   ;;  %v1592_v23 = vld [vmem:[%s2091_s2 + $0x18] sm:$0xff] (!%p1391_p4)   ;;  %vm690_vm1 = vcmask (!%p1391_p4), 523264  }
  0x4a   : > { %s1386_s20 = sshll.u32 %s655_s18, 3  ;;  %s1389_s16 = sshll.u32 %s2157_s10, 2  ;;  %1490 = vmatprep.mubr.msk.bf16.mxu0 (!%p1391_p4), %vm1735_vm0, %v1733_v19  ;;  %1475 = vmatpush3.bf16.msra.mxu0 (!%p1391_p4), %v1589_v20  ;;  %v1593_v24 = vld [vmem:[%s2091_s2 + $0x20] sm:$0xff] (!%p1391_p4)   ;;  %v1594_v25 = vld [vmem:[%s2091_s2 + $0x28] sm:$0xff] (!%p1391_p4)   ;;  %v1595_v26 = vld [vmem:[%s2091_s2 + $0x30] sm:$0xff] (!%p1391_p4)  }
  0x4b   : > { %s1948_s23 = scalar_lea.vmem %s2120_s0, %s1386_s20  ;;  %s1953_s3 = scalar_lea.vmem %s2101_s12, %s1386_s20  ;;  %1476 = vmatprep.subr.bf16.mxu0 (!%p1391_p4), %v1733_v19  ;;  %v1596_v27 = vld [vmem:[%s2091_s2 + $0x38] sm:$0xff] (!%p1391_p4)   ;;  %v683_v28 = vld [vmem:[%s580_s15] sm:$0xf] (!%p1391_p4) }
  0x4c   : > { %s1964_s19 = scalar_lea.vmem %s2097_s8, %s1389_s16  ;;  %s1967_s0 = scalar_lea.vmem [#allocation5], %s1385_s17  ;;  %v695_v31 = vld [vmem:[%s1948_s23] sm:$0xff] (!%p1391_p4) }
  0x4d   : > { %s1734_s10 = smov (!%p1391_p4), 64   ;;  %s2121_s18 = sld [smem:[#allocation12_spill]] (!%p1391_p4) }
  0x4e   : > { %688 = vrot.lane.b32.xlu0 (!%p1391_p4), %v1588_v18, %s1734_s10  ;;  %1477 = vmatpush3.bf16.msra.mxu0 (!%p1391_p4), %v1590_v21  ;;  %s2122_s10 = sld [smem:[#allocation15_spill]] (!%p1391_p4)  ;;  %s2123_s15 = sld [smem:[#allocation13_spill]] (!%p1391_p4) }
  0x4f   : > { %1478 = vmatprep.subr.bf16.mxu0 %v1733_v19  ;;  %s2124_s11 = sld [smem:[#allocation14_spill]] }
  0x52   : > { %1479 = vmatpush3.bf16.msra.mxu0 %v1591_v22 }
  0x53   : > { %1480 = vmatprep.subr.bf16.mxu0 %v1733_v19  ;;  %v1401_v33 = vld [vmem:[%s2121_s18] ss:$0 sm:$0xff] }
  0x54   : > { %v1404_v36 = vld [vmem:[%s2122_s10] ss:$0 sm:$0xff] }
  0x55   : > { %v1402_v49 = vld [vmem:[%s2123_s15] ss:$0 sm:$0xff] }
  0x56   : > { %1481 = vmatpush3.bf16.msra.mxu0 %v1592_v23  ;;  %v1403_v51 = vld [vmem:[%s2124_s11] ss:$0 sm:$0xff] }
  0x57   : > { %1482 = vmatprep.subr.bf16.mxu0 %v1733_v19 }
  0x5a   : > { %1483 = vmatpush3.bf16.msra.mxu0 %v1593_v24 }
  0x5b   : > { %1484 = vmatprep.subr.bf16.mxu0 %v1733_v19 }
  0x5e   : > { %1485 = vmatpush3.bf16.msra.mxu0 %v1594_v25 }
  0x5f   : > { %1486 = vmatprep.subr.bf16.mxu0 %v1733_v19 }
  0x62   : > { %1487 = vmatpush3.bf16.msra.mxu0 %v1595_v26 }
  0x63   : > { %1488 = vmatprep.subr.bf16.mxu0 %v1733_v19 }
  0x66   : > { %1489 = vmatpush3.bf16.msra.mxu0 %v1596_v27 }
  0xc0   : > { %v689_v29 = vpop.permute.xlu0 %688 }
  0xc1   : > { %v693_v30 = vsel %vm690_vm1, %v683_v28, %v689_v29 }
  0xc2   : > { %1491 = vmatmul.mubr.bf16.vlgmr.msra.gmra.mrb[0].mxu0 %v693_v30 }
 0x195   : > { %v794_v32 = vpop.f32.mrb[0].mxu0 }
 0x196   : > { %v800_v34 = vadd.f32 %v794_v32, %v695_v31  ;;  %v1492_v35 = vpop.f32.mrb[1].mxu0 }
 0x197   : > { %v797_v37 = vpop.f32.mrb[2].mxu0 }
 0x198   : > { %v808_v38 = vadd.f32 %v1401_v33, %v800_v34  ;;  %v1493_v39 = vpop.f32.mrb[3].mxu0 }
 0x19a   : > { %v846_v40 = vadd.f32 %v1404_v36, %v808_v38  ;;  %811 = vadd.xlane.f32.xlu0 %v808_v38 }
 0x19c   : > { %847 = vst [vmem:[#allocation3] sm:$0xff] %v846_v40 }
 0x227   : > { %v812_v41 = vpop.xlane.xlu0 %811 }
 0x228   : > { %v814_v42 = vmul.f32 0.0078125, %v812_v41 }
 0x22a   : > { %v815_v43 = vsub.f32 %v808_v38, %v814_v42 }
 0x22c   : > { %v816_v44 = vmul.f32 %v815_v43, %v815_v43 }
 0x22e   : > { %817 = vadd.xlane.f32.xlu1 %v816_v44 }
 0x2bb   : > { %v818_v45 = vpop.xlane.xlu1 %817 }
 0x2bc   : > { %v819_v46 = vmul.f32 0.0078125, %v818_v45 }
 0x2be   : > { %v820_v47 = vadd.f32 1e-06, %v819_v46 }
 0x2c0   : > { %1597 = vrsqrt.f32 %v820_v47 }
 0x2ca   : > { %v1598_v48 = vpop.eup %1597 }
 0x2cb   : > { %v822_v50 = vmul.f32 %v1598_v48, %v815_v43 }
 0x2cd   : > { %v829_v52 = vmul.f32 %v1402_v49, %v822_v50 }
 0x2cf   : > { %v836_v53 = vadd.f32 %v1403_v51, %v829_v52 }
 0x2d1   : > { %v837_v54 = vpack.c.bf16 %v836_v53, %v836_v53 }
 0x2d3   : > { %838 = vst [vmem:[#allocation2] sm:$0xf] %v837_v54 }
 0x2d4 PF: > { %v1599_v55 = vld [vmem:[%s1967_s0 + $0x4] ss:$8 sps:$4 sm:$0xff]   ;;  %v1601_v56 = vld [vmem:[%s1967_s0] ss:$8 sps:$4 sm:$0xff]   ;;  %v1736_v57 = vmov 0   ;;  %v1627_v13 = vld [vmem:[%s1964_s19 + $0x50] sm:$0xff]   ;;  %v867_v25 = vlaneseq }
 0x2d5   : > { %989 = vmatprep.mubr.bf16.mxu0 %v1736_v57  ;;  %957 = vmatprep.subr.bf16.mxu0 %v1599_v55  ;;  %v1602_v58 = vld [vmem:[%s1967_s0 + $0x14] ss:$8 sps:$4 sm:$0xff]   ;;  %v1604_v59 = vld [vmem:[%s1967_s0 + $0x10] ss:$8 sps:$4 sm:$0xff]   ;;  %v1605_v60 = vld [vmem:[%s1967_s0 + $0x24] ss:$8 sps:$4 sm:$0xff]  }
 0x2d6   : > { %958 = vmatpush1.bf16.msra.mxu0 %v1601_v56  ;;  %v1607_v61 = vld [vmem:[%s1967_s0 + $0x20] ss:$8 sps:$4 sm:$0xff]   ;;  %v1608_v62 = vld [vmem:[%s1967_s0 + $0x34] ss:$8 sps:$4 sm:$0xff]   ;;  %v1610_v63 = vld [vmem:[%s1967_s0 + $0x30] ss:$8 sps:$4 sm:$0xff]  }
 0x2d7   : > { %959 = vmatprep.subr.bf16.mxu0 %v1602_v58  ;;  %v1611_v0 = vld [vmem:[%s1967_s0 + $0x44] ss:$8 sps:$4 sm:$0xff]   ;;  %v1613_v1 = vld [vmem:[%s1967_s0 + $0x40] ss:$8 sps:$4 sm:$0xff]   ;;  %v1614_v2 = vld [vmem:[%s1967_s0 + $0x54] ss:$8 sps:$4 sm:$0xff]  }
 0x2d8   : > { %v1616_v3 = vld [vmem:[%s1967_s0 + $0x50] ss:$8 sps:$4 sm:$0xff]   ;;  %v1617_v4 = vld [vmem:[%s1967_s0 + $0x64] ss:$8 sps:$4 sm:$0xff]   ;;  %v1619_v5 = vld [vmem:[%s1967_s0 + $0x60] ss:$8 sps:$4 sm:$0xff]  }
 0x2d9   : > { %v1620_v6 = vld [vmem:[%s1967_s0 + $0x74] ss:$8 sps:$4 sm:$0xff]   ;;  %v1622_v7 = vld [vmem:[%s1967_s0 + $0x70] ss:$8 sps:$4 sm:$0xff]   ;;  %v1623_v9 = vld [vmem:[%s1964_s19 + $0x40] sm:$0xff]   ;;  %v868_v26 = vshrl.u32 %v867_v25, 7 }
 0x2da   : > { %960 = vmatpush1.bf16.msra.mxu0 %v1604_v59  ;;  %v848_v8 = vld [vmem:[#allocation2] sm:$0xf]  ;;  %1452 = vmatprep.subr.bf16.mxu1 %v1623_v9  ;;  %v1625_v11 = vld [vmem:[%s1964_s19 + $0x48] sm:$0xff]   ;;  %v1628_v14 = vld [vmem:[%s1964_s19 + $0x10] sm:$0xff]   ;;  %p1437_p5 = scmp.ne.s32.totalorder %s1707_s25, 1 }
 0x2db   : > { %961 = vmatprep.subr.bf16.mxu0 %v1605_v60  ;;  %v1624_v10 = vld [vmem:[%s1964_s19] sm:$0xff]   ;;  %v1626_v12 = vld [vmem:[%s1964_s19 + $0x8] sm:$0xff]   ;;  %v1629_v15 = vld [vmem:[%s1964_s19 + $0x58] sm:$0xff]   ;;  %v869_v27 = vsub.s32 0, %v868_v26  ;;  %v873_v29 = vsub.s32 1, %v868_v26  ;;  %s2126_s5 = sld [smem:[#allocation17_spill]] (!%p1437_p5) }
 0x2dc   : > { %1453 = vmatpush3.bf16.msra.mxu1 %v1624_v10  ;;  %v1630_v16 = vld [vmem:[%s1964_s19 + $0x18] sm:$0xff]   ;;  %v1631_v17 = vld [vmem:[%s1964_s19 + $0x60] sm:$0xff]   ;;  %v1633_v19 = vld [vmem:[%s1964_s19 + $0x68] sm:$0xff]  }
 0x2dd   : > { %1454 = vmatprep.subr.bf16.mxu1 %v1625_v11  ;;  %v1632_v18 = vld [vmem:[%s1964_s19 + $0x20] sm:$0xff]   ;;  %v1634_v20 = vld [vmem:[%s1964_s19 + $0x28] sm:$0xff]   ;;  %v1635_v21 = vld [vmem:[%s1964_s19 + $0x70] sm:$0xff]  }
 0x2de   : > { %962 = vmatpush1.bf16.msra.mxu0 %v1607_v61  ;;  %v1636_v22 = vld [vmem:[%s1964_s19 + $0x30] sm:$0xff]   ;;  %v1637_v23 = vld [vmem:[%s1964_s19 + $0x78] sm:$0xff]   ;;  %v865_v28 = vld [vmem:[%s662_s26] sm:$0x3] }
 0x2df   : > { %963 = vmatprep.subr.bf16.mxu0 %v1608_v62  ;;  %v1638_v24 = vld [vmem:[%s1964_s19 + $0x38] sm:$0xff]   ;;  %v870_v30 = vrot.slane %v865_v28, %v869_v27  ;;  %v874_v31 = vrot.slane %v865_v28, %v873_v29  ;;  %v1016_v59 = vld [vmem:[#allocation3] sm:$0xff]  ;;  %s2125_s19 = sld [smem:[#allocation16_spill]] (!%p1437_p5) }
 0x2e0   : > { %1455 = vmatpush3.bf16.msra.mxu1 %v1626_v12 }
 0x2e1   : > { %1456 = vmatprep.subr.bf16.mxu1 %v1627_v13  ;;  %v1439_v12 = vld [vmem:[%s2126_s5] ss:$0 sm:$0xff] (!%p1437_p5) }
 0x2e2   : > { %964 = vmatpush1.bf16.msra.mxu0 %v1610_v63 }
 0x2e3   : > { %965 = vmatprep.subr.bf16.mxu0 %v1611_v0 }
 0x2e4   : > { %1457 = vmatpush3.bf16.msra.mxu1 %v1628_v14 }
 0x2e5   : > { %1458 = vmatprep.subr.bf16.mxu1 %v1629_v15  ;;  %v1438_v10 = vld [vmem:[%s2125_s19] ss:$0 sm:$0xff] (!%p1437_p5) }
 0x2e6   : > { %966 = vmatpush1.bf16.msra.mxu0 %v1613_v1 }
 0x2e7   : > { %967 = vmatprep.subr.bf16.mxu0 %v1614_v2 }
 0x2e8   : > { %1459 = vmatpush3.bf16.msra.mxu1 %v1630_v16 }
 0x2e9   : > { %1460 = vmatprep.subr.bf16.mxu1 %v1631_v17 }
 0x2ea   : > { %968 = vmatpush1.bf16.msra.mxu0 %v1616_v3 }
 0x2eb   : > { %969 = vmatprep.subr.bf16.mxu0 %v1617_v4 }
 0x2ec   : > { %1461 = vmatpush3.bf16.msra.mxu1 %v1632_v18 }
 0x2ed   : > { %1462 = vmatprep.subr.bf16.mxu1 %v1633_v19 }
 0x2ee   : > { %970 = vmatpush1.bf16.msra.mxu0 %v1619_v5 }
 0x2ef   : > { %971 = vmatprep.subr.bf16.mxu0 %v1620_v6 }
 0x2f0   : > { %1463 = vmatpush3.bf16.msra.mxu1 %v1634_v20 }
 0x2f1   : > { %1464 = vmatprep.subr.bf16.mxu1 %v1635_v21 }
 0x2f2   : > { %972 = vmatpush1.bf16.msra.mxu0 %v1622_v7 }
 0x2f4   : > { %1465 = vmatpush3.bf16.msra.mxu1 %v1636_v22 }
 0x2f5   : > { %990 = vmatmul.mubr.bf16.vlgmr.msra.gmra.mrb[0].mxu0 %v848_v8  ;;  %1466 = vmatprep.subr.bf16.mxu1 %v1637_v23 }
 0x2f8   : > { %1467 = vmatpush3.bf16.msra.mxu1 %v1638_v24 }
 0x3c8   : > { %v991_v32 = vpop.f32.mrb[0].mxu0 }
 0x3c9   : > { %v992_v33 = vadd.f32 %v991_v32, %v870_v30  ;;  %v993_v34 = vpop.f32.mrb[1].mxu0 }
 0x3ca   : > { %v994_v35 = vadd.f32 %v993_v34, %v874_v31  ;;  %v995_v36 = vpop.f32.mrb[2].mxu0 }
 0x3cb   : > { %v998_v37 = vmul.f32 %v992_v33, %v992_v33  ;;  %v996_v38 = vpop.f32.mrb[3].mxu0 }
 0x3cc   : > { %v999_v39 = vmul.f32 %v994_v35, %v994_v35 }
 0x3cd   : > { %v1000_v40 = vmul.f32 %v998_v37, %v992_v33 }
 0x3ce   : > { %v1001_v41 = vmul.f32 %v999_v39, %v994_v35 }
 0x3cf   : > { %v1002_v42 = vmul.f32 0.044715, %v1000_v40 }
 0x3d0   : > { %v1003_v43 = vmul.f32 0.044715, %v1001_v41 }
 0x3d1   : > { %v1004_v44 = vadd.f32 %v1002_v42, %v992_v33 }
 0x3d2   : > { %v1005_v45 = vadd.f32 %v1003_v43, %v994_v35 }
 0x3d3   : > { %v1006_v46 = vmul.f32 0.7978846, %v1004_v44 }
 0x3d4   : > { %v1007_v47 = vmul.f32 0.7978846, %v1005_v45 }
 0x3d5   : > { %1639 = vtanh.f32 %v1006_v46 }
 0x3d6   : > { %1641 = vtanh.f32 %v1007_v47 }
 0x3df   : > { %v1640_v48 = vpop.eup %1639 }
 0x3e0   : > { %v1642_v49 = vpop.eup %1641  ;;  %v1010_v50 = vadd.f32 1.0, %v1640_v48 }
 0x3e1   : > { %v1011_v51 = vadd.f32 1.0, %v1642_v49 }
 0x3e2   : > { %v1012_v52 = vmul.f32 0.5, %v1010_v50 }
 0x3e3   : > { %v1013_v53 = vmul.f32 0.5, %v1011_v51 }
 0x3e4   : > { %v1014_v54 = vmul.f32 %v1012_v52, %v992_v33 }
 0x3e5   : > { %v1015_v55 = vmul.f32 %v1013_v53, %v994_v35 }
 0x3e6   : > { %v1017_v57 = vpack.c.bf16 %v1014_v54, %v1014_v54 }
 0x3e7   : > { %v1018_v56 = vpack.c.bf16 %v1015_v55, %v1015_v55 }
 0x3e9   : > { %1179 = vmatprep.mubr.bf16.mxu1 %v1018_v56 }
 0x3ea   : > { %1180 = vmatmul.mubr.bf16.vlgmr.msra.gmra.mrb[0].mxu1 %v1017_v57 }
 0x4bd   : > { %v1468_v58 = vpop.f32.mrb[0].mxu1  ;;  %1192 = sbr.rel (%p1437_p5) target bundleno = 1539 (0x603), region = 155 }
 0x4be   : > { %v1469_v60 = vpop.f32.mrb[1].mxu1 }
 0x4bf   : > { %v1470_v61 = vadd.f32 %v1469_v60, %v1468_v58  ;;  %v1471_v62 = vpop.f32.mrb[2].mxu1 }
 0x4c0   : > { %v1472_v63 = vpop.f32.mrb[3].mxu1 }
 0x4c1   : > { %v1187_v0 = vadd.f32 %v1470_v61, %v1016_v59 }
 0x4c3   : > { %1188 = vst [vmem:[#allocation3] sm:$0xff] %v1187_v0 }
 0x4ca   : > { %v1193_v1 = vld [vmem:[#allocation3] sm:$0xff] }
 0x4cb   : > { %1196 = vadd.xlane.f32.xlu0 %v1193_v1 }
 0x558   : > { %v1197_v2 = vpop.xlane.xlu0 %1196 }
 0x559   : > { %v1199_v3 = vmul.f32 0.0078125, %v1197_v2 }
 0x55b   : > { %v1200_v4 = vsub.f32 %v1193_v1, %v1199_v3 }
 0x55d   : > { %v1201_v5 = vmul.f32 %v1200_v4, %v1200_v4 }
 0x55f   : > { %1202 = vadd.xlane.f32.xlu0 %v1201_v5 }
 0x5ec   : > { %v1203_v6 = vpop.xlane.xlu0 %1202 }
 0x5ed   : > { %v1204_v7 = vmul.f32 0.0078125, %v1203_v6 }
 0x5ef   : > { %v1205_v8 = vadd.f32 1e-06, %v1204_v7 }
 0x5f1   : > { %1643 = vrsqrt.f32 %v1205_v8 }
 0x5fb   : > { %v1644_v9 = vpop.eup %1643 }
 0x5fc   : > { %v1207_v11 = vmul.f32 %v1644_v9, %v1200_v4 }
 0x5fe   : > { %v1214_v13 = vmul.f32 %v1438_v10, %v1207_v11 }
 0x600   : > { %v1221_v14 = vadd.f32 %v1439_v12, %v1214_v13 }
 0x602   : > { %1222 = vst [vmem:[%s1953_s3] sm:$0xff] %v1221_v14 }
 0x603 PF: > { %s22_s13 = sadd.s32 1, %s1731_s13   ;;  %s2127_s18 = sld [smem:[#allocation9_spill]] }
 0x604   : > { %p19_p6 = scmp.ge.s32.totalorder %s22_s13, 14   ;;  %s2128_s27 = sld [smem:[#allocation6_spill]] }
 0x605   : > { %s2129_s20 = sld [smem:[#allocation7_spill]]  ;;  %s2130_s10 = sld [smem:[#allocation8_spill]] }
 0x606   : > { %s2131_s30 = sld [smem:[#allocation10_spill]]  ;;  %s2132_s21 = smov %s1695_s22 }
 0x607   : > { %s2134_s23 = smov %s1703_s24  ;;  %s2135_s24 = smov %s1897_s4 }
 0x608   : > { %s2136_s25 = smov %s1719_s28  ;;  %s2137_s26 = smov %s1723_s29 }
 0x609   : > { %s2133_s22 = smov %s2127_s18  ;;  %21 = sbr.rel (!%p19_p6) target bundleno = 14 (0xe), region = 207 }
 0x60b   : > { %s2138_s28 = smov %s2129_s20  ;;  %s2139_s29 = smov %s2130_s10 }

</bundles_post_ra>
